<compile_context>
chip_gen: v5e
topology: v5e:2x2
jax: 0.10.0
libtpu: 0.0.40
codegen_flags: <defaults>
</compile_context>

<pallas_src>
import functools

import jax
import jax.numpy as jnp
from jax import lax
from jax.experimental import pallas as pl
from jax.experimental.pallas import tpu as pltpu

LANE = 128
SUBLANE = 8


def _round_up(x, m):
    return ((x + m - 1) // m) * m


# ----------------------------- fused kernel --------------------------------

def _fused_forward_kernel(scal_ref, ori_ref, smooth_ref, ure_ref, w_ref, b_ref,
                          ori_out_ref, smooth_out_ref, prop_out_ref, stack_ref,
                          *, cfg):
    L = cfg["num_layers"]
    hid = cfg["hidden"]
    out_dim = cfg["out_dim"]

    a_model = scal_ref[0]
    a_hete = scal_ref[1]
    beta = scal_ref[2]

    def prelu(x, a):
        return jnp.where(x > 0, x, a * x)

    def w_of(name):
        off, k, c = cfg["w"][name]          # static python ints -> free slices
        return w_ref[off:off + k, :c]

    def b_of(name):
        row, c = cfg["b"][name]
        return b_ref[row:row + 1, :c]

    def dot_f32(x, w):
        return jnp.dot(x, w, preferred_element_type=jnp.float32)

    def dot_bf16(x, w):
        # bf16 MXU operands, f32 accumulation (MXU is bf16-native on v5e/v6e/v7x).
        return jnp.dot(x.astype(jnp.bfloat16), w.astype(jnp.bfloat16),
                       preferred_element_type=jnp.float32)

    # ------------------------------------------------------------------
    # Towers.  Layer 0 of the smooth and hete towers share the same LHS
    # (smoothed_feature): weights were concatenated host-side, so one MXU
    # pass produces both, split before the two PReLUs (different alphas).
    #
    # Precision policy: everything feeding `emb` stays f32 because the
    # downstream 1/(lr_max - lr_mean) rescale amplifies emb/Gram error
    # ~100x into the propagation-softmax logits; the ori tower and the
    # smooth tower's post-split layers only feed directly-returned
    # outputs, so they use bf16 MXU operands.
    # ------------------------------------------------------------------
    smooth_x = smooth_ref[...]

    z0 = dot_f32(smooth_x, w_of("l0_sh")) + b_of("l0_sh")
    s_h = prelu(z0[:, :hid], a_model)           # smooth-tower hidden
    h_h = prelu(z0[:, hid:2 * hid], a_hete)     # hete-tower hidden

    x = s_h
    for i in range(1, L):
        y = dot_bf16(x, w_of(f"s{i}")) + b_of(f"s{i}")
        x = y if i == L - 1 else prelu(y, a_model)
    smooth_out_ref[...] = x                     # local_smooth_emb (lane padded)

    x = h_h
    for i in range(1, L):
        y = dot_f32(x, w_of(f"h{i}")) + b_of(f"h{i}")
        x = y if i == L - 1 else prelu(y, a_hete)
    emb = x                                     # feature_emb, padded cols == 0

    x = ori_ref[...]
    for i in range(L):
        y = dot_bf16(x, w_of(f"l{i}")) + b_of(f"l{i}")
        x = y if i == L - 1 else prelu(y, a_model)
    ori_out_ref[...] = x                        # local_ori_emb (lane padded)

    # ------------------------------------------------------------------
    # HetePropagateLayer tail.
    # ------------------------------------------------------------------
    n, d_pad = emb.shape

    col_mask = lax.broadcasted_iota(jnp.int32, (n, d_pad), 1) < out_dim
    is_diag = (lax.broadcasted_iota(jnp.int32, (n, n), 0)
               == lax.broadcasted_iota(jnp.int32, (n, n), 1))

    def masked_row_softmax(x, approx):
        xm = jnp.where(col_mask, x, -1e30)      # padded lanes are inert
        m = jnp.max(xm, axis=1, keepdims=True)
        e = jnp.exp(xm - m)
        s = jnp.sum(e, axis=1, keepdims=True)
        return e * pl.reciprocal(s, approx=approx)

    # ---- getre_scale -------------------------------------------------
    # Exact reciprocal here: this softmax feeds the Gram matrix and the
    # 1/(max-mean) rescale, which amplify any approximation error.
    sm = masked_row_softmax(emb, approx=False)
    # diag(sm @ sm.T) as a per-row reduction; fold the rsqrt scaling into the
    # matmul inputs: re_ij / sqrt(d_i*d_j) == (sm_i/sqrt(d_i)).(sm_j/sqrt(d_j)).
    d = jnp.sum(sm * sm, axis=1, keepdims=True)             # [N, 1]
    inv_sqrt_d = 1.0 / jnp.sqrt(jnp.maximum(d, 1e-18))      # exact; the 1e-9
    sm_n = sm * inv_sqrt_d                                   # ref clamp never binds
    re = lax.dot_general(sm_n, sm_n, (((1,), (1,)), ((), ())),
                         preferred_element_type=jnp.float32)  # [N, N]
    re = jnp.where(is_diag, 0.0, re)                         # zero the diagonal

    # ---- blend with universal_re + mean/max rescale ------------------
    ure = ure_ref[...].astype(jnp.float32)       # streamed from HBM as bf16
    lr = beta * ure + (1.0 - beta) * re
    lr_mean = jnp.mean(lr)
    lr_max = jnp.max(lr)
    # NB: matches reference semantics (inf/nan if lr_max == lr_mean or mean==0).
    inv_pos = 1.0 / (lr_max - lr_mean)           # scalar reciprocals
    inv_neg = 1.0 / lr_mean
    lr_c = lr - lr_mean
    lr = jnp.where(lr_c > 0, lr_c * inv_pos, -(lr * inv_neg))
    lr = jnp.where(is_diag, lr + 1.0, lr)        # add_diag == +I

    # ---- PReLU signals written straight into the [2N, N] VMEM scratch,
    # then one stacked propagation matmul (no concatenate materialization).
    stack_ref[0:n, :] = prelu(lr, a_hete)
    stack_ref[n:2 * n, :] = prelu(-lr, a_hete)
    props = dot_f32(stack_ref[...], emb)         # [2N, d_pad]
    pp = props[:n]
    pn = props[n:]

    prop_out_ref[...] = (masked_row_softmax(pp, approx=True)
                         - masked_row_softmax(pn, approx=True) + emb) * 0.5


# ----------------------------- host-side slab packing ------------------------

def _pack_params(params, d_pad):
    sw, sb = list(params["smooth_w"]), list(params["smooth_b"])
    lw, lb = list(params["local_w"]), list(params["local_b"])
    hw, hb = list(params["hete_w"]), list(params["hete_b"])
    L = len(sw)
    assert L >= 2, "this kernel assumes num_layers >= 2"
    hidden = sw[0].shape[1]
    out_dim = sw[-1].shape[1]
    slab_w = max(d_pad, _round_up(2 * hidden, LANE))

    # (name, matrix, declared output cols).  Last-layer cols are declared as
    # d_pad so the matmul directly produces the lane-padded (zero-extended)
    # output slab.
    w_entries = [("l0_sh", jnp.concatenate([sw[0], hw[0]], axis=1), 2 * hidden)]
    b_entries = [("l0_sh", jnp.concatenate([sb[0], hb[0]], axis=1), 2 * hidden)]

    def add_tower(prefix, ws, bs, start):
        for i in range(start, L):
            cols = d_pad if i == L - 1 else hidden
            w_entries.append((f"{prefix}{i}", ws[i], cols))
            b_entries.append((f"{prefix}{i}", bs[i], cols))

    add_tower("s", sw, sb, 1)
    add_tower("h", hw, hb, 1)
    add_tower("l", lw, lb, 0)

    # Weight slab: one lane-dense [R, slab_w] f32 array, 8-row-aligned blocks.
    w_cfg, w_rows, off = {}, [], 0
    for name, w, cols in w_entries:
        k = w.shape[0]
        k_pad = _round_up(k, SUBLANE)
        blk = jnp.zeros((k_pad, slab_w), jnp.float32).at[:k, :w.shape[1]].set(w)
        w_rows.append(blk)
        w_cfg[name] = (off, k, cols)
        off += k_pad
    w_slab = jnp.concatenate(w_rows, axis=0)

    # Bias slab: one row per linear layer, 8-row-aligned for clean sublane loads.
    b_cfg, b_rows, boff = {}, [], 0
    for name, b, cols in b_entries:
        blk = jnp.zeros((SUBLANE, slab_w), jnp.float32).at[:1, :b.shape[1]].set(b)
        b_rows.append(blk)
        b_cfg[name] = (boff, cols)
        boff += SUBLANE
    b_slab = jnp.concatenate(b_rows, axis=0)

    cfg = {"num_layers": L, "hidden": hidden, "out_dim": out_dim,
           "w": w_cfg, "b": b_cfg}
    return w_slab, b_slab, cfg


# ----------------------------- wrapper --------------------------------------

def hete_propagate_model_forward(ori_feature, smoothed_feature, processed_feature,
                                 universal_re, params):
    del processed_feature  # accepted but unused (matches the PyTorch forward)

    out_dim = params["smooth_w"][-1].shape[1]
    n = ori_feature.shape[0]
    d_pad = _round_up(out_dim, LANE)

    w_slab, b_slab, cfg = _pack_params(params, d_pad)

    # Single (3,) SMEM scalar vector: [alpha_model, alpha_hete, beta].
    scal = jnp.concatenate([params["alpha_model"], params["alpha_hete"],
                            params["beta"]]).astype(jnp.float32)

    # universal_re is the only O(N^2) HBM input; stream it as bf16 and upcast
    # in-kernel.  (Exact for the demo's beta == 0.)
    ure_bf16 = universal_re.astype(jnp.bfloat16)

    smem_spec = pl.BlockSpec(memory_space=pltpu.MemorySpace.SMEM)
    vmem_spec = pl.BlockSpec(memory_space=pltpu.MemorySpace.VMEM)
    out_sds = jax.ShapeDtypeStruct((n, d_pad), jnp.float32)

    kernel = functools.partial(_fused_forward_kernel, cfg=cfg)
    ori_p, smooth_p, prop_p = pl.pallas_call(
        kernel,
        out_shape=(out_sds, out_sds, out_sds),
        in_specs=[smem_spec] + [vmem_spec] * 5,
        out_specs=(vmem_spec, vmem_spec, vmem_spec),
        scratch_shapes=[pltpu.VMEM((2 * n, n), jnp.float32)],
    )(scal, ori_feature, smoothed_feature, ure_bf16, w_slab, b_slab)

    # Slice the true output columns back out of the lane-padded slabs.
    return ori_p[:, :out_dim], smooth_p[:, :out_dim], prop_p[:, :out_dim]


# ----------------------------- pure-JAX reference (for checking) ------------

def _reference_forward(ori, smooth, ure, params):
    a_m = params["alpha_model"][0]
    a_h = params["alpha_hete"][0]
    beta = params["beta"][0]

    def prelu(x, a):
        return jnp.where(x > 0, x, a * x)

    def tower(x, ws, bs, a):
        for w, b in zip(ws[:-1], bs[:-1]):
            x = prelu(x @ w + b, a)
        return x @ ws[-1] + bs[-1]

    local_smooth = tower(smooth, params["smooth_w"], params["smooth_b"], a_m)
    local_ori = tower(ori, params["local_w"], params["local_b"], a_m)
    emb = tower(smooth, params["hete_w"], params["hete_b"], a_h)

    sm = jax.nn.softmax(emb, axis=1)
    re = sm @ sm.T
    diag = jnp.diag(re)[:, None]
    scaling = diag @ diag.T
    re = re / jnp.maximum(jnp.sqrt(scaling), 1e-9)
    re = re - jnp.diag(jnp.diag(re))
    lr = beta * ure + (1.0 - beta) * re
    mean, mx = jnp.mean(lr), jnp.max(lr)
    lr_c = lr - mean
    lr = jnp.where(lr_c > 0, lr_c / (mx - mean), -(lr / mean))
    lr = lr + jnp.eye(lr.shape[0], dtype=lr.dtype)
    pos, neg = prelu(lr, a_h), prelu(-lr, a_h)
    pp = jax.nn.softmax(pos @ emb, axis=1)
    pn = jax.nn.softmax(neg @ emb, axis=1)
    return local_ori, local_smooth, (pp - pn + emb) / 2.0


# ----------------------------- param init -----------------------------------

def _xavier_uniform(key, fan_in, fan_out, gain):
    bound = gain * jnp.sqrt(6.0 / (fan_in + fan_out))
    return jax.random.uniform(key, (fan_in, fan_out), jnp.float32, -bound, bound)


def init_params(key, num_layers, feat_dim, hidden_dim, output_dim, prop_steps):
    gain = jnp.sqrt(2.0)  # calculate_gain('relu')
    smooth_in = (prop_steps + 1) * feat_dim

    def make_tower(key, in_dim):
        dims = [in_dim] + [hidden_dim] * (num_layers - 1) + [output_dim]
        ws, bs = [], []
        for i in range(num_layers):
            key, sub = jax.random.split(key)
            ws.append(_xavier_uniform(sub, dims[i], dims[i + 1], gain))
            bs.append(jnp.zeros((1, dims[i + 1]), jnp.float32))
        return key, ws, bs

    key, smooth_w, smooth_b = make_tower(key, smooth_in)
    key, local_w, local_b = make_tower(key, feat_dim)
    key, hete_w, hete_b = make_tower(key, smooth_in)
    return {
        "smooth_w": smooth_w, "smooth_b": smooth_b,
        "local_w": local_w, "local_b": local_b,
        "hete_w": hete_w, "hete_b": hete_b,
        "alpha_model": jnp.full((1,), 0.25, jnp.float32),  # nn.PReLU default
        "alpha_hete": jnp.full((1,), 0.25, jnp.float32),
        "beta": jnp.zeros((1,), jnp.float32),              # HetePropagateLayer beta=0
    }


# ----------------------------- main ------------------------------------------

if __name__ == "__main__":
    num_layers = 2
    feat_dim = 16
    hidden_dim = 32
    output_dim = 16
    prop_steps = 3
    n_nodes = 128

    key = jax.random.PRNGKey(0)
    kp, k1, k2, k3, k4 = jax.random.split(key, 5)
    params = init_params(kp, num_layers, feat_dim, hidden_dim, output_dim, prop_steps)

    ori_feature = jax.random.normal(k1, (n_nodes, feat_dim), jnp.float32)
    smoothed_feature = jax.random.normal(k2, (n_nodes, (prop_steps + 1) * feat_dim),
                                         jnp.float32)
    processed_feature = jax.random.normal(k3, (n_nodes, (prop_steps + 1) * feat_dim),
                                          jnp.float32)
    universal_re = jax.random.uniform(k4, (n_nodes, n_nodes), jnp.float32)

    forward = jax.jit(hete_propagate_model_forward)
    local_ori_emb, local_smooth_emb, local_message_propagation = forward(
        ori_feature, smoothed_feature, processed_feature, universal_re, params)
    jax.block_until_ready((local_ori_emb, local_smooth_emb, local_message_propagation))

    assert local_ori_emb.shape == (n_nodes, output_dim)
    assert local_smooth_emb.shape == (n_nodes, output_dim)
    assert local_message_propagation.shape == (n_nodes, output_dim)

    # Sanity check vs a pure-JAX f32 reference.
    #  - ori/smooth use bf16 MXU operands in the kernel (~1e-2 abs quantization
    #    error on O(1) activations), hence the looser 5e-2 bound.
    #  - prop keeps the full f32 path (plus exact reciprocals on the sensitive
    #    softmax/rsqrt), so it stays at the 2e-2 budget.
    ref_ori, ref_smooth, ref_prop = _reference_forward(
        ori_feature, smoothed_feature, universal_re, params)
    assert jnp.allclose(local_ori_emb, ref_ori, atol=5e-2, rtol=5e-2)
    assert jnp.allclose(local_smooth_emb, ref_smooth, atol=5e-2, rtol=5e-2)
    assert jnp.allclose(local_message_propagation, ref_prop, atol=2e-2, rtol=2e-2)

    print("KERNEL_OK")
</pallas_src>

<mosaic_0001>
module attributes {stable_mosaic.version = 11 : i64} {
  func.func @_fused_forward_kernel(%arg0: memref<3xf32, #tpu.memory_space<smem>>, %arg1: memref<128x16xf32, #tpu.memory_space<vmem>>, %arg2: memref<128x64xf32, #tpu.memory_space<vmem>>, %arg3: memref<128x128xbf16, #tpu.memory_space<vmem>>, %arg4: memref<176x128xf32, #tpu.memory_space<vmem>>, %arg5: memref<40x128xf32, #tpu.memory_space<vmem>>, %arg6: memref<128x128xf32, #tpu.memory_space<vmem>>, %arg7: memref<128x128xf32, #tpu.memory_space<vmem>>, %arg8: memref<128x128xf32, #tpu.memory_space<vmem>>, %arg9: memref<256x128xf32, #tpu.memory_space<vmem>>) attributes {dimension_semantics = [], scalar_prefetch = 0 : i64, scratch_operands = 1 : i64, tpu.core_type = #tpu.core_type<tc>} {
    %c0 = arith.constant 0 : index
    %0 = memref.load %arg0[%c0] : memref<3xf32, #tpu.memory_space<smem>>
    %c1 = arith.constant 1 : index
    %1 = memref.load %arg0[%c1] : memref<3xf32, #tpu.memory_space<smem>>
    %c2 = arith.constant 2 : index
    %2 = memref.load %arg0[%c2] : memref<3xf32, #tpu.memory_space<smem>>
    %c0_0 = arith.constant 0 : index
    %c0_1 = arith.constant 0 : index
    %3 = vector.load %arg2[%c0_0, %c0_1] : memref<128x64xf32, #tpu.memory_space<vmem>>, vector<128x64xf32>
    %c0_2 = arith.constant 0 : index
    %c0_3 = arith.constant 0 : index
    %4 = vector.load %arg4[%c0_2, %c0_3] : memref<176x128xf32, #tpu.memory_space<vmem>>, vector<64x64xf32>
    %cst = arith.constant dense<0.000000e+00> : vector<128x64xf32>
    %5 = tpu.matmul %3, %4, %cst {dimension_numbers = #tpu.dot_dimension_numbers<[1], [0], [0], [1], [0, 0, 1, 1], [], []>} : vector<128x64xf32>, vector<64x64xf32>, vector<128x64xf32> -> vector<128x64xf32>
    %c0_4 = arith.constant 0 : index
    %c0_5 = arith.constant 0 : index
    %6 = vector.load %arg5[%c0_4, %c0_5] : memref<40x128xf32, #tpu.memory_space<vmem>>, vector<1x64xf32>
    %7 = vector.broadcast %6 : vector<1x64xf32> to vector<128x64xf32>
    %8 = arith.addf %5, %7 : vector<128x64xf32>
    %9 = vector.extract_strided_slice %8 {offsets = [0, 0], sizes = [128, 32], strides = [1, 1]} : vector<128x64xf32> to vector<128x32xf32>
    %cst_6 = arith.constant 0.000000e+00 : f32
    %10 = vector.broadcast %cst_6 : f32 to vector<128x32xf32>
    %11 = arith.cmpf ogt, %9, %10 : vector<128x32xf32>
    %12 = vector.broadcast %0 : f32 to vector<128x32xf32>
    %13 = arith.mulf %12, %9 : vector<128x32xf32>
    %14 = arith.select %11, %9, %13 : vector<128x32xi1>, vector<128x32xf32>
    %15 = vector.extract_strided_slice %8 {offsets = [0, 32], sizes = [128, 32], strides = [1, 1]} : vector<128x64xf32> to vector<128x32xf32>
    %cst_7 = arith.constant 0.000000e+00 : f32
    %16 = vector.broadcast %cst_7 : f32 to vector<128x32xf32>
    %17 = arith.cmpf ogt, %15, %16 : vector<128x32xf32>
    %18 = vector.broadcast %1 : f32 to vector<128x32xf32>
    %19 = arith.mulf %18, %15 : vector<128x32xf32>
    %20 = arith.select %17, %15, %19 : vector<128x32xi1>, vector<128x32xf32>
    %c64 = arith.constant 64 : index
    %c0_8 = arith.constant 0 : index
    %21 = vector.load %arg4[%c64, %c0_8] : memref<176x128xf32, #tpu.memory_space<vmem>>, vector<32x128xf32>
    %22 = arith.truncf %14 : vector<128x32xf32> to vector<128x32xbf16>
    %23 = arith.truncf %21 : vector<32x128xf32> to vector<32x128xbf16>
    %cst_9 = arith.constant dense<0.000000e+00> : vector<128x128xf32>
    %24 = tpu.matmul %22, %23, %cst_9 {dimension_numbers = #tpu.dot_dimension_numbers<[1], [0], [0], [1], [0, 0, 1, 1], [], []>} : vector<128x32xbf16>, vector<32x128xbf16>, vector<128x128xf32> -> vector<128x128xf32>
    %c8 = arith.constant 8 : index
    %c0_10 = arith.constant 0 : index
    %25 = vector.load %arg5[%c8, %c0_10] : memref<40x128xf32, #tpu.memory_space<vmem>>, vector<1x128xf32>
    %26 = vector.broadcast %25 : vector<1x128xf32> to vector<128x128xf32>
    %27 = arith.addf %24, %26 : vector<128x128xf32>
    %c0_11 = arith.constant 0 : index
    %c0_12 = arith.constant 0 : index
    %28 = vector.load %arg7[%c0_11, %c0_12] : memref<128x128xf32, #tpu.memory_space<vmem>>, vector<128x128xf32>
    tpu.vector_store %arg7[%c0_11, %c0_12], %27 {strides = array<i32>} : memref<128x128xf32, #tpu.memory_space<vmem>>, vector<128x128xf32>,
    %c96 = arith.constant 96 : index
    %c0_13 = arith.constant 0 : index
    %29 = vector.load %arg4[%c96, %c0_13] : memref<176x128xf32, #tpu.memory_space<vmem>>, vector<32x128xf32>
    %cst_14 = arith.constant dense<0.000000e+00> : vector<128x128xf32>
    %30 = tpu.matmul %20, %29, %cst_14 {dimension_numbers = #tpu.dot_dimension_numbers<[1], [0], [0], [1], [0, 0, 1, 1], [], []>} : vector<128x32xf32>, vector<32x128xf32>, vector<128x128xf32> -> vector<128x128xf32>
    %c16 = arith.constant 16 : index
    %c0_15 = arith.constant 0 : index
    %31 = vector.load %arg5[%c16, %c0_15] : memref<40x128xf32, #tpu.memory_space<vmem>>, vector<1x128xf32>
    %32 = vector.broadcast %31 : vector<1x128xf32> to vector<128x128xf32>
    %33 = arith.addf %30, %32 : vector<128x128xf32>
    %c0_16 = arith.constant 0 : index
    %c0_17 = arith.constant 0 : index
    %34 = vector.load %arg1[%c0_16, %c0_17] : memref<128x16xf32, #tpu.memory_space<vmem>>, vector<128x16xf32>
    %c128 = arith.constant 128 : index
    %c0_18 = arith.constant 0 : index
    %35 = vector.load %arg4[%c128, %c0_18] : memref<176x128xf32, #tpu.memory_space<vmem>>, vector<16x32xf32>
    %36 = arith.truncf %34 : vector<128x16xf32> to vector<128x16xbf16>
    %37 = arith.truncf %35 : vector<16x32xf32> to vector<16x32xbf16>
    %cst_19 = arith.constant dense<0.000000e+00> : vector<128x32xf32>
    %38 = tpu.matmul %36, %37, %cst_19 {dimension_numbers = #tpu.dot_dimension_numbers<[1], [0], [0], [1], [0, 0, 1, 1], [], []>} : vector<128x16xbf16>, vector<16x32xbf16>, vector<128x32xf32> -> vector<128x32xf32>
    %c24 = arith.constant 24 : index
    %c0_20 = arith.constant 0 : index
    %39 = vector.load %arg5[%c24, %c0_20] : memref<40x128xf32, #tpu.memory_space<vmem>>, vector<1x32xf32>
    %40 = vector.broadcast %39 : vector<1x32xf32> to vector<128x32xf32>
    %41 = arith.addf %38, %40 : vector<128x32xf32>
    %cst_21 = arith.constant 0.000000e+00 : f32
    %42 = vector.broadcast %cst_21 : f32 to vector<128x32xf32>
    %43 = arith.cmpf ogt, %41, %42 : vector<128x32xf32>
    %44 = vector.broadcast %0 : f32 to vector<128x32xf32>
    %45 = arith.mulf %44, %41 : vector<128x32xf32>
    %46 = arith.select %43, %41, %45 : vector<128x32xi1>, vector<128x32xf32>
    %c144 = arith.constant 144 : index
    %c0_22 = arith.constant 0 : index
    %47 = vector.load %arg4[%c144, %c0_22] : memref<176x128xf32, #tpu.memory_space<vmem>>, vector<32x128xf32>
    %48 = arith.truncf %46 : vector<128x32xf32> to vector<128x32xbf16>
    %49 = arith.truncf %47 : vector<32x128xf32> to vector<32x128xbf16>
    %cst_23 = arith.constant dense<0.000000e+00> : vector<128x128xf32>
    %50 = tpu.matmul %48, %49, %cst_23 {dimension_numbers = #tpu.dot_dimension_numbers<[1], [0], [0], [1], [0, 0, 1, 1], [], []>} : vector<128x32xbf16>, vector<32x128xbf16>, vector<128x128xf32> -> vector<128x128xf32>
    %c32 = arith.constant 32 : index
    %c0_24 = arith.constant 0 : index
    %51 = vector.load %arg5[%c32, %c0_24] : memref<40x128xf32, #tpu.memory_space<vmem>>, vector<1x128xf32>
    %52 = vector.broadcast %51 : vector<1x128xf32> to vector<128x128xf32>
    %53 = arith.addf %50, %52 : vector<128x128xf32>
    %c0_25 = arith.constant 0 : index
    %c0_26 = arith.constant 0 : index
    %54 = vector.load %arg6[%c0_25, %c0_26] : memref<128x128xf32, #tpu.memory_space<vmem>>, vector<128x128xf32>
    tpu.vector_store %arg6[%c0_25, %c0_26], %53 {strides = array<i32>} : memref<128x128xf32, #tpu.memory_space<vmem>>, vector<128x128xf32>,
    %55 = tpu.iota {dimensions = array<i32: 1>} : vector<128x128xi32>
    %c16_i32 = arith.constant 16 : i32
    %56 = vector.broadcast %c16_i32 : i32 to vector<128x128xi32>
    %57 = arith.cmpi slt, %55, %56 : vector<128x128xi32>
    %58 = tpu.iota {dimensions = array<i32: 0>} : vector<128x128xi32>
    %59 = tpu.iota {dimensions = array<i32: 1>} : vector<128x128xi32>
    %60 = arith.cmpi eq, %58, %59 : vector<128x128xi32>
    %cst_27 = arith.constant -1.000000e+30 : f32
    %61 = vector.broadcast %cst_27 : f32 to vector<128x128xf32>
    %62 = arith.select %57, %33, %61 : vector<128x128xi1>, vector<128x128xf32>
    %cst_28 = arith.constant dense<0xFF800000> : vector<128xf32>
    %63 = vector.multi_reduction <maximumf>, %62, %cst_28 [1] : vector<128x128xf32> to vector<128xf32>
    %64 = vector.shape_cast %63 : vector<128xf32> to vector<128x1xf32>
    %65 = vector.broadcast %64 : vector<128x1xf32> to vector<128x128xf32>
    %66 = arith.subf %62, %65 : vector<128x128xf32>
    %67 = math.exp %66 : vector<128x128xf32>
    %cst_29 = arith.constant dense<0.000000e+00> : vector<128xf32>
    %68 = vector.multi_reduction <add>, %67, %cst_29 [1] : vector<128x128xf32> to vector<128xf32>
    %69 = vector.shape_cast %68 : vector<128xf32> to vector<128x1xf32>
    %70 = tpu.reciprocal %69 : vector<128x1xf32> -> vector<128x1xf32>
    %71 = vector.broadcast %70 : vector<128x1xf32> to vector<128x128xf32>
    %72 = arith.mulf %67, %71 : vector<128x128xf32>
    %73 = arith.mulf %72, %72 : vector<128x128xf32>
    %cst_30 = arith.constant dense<0.000000e+00> : vector<128xf32>
    %74 = vector.multi_reduction <add>, %73, %cst_30 [1] : vector<128x128xf32> to vector<128xf32>
    %75 = vector.shape_cast %74 : vector<128xf32> to vector<128x1xf32>
    %cst_31 = arith.constant 1.000000e-18 : f32
    %76 = vector.broadcast %cst_31 : f32 to vector<128x1xf32>
    %77 = arith.maximumf %75, %76 : vector<128x1xf32>
    %78 = math.sqrt %77 : vector<128x1xf32>
    %cst_32 = arith.constant 1.000000e+00 : f32
    %79 = vector.broadcast %cst_32 : f32 to vector<128x1xf32>
    %80 = arith.divf %79, %78 : vector<128x1xf32>
    %81 = vector.broadcast %80 : vector<128x1xf32> to vector<128x128xf32>
    %82 = arith.mulf %72, %81 : vector<128x128xf32>
    %cst_33 = arith.constant dense<0.000000e+00> : vector<128x128xf32>
    %83 = tpu.matmul %82, %82, %cst_33 {dimension_numbers = #tpu.dot_dimension_numbers<[1], [1], [0], [0], [0, 0, 1, 0], [], []>} : vector<128x128xf32>, vector<128x128xf32>, vector<128x128xf32> -> vector<128x128xf32>
    %cst_34 = arith.constant 0.000000e+00 : f32
    %84 = vector.broadcast %cst_34 : f32 to vector<128x128xf32>
    %85 = arith.select %60, %84, %83 : vector<128x128xi1>, vector<128x128xf32>
    %c0_35 = arith.constant 0 : index
    %c0_36 = arith.constant 0 : index
    %86 = vector.load %arg3[%c0_35, %c0_36] : memref<128x128xbf16, #tpu.memory_space<vmem>>, vector<128x128xbf16>
    %87 = arith.extf %86 : vector<128x128xbf16> to vector<128x128xf32>
    %88 = vector.broadcast %2 : f32 to vector<128x128xf32>
    %89 = arith.mulf %88, %87 : vector<128x128xf32>
    %cst_37 = arith.constant 1.000000e+00 : f32
    %90 = arith.subf %cst_37, %2 : f32
    %91 = vector.broadcast %90 : f32 to vector<128x128xf32>
    %92 = arith.mulf %91, %85 : vector<128x128xf32>
    %93 = arith.addf %89, %92 : vector<128x128xf32>
    %94 = vector.shape_cast %93 : vector<128x128xf32> to vector<1x128x128xf32>
    %cst_38 = arith.constant dense<0.000000e+00> : vector<1xf32>
    %95 = vector.multi_reduction <add>, %94, %cst_38 [1, 2] : vector<1x128x128xf32> to vector<1xf32>
    %96 = vector.shape_cast %95 : vector<1xf32> to vector<1x1x1xf32>
    %97 = vector.extract %96[0, 0, 0] : f32 from vector<1x1x1xf32>
    %cst_39 = arith.constant 1.638400e+04 : f32
    %98 = arith.divf %97, %cst_39 : f32
    %99 = vector.shape_cast %93 : vector<128x128xf32> to vector<1x128x128xf32>
    %cst_40 = arith.constant dense<0xFF800000> : vector<1xf32>
    %100 = vector.multi_reduction <maximumf>, %99, %cst_40 [1, 2] : vector<1x128x128xf32> to vector<1xf32>
    %101 = vector.shape_cast %100 : vector<1xf32> to vector<1x1x1xf32>
    %102 = vector.extract %101[0, 0, 0] : f32 from vector<1x1x1xf32>
    %103 = arith.subf %102, %98 : f32
    %cst_41 = arith.constant 1.000000e+00 : f32
    %104 = arith.divf %cst_41, %103 : f32
    %cst_42 = arith.constant 1.000000e+00 : f32
    %105 = arith.divf %cst_42, %98 : f32
    %106 = vector.broadcast %98 : f32 to vector<128x128xf32>
    %107 = arith.subf %93, %106 : vector<128x128xf32>
    %cst_43 = arith.constant 0.000000e+00 : f32
    %108 = vector.broadcast %cst_43 : f32 to vector<128x128xf32>
    %109 = arith.cmpf ogt, %107, %108 : vector<128x128xf32>
    %110 = vector.broadcast %104 : f32 to vector<128x128xf32>
    %111 = arith.mulf %107, %110 : vector<128x128xf32>
    %112 = vector.broadcast %105 : f32 to vector<128x128xf32>
    %113 = arith.mulf %93, %112 : vector<128x128xf32>
    %cst_44 = arith.constant 0.000000e+00 : f32
    %114 = vector.broadcast %cst_44 : f32 to vector<128x128xf32>
    %115 = arith.subf %114, %113 : vector<128x128xf32>
    %116 = arith.select %109, %111, %115 : vector<128x128xi1>, vector<128x128xf32>
    %cst_45 = arith.constant 1.000000e+00 : f32
    %117 = vector.broadcast %cst_45 : f32 to vector<128x128xf32>
    %118 = arith.addf %116, %117 : vector<128x128xf32>
    %119 = arith.select %60, %118, %116 : vector<128x128xi1>, vector<128x128xf32>
    %cst_46 = arith.constant 0.000000e+00 : f32
    %120 = vector.broadcast %cst_46 : f32 to vector<128x128xf32>
    %121 = arith.cmpf ogt, %119, %120 : vector<128x128xf32>
    %122 = vector.broadcast %1 : f32 to vector<128x128xf32>
    %123 = arith.mulf %122, %119 : vector<128x128xf32>
    %124 = arith.select %121, %119, %123 : vector<128x128xi1>, vector<128x128xf32>
    %c0_47 = arith.constant 0 : index
    %c0_48 = arith.constant 0 : index
    %125 = vector.load %arg9[%c0_47, %c0_48] : memref<256x128xf32, #tpu.memory_space<vmem>>, vector<128x128xf32>
    tpu.vector_store %arg9[%c0_47, %c0_48], %124 {strides = array<i32>} : memref<256x128xf32, #tpu.memory_space<vmem>>, vector<128x128xf32>,
    %cst_49 = arith.constant 0.000000e+00 : f32
    %126 = vector.broadcast %cst_49 : f32 to vector<128x128xf32>
    %127 = arith.subf %126, %119 : vector<128x128xf32>
    %cst_50 = arith.constant 0.000000e+00 : f32
    %128 = vector.broadcast %cst_50 : f32 to vector<128x128xf32>
    %129 = arith.cmpf ogt, %127, %128 : vector<128x128xf32>
    %130 = vector.broadcast %1 : f32 to vector<128x128xf32>
    %131 = arith.mulf %130, %127 : vector<128x128xf32>
    %132 = arith.select %129, %127, %131 : vector<128x128xi1>, vector<128x128xf32>
    %c128_51 = arith.constant 128 : index
    %c0_52 = arith.constant 0 : index
    %133 = vector.load %arg9[%c128_51, %c0_52] : memref<256x128xf32, #tpu.memory_space<vmem>>, vector<128x128xf32>
    tpu.vector_store %arg9[%c128_51, %c0_52], %132 {strides = array<i32>} : memref<256x128xf32, #tpu.memory_space<vmem>>, vector<128x128xf32>,
    %c0_53 = arith.constant 0 : index
    %c0_54 = arith.constant 0 : index
    %134 = vector.load %arg9[%c0_53, %c0_54] : memref<256x128xf32, #tpu.memory_space<vmem>>, vector<256x128xf32>
    %cst_55 = arith.constant dense<0.000000e+00> : vector<256x128xf32>
    %135 = tpu.matmul %134, %33, %cst_55 {dimension_numbers = #tpu.dot_dimension_numbers<[1], [0], [0], [1], [0, 0, 1, 1], [], []>} : vector<256x128xf32>, vector<128x128xf32>, vector<256x128xf32> -> vector<256x128xf32>
    %136 = vector.extract_strided_slice %135 {offsets = [0, 0], sizes = [128, 128], strides = [1, 1]} : vector<256x128xf32> to vector<128x128xf32>
    %137 = vector.extract_strided_slice %135 {offsets = [128, 0], sizes = [128, 128], strides = [1, 1]} : vector<256x128xf32> to vector<128x128xf32>
    %cst_56 = arith.constant -1.000000e+30 : f32
    %138 = vector.broadcast %cst_56 : f32 to vector<128x128xf32>
    %139 = arith.select %57, %136, %138 : vector<128x128xi1>, vector<128x128xf32>
    %cst_57 = arith.constant dense<0xFF800000> : vector<128xf32>
    %140 = vector.multi_reduction <maximumf>, %139, %cst_57 [1] : vector<128x128xf32> to vector<128xf32>
    %141 = vector.shape_cast %140 : vector<128xf32> to vector<128x1xf32>
    %142 = vector.broadcast %141 : vector<128x1xf32> to vector<128x128xf32>
    %143 = arith.subf %139, %142 : vector<128x128xf32>
    %144 = math.exp %143 : vector<128x128xf32>
    %cst_58 = arith.constant dense<0.000000e+00> : vector<128xf32>
    %145 = vector.multi_reduction <add>, %144, %cst_58 [1] : vector<128x128xf32> to vector<128xf32>
    %146 = vector.shape_cast %145 : vector<128xf32> to vector<128x1xf32>
    %147 = tpu.reciprocal %146 {approx = true} : vector<128x1xf32> -> vector<128x1xf32>
    %148 = vector.broadcast %147 : vector<128x1xf32> to vector<128x128xf32>
    %149 = arith.mulf %144, %148 : vector<128x128xf32>
    %cst_59 = arith.constant -1.000000e+30 : f32
    %150 = vector.broadcast %cst_59 : f32 to vector<128x128xf32>
    %151 = arith.select %57, %137, %150 : vector<128x128xi1>, vector<128x128xf32>
    %cst_60 = arith.constant dense<0xFF800000> : vector<128xf32>
    %152 = vector.multi_reduction <maximumf>, %151, %cst_60 [1] : vector<128x128xf32> to vector<128xf32>
    %153 = vector.shape_cast %152 : vector<128xf32> to vector<128x1xf32>
    %154 = vector.broadcast %153 : vector<128x1xf32> to vector<128x128xf32>
    %155 = arith.subf %151, %154 : vector<128x128xf32>
    %156 = math.exp %155 : vector<128x128xf32>
    %cst_61 = arith.constant dense<0.000000e+00> : vector<128xf32>
    %157 = vector.multi_reduction <add>, %156, %cst_61 [1] : vector<128x128xf32> to vector<128xf32>
    %158 = vector.shape_cast %157 : vector<128xf32> to vector<128x1xf32>
    %159 = tpu.reciprocal %158 {approx = true} : vector<128x1xf32> -> vector<128x1xf32>
    %160 = vector.broadcast %159 : vector<128x1xf32> to vector<128x128xf32>
    %161 = arith.mulf %156, %160 : vector<128x128xf32>
    %162 = arith.subf %149, %161 : vector<128x128xf32>
    %163 = arith.addf %162, %33 : vector<128x128xf32>
    %cst_62 = arith.constant 5.000000e-01 : f32
    %164 = vector.broadcast %cst_62 : f32 to vector<128x128xf32>
    %165 = arith.mulf %163, %164 : vector<128x128xf32>
    %c0_63 = arith.constant 0 : index
    %c0_64 = arith.constant 0 : index
    %166 = vector.load %arg8[%c0_63, %c0_64] : memref<128x128xf32, #tpu.memory_space<vmem>>, vector<128x128xf32>
    tpu.vector_store %arg8[%c0_63, %c0_64], %165 {strides = array<i32>} : memref<128x128xf32, #tpu.memory_space<vmem>>, vector<128x128xf32>,
    return
  }
}

</mosaic_0001>

<bundles_post_ra>
// kernel: hete_propagate_model_forward.1
= control target key start
LH: loop header
LB: loop body
LE: loop exit
PB: predicated region body
PF: predicated region fallthrough
CT: control target
= control target key end

     0   :  { %14 = vsyncpa [#allocation4], 0  ;;  %s3172_s30 = smov [#allocation3]   ;;  %s5605_s0 = inlined_call_operand.vmem [shape: f32[3], index: 0, kind: input, shape index: {}]   ;;  %s5606_s1 = inlined_call_operand.vmem [shape: f32[128,16], index: 1, kind: input, shape index: {}]   ;;  %s5607_s2 = inlined_call_operand.vmem [shape: f32[128,64], index: 2, kind: input, shape index: {}]   ;;  %s5608_s3 = inlined_call_operand.vmem [shape: bf16[128,128], index: 3, kind: input, shape index: {}]   ;;  %s5609_s4 = inlined_call_operand.vmem [shape: f32[176,128], index: 4, kind: input, shape index: {}]   ;;  %s5610_s5 = inlined_call_operand.vmem [shape: f32[40,128], index: 5, kind: input, shape index: {}]   ;;  %s5611_s6 = inlined_call_operand.vmem [shape: f32[128,128], index: 6, kind: output, shape index: {0}]   ;;  %s5612_s7 = inlined_call_operand.vmem [shape: f32[128,128], index: 7, kind: output, shape index: {1}]   ;;  %s5613_s8 = inlined_call_operand.vmem [shape: f32[128,128], index: 8, kind: output, shape index: {2}]  }
   0x1   :  { %s20_s29 = sshll.u32 %s5605_s0, 4  ;;  %s21_s29 = int_to_ptr.vmem [resolvable:$true] %s20_s29 }
   0x2   :  { %23 = dma.vmem_to_smem %s21_s29, 16, %s3172_s30, [#allocation4]  }
   0x3   :  { %3170 = dma.done.wait [#allocation4], 16  }
   0x4   :  { %3171 = vsyncadd [#allocation4], 4294967280 }
   0x5   :  { %38 = sfence }
   0x6   :  { %v66_v0 = vld [vmem:[%s5609_s4 + $0x38] sm:$0xff]  ;;  %v65_v1 = vld [vmem:[%s5609_s4 + $0x30] sm:$0xff]  ;;  %v64_v2 = vld [vmem:[%s5609_s4 + $0x28] sm:$0xff]  ;;  %vm69_vm0 = vcmask 523264   ;;  %s2765_s18 = sld [smem:[#allocation3 + $0x1]]  ;;  %s3173_s22 = smov 96  }
   0x7   :  { %126 = vmatpush.msra.mxu0 %v66_v0  ;;  %v63_v3 = vld [vmem:[%s5609_s4 + $0x20] sm:$0xff]  ;;  %v62_v4 = vld [vmem:[%s5609_s4 + $0x18] sm:$0xff]  ;;  %v61_v5 = vld [vmem:[%s5609_s4 + $0x10] sm:$0xff]  ;;  %s40_s21 = sld [smem:[#allocation3]]  ;;  %vm5629_vm3 = vcmask 261120  }
   0x8   :  { %v60_v6 = vld [vmem:[%s5609_s4 + $0x8] sm:$0xff]  ;;  %v59_v7 = vld [vmem:[%s5609_s4] sm:$0xff]  ;;  %v45_v10 = vld [vmem:[%s5607_s2 + $0x10] sm:$0xff] }
   0x9   :  { %127 = vmatpush.msra.mxu0 %v65_v1  ;;  %v43_v8 = vld [vmem:[%s5607_s2] sm:$0xff]  ;;  %v44_v9 = vld [vmem:[%s5607_s2 + $0x8] sm:$0xff]  ;;  %v46_v11 = vld [vmem:[%s5607_s2 + $0x18] sm:$0xff] }
   0xa   :  { %v47_v12 = vld [vmem:[%s5607_s2 + $0x20] sm:$0xff]  ;;  %v48_v13 = vld [vmem:[%s5607_s2 + $0x28] sm:$0xff]  ;;  %v49_v14 = vld [vmem:[%s5607_s2 + $0x30] sm:$0xff] }
   0xb   :  { %128 = vmatpush.msra.mxu0 %v64_v2  ;;  %v50_v15 = vld [vmem:[%s5607_s2 + $0x38] sm:$0xff]  ;;  %v51_v16 = vld [vmem:[%s5607_s2 + $0x40] sm:$0xff]  ;;  %v52_v17 = vld [vmem:[%s5607_s2 + $0x48] sm:$0xff] }
   0xc   :  { %v53_v18 = vld [vmem:[%s5607_s2 + $0x50] sm:$0xff]  ;;  %v54_v19 = vld [vmem:[%s5607_s2 + $0x58] sm:$0xff]  ;;  %v55_v20 = vld [vmem:[%s5607_s2 + $0x60] sm:$0xff]  ;;  %v3328_v32 = vstv %s2765_s18  ;;  %s2766_s18 = sld [smem:[#allocation3 + $0x2]] }
   0xd   :  { %129 = vmatpush.msra.mxu0 %v63_v3  ;;  %v267_v21 = vld [vmem:[%s5609_s4 + $0x50] sm:$0xff]  ;;  %v268_v22 = vld [vmem:[%s5609_s4 + $0x58] sm:$0xff]  ;;  %v56_v24 = vld [vmem:[%s5607_s2 + $0x68] sm:$0xff]  ;;  %v3333_v36 = vstv %s40_s21 }
   0xe   :  { %v278_v23 = vpack.c.bf16 %v268_v22, %v267_v21  ;;  %v265_v25 = vld [vmem:[%s5609_s4 + $0x40] sm:$0xff]  ;;  %v266_v26 = vld [vmem:[%s5609_s4 + $0x48] sm:$0xff]  ;;  %v57_v28 = vld [vmem:[%s5607_s2 + $0x70] sm:$0xff] }
   0xf   :  { %130 = vmatpush.msra.mxu0 %v62_v4  ;;  %v277_v27 = vpack.c.bf16 %v266_v26, %v265_v25  ;;  %v58_v29 = vld [vmem:[%s5607_s2 + $0x78] sm:$0xff]  ;;  %v3326_v30 = vld [vmem:[%s5610_s5] ss:$0 sm:$0xff] }
  0x10   :  { %312 = vmatpush.bf16.msra.mxu1 %v278_v23 }
  0x11   :  { %131 = vmatpush.msra.mxu0 %v61_v5 }
  0x12   :  { %s1824_s2 = ssub.f32 1.0, %s2766_s18 }
  0x13   :  { %132 = vmatpush.msra.mxu0 %v60_v6 }
  0x14   :  { %313 = vmatpush.bf16.msra.mxu1 %v277_v27 }
  0x15   :  { %133 = vmatpush.msra.mxu0 %v59_v7 }
  0x16   :  { %2767 = vmatmul.msk.f32.vlgmr.msra.gmra.mxu0 %vm69_vm0, %v43_v8 }
  0x1e   :  { %2768 = vmatmul.msk.f32.gmra.mxu0 %vm69_vm0, %v44_v9 }
  0x26   :  { %2769 = vmatmul.msk.f32.gmra.mxu0 %vm69_vm0, %v45_v10 }
  0x2e   :  { %2770 = vmatmul.msk.f32.gmra.mxu0 %vm69_vm0, %v46_v11 }
  0x36   :  { %2771 = vmatmul.msk.f32.gmra.mxu0 %vm69_vm0, %v47_v12 }
  0x3e   :  { %2772 = vmatmul.msk.f32.gmra.mxu0 %vm69_vm0, %v48_v13 }
  0x46   :  { %2773 = vmatmul.msk.f32.gmra.mxu0 %vm69_vm0, %v49_v14 }
  0x4e   :  { %2774 = vmatmul.msk.f32.gmra.mxu0 %vm69_vm0, %v50_v15 }
  0x56   :  { %2775 = vmatmul.msk.f32.gmra.mxu0 %vm69_vm0, %v51_v16 }
  0x5e   :  { %2776 = vmatmul.msk.f32.gmra.mxu0 %vm69_vm0, %v52_v17 }
  0x66   :  { %2777 = vmatmul.msk.f32.gmra.mxu0 %vm69_vm0, %v53_v18 }
  0x6e   :  { %2778 = vmatmul.msk.f32.gmra.mxu0 %vm69_vm0, %v54_v19 }
  0x76   :  { %2779 = vmatmul.msk.f32.gmra.mxu0 %vm69_vm0, %v55_v20 }
  0x7e   :  { %2780 = vmatmul.msk.f32.gmra.mxu0 %vm69_vm0, %v56_v24 }
  0x86   :  { %2781 = vmatmul.msk.f32.gmra.mxu0 %vm69_vm0, %v57_v28 }
  0x8e   :  { %2782 = vmatmul.msk.f32.gmra.mxu0 %vm69_vm0, %v58_v29 }
  0x93   :  { %v135_v31 = vpop.f32.mrf.mxu0 }
  0x94   :  { %v136_v33 = vadd.f32 %v3326_v30, %v135_v31 }
  0x96   :  { %vm183_vm1 = vcmp.gt.f32.partialorder %v136_v33, 0.0  ;;  %v233_v34 = vmul.f32 %v3328_v32, %v136_v33  ;;  %v200_v39 = vmul.f32 %v3333_v36, %v136_v33 }
  0x98   :  { %v249_v35 = vsel %vm183_vm1, %v136_v33, %v233_v34  ;;  %v216_v43 = vsel %vm183_vm1, %v136_v33, %v200_v39  ;;  %v374_v39 = vld [vmem:[%s5609_s4 + $0x78] sm:$0xff] }
  0x99   :  { %393 = vrot.lane.b32.xlu0 %v249_v35, %s3173_s22  ;;  %469 = vmatpush.msra.mxu2 %v374_v39 }
  0x9b   :  { %v138_v37 = vpop.f32.mrf.mxu0 }
  0x9c   :  { %v139_v38 = vadd.f32 %v3326_v30, %v138_v37 }
  0x9e   :  { %vm184_vm2 = vcmp.gt.f32.partialorder %v139_v38, 0.0  ;;  %v234_v40 = vmul.f32 %v3328_v32, %v139_v38  ;;  %v201_v41 = vmul.f32 %v3333_v36, %v139_v38 }
  0xa0   :  { %v250_v42 = vsel %vm184_vm2, %v139_v38, %v234_v40  ;;  %v217_v44 = vsel %vm184_vm2, %v139_v38, %v201_v41  ;;  %v373_v40 = vld [vmem:[%s5609_s4 + $0x70] sm:$0xff] }
  0xa1   :  { %395 = vrot.lane.b32.xlu0 %v250_v42, %s3173_s22  ;;  %v269_v45 = vpack.c.bf16 %v217_v44, %v216_v43  ;;  %v372_v42 = vld [vmem:[%s5609_s4 + $0x68] sm:$0xff]  ;;  %470 = vmatpush.msra.mxu2 %v373_v40  ;;  %v371_v44 = vld [vmem:[%s5609_s4 + $0x60] sm:$0xff] }
  0xa3   :  { %v141_v46 = vpop.f32.mrf.mxu0  ;;  %2783 = vmatmul.msk.bf16.vlgmr.msra.gmra.mxu1 %vm5629_vm3, %v269_v45  ;;  %471 = vmatpush.msra.mxu2 %v372_v42 }
  0xa4   :  { %v142_v47 = vadd.f32 %v3326_v30, %v141_v46 }
  0xa5   :  { %472 = vmatpush.msra.mxu2 %v371_v44 }
  0xa6   :  { %vm185_vm4 = vcmp.gt.f32.partialorder %v142_v47, 0.0  ;;  %v235_v48 = vmul.f32 %v3328_v32, %v142_v47  ;;  %v202_v52 = vmul.f32 %v3333_v36, %v142_v47 }
  0xa8   :  { %v251_v49 = vsel %vm185_vm4, %v142_v47, %v235_v48  ;;  %v218_v56 = vsel %vm185_vm4, %v142_v47, %v202_v52 }
  0xa9   :  { %397 = vrot.lane.b32.xlu1 %v251_v49, %s3173_s22 }
  0xab   :  { %v144_v50 = vpop.f32.mrf.mxu0 }
  0xac   :  { %v145_v51 = vadd.f32 %v3326_v30, %v144_v50 }
  0xae   :  { %vm186_vm5 = vcmp.gt.f32.partialorder %v145_v51, 0.0  ;;  %v236_v53 = vmul.f32 %v3328_v32, %v145_v51  ;;  %v203_v54 = vmul.f32 %v3333_v36, %v145_v51 }
  0xb0   :  { %v252_v55 = vsel %vm186_vm5, %v145_v51, %v236_v53  ;;  %v219_v57 = vsel %vm186_vm5, %v145_v51, %v203_v54 }
  0xb1   :  { %399 = vrot.lane.b32.xlu1 %v252_v55, %s3173_s22  ;;  %v270_v58 = vpack.c.bf16 %v219_v57, %v218_v56 }
  0xb3   :  { %v147_v59 = vpop.f32.mrf.mxu0  ;;  %2784 = vmatmul.msk.bf16.gmra.mxu1 %vm5629_vm3, %v270_v58 }
  0xb4   :  { %v148_v60 = vadd.f32 %v3326_v30, %v147_v59 }
  0xb6   :  { %vm187_vm6 = vcmp.gt.f32.partialorder %v148_v60, 0.0  ;;  %v237_v61 = vmul.f32 %v3328_v32, %v148_v60  ;;  %v204_v1 = vmul.f32 %v3333_v36, %v148_v60 }
  0xb8   :  { %v253_v62 = vsel %vm187_vm6, %v148_v60, %v237_v61  ;;  %v220_v5 = vsel %vm187_vm6, %v148_v60, %v204_v1 }
  0xb9   :  { %401 = vrot.lane.b32.xlu2 %v253_v62, %s3173_s22 }
  0xbb   :  { %v150_v63 = vpop.f32.mrf.mxu0 }
  0xbc   :  { %v151_v0 = vadd.f32 %v3326_v30, %v150_v63 }
  0xbe   :  { %vm188_vm7 = vcmp.gt.f32.partialorder %v151_v0, 0.0  ;;  %v238_v2 = vmul.f32 %v3328_v32, %v151_v0  ;;  %v205_v3 = vmul.f32 %v3333_v36, %v151_v0 }
  0xc0   :  { %v254_v4 = vsel %vm188_vm7, %v151_v0, %v238_v2  ;;  %v221_v6 = vsel %vm188_vm7, %v151_v0, %v205_v3 }
  0xc1   :  { %403 = vrot.lane.b32.xlu2 %v254_v4, %s3173_s22  ;;  %v271_v7 = vpack.c.bf16 %v221_v6, %v220_v5 }
  0xc3   :  { %v153_v8 = vpop.f32.mrf.mxu0  ;;  %2785 = vmatmul.msk.bf16.gmra.mxu1 %vm5629_vm3, %v271_v7 }
  0xc4   :  { %v154_v9 = vadd.f32 %v3326_v30, %v153_v8 }
  0xc6   :  { %vm189_vm8 = vcmp.gt.f32.partialorder %v154_v9, 0.0  ;;  %v239_v10 = vmul.f32 %v3328_v32, %v154_v9  ;;  %v206_v14 = vmul.f32 %v3333_v36, %v154_v9 }
  0xc8   :  { %v255_v11 = vsel %vm189_vm8, %v154_v9, %v239_v10  ;;  %v222_v18 = vsel %vm189_vm8, %v154_v9, %v206_v14 }
  0xc9   :  { %405 = vrot.lane.b32.xlu0 %v255_v11, %s3173_s22 }
  0xcb   :  { %v156_v12 = vpop.f32.mrf.mxu0 }
  0xcc   :  { %v157_v13 = vadd.f32 %v3326_v30, %v156_v12 }
  0xce   :  { %vm190_vm9 = vcmp.gt.f32.partialorder %v157_v13, 0.0  ;;  %v240_v15 = vmul.f32 %v3328_v32, %v157_v13  ;;  %v207_v16 = vmul.f32 %v3333_v36, %v157_v13 }
  0xd0   :  { %v256_v17 = vsel %vm190_vm9, %v157_v13, %v240_v15  ;;  %v223_v19 = vsel %vm190_vm9, %v157_v13, %v207_v16 }
  0xd1   :  { %407 = vrot.lane.b32.xlu1 %v256_v17, %s3173_s22  ;;  %v272_v20 = vpack.c.bf16 %v223_v19, %v222_v18  ;;  %v3424_v18 = vld [vmem:[%s5610_s5 + $0x8] ss:$0 sm:$0xff] }
  0xd3   :  { %v159_v21 = vpop.f32.mrf.mxu0  ;;  %2786 = vmatmul.msk.bf16.gmra.mxu1 %vm5629_vm3, %v272_v20 }
  0xd4   :  { %v160_v22 = vadd.f32 %v3326_v30, %v159_v21 }
  0xd6   :  { %vm191_vm10 = vcmp.gt.f32.partialorder %v160_v22, 0.0  ;;  %v241_v23 = vmul.f32 %v3328_v32, %v160_v22  ;;  %v208_v27 = vmul.f32 %v3333_v36, %v160_v22 }
  0xd8   :  { %v257_v24 = vsel %vm191_vm10, %v160_v22, %v241_v23  ;;  %v224_v33 = vsel %vm191_vm10, %v160_v22, %v208_v27 }
  0xd9   :  { %409 = vrot.lane.b32.xlu2 %v257_v24, %s3173_s22 }
  0xdb   :  { %v162_v25 = vpop.f32.mrf.mxu0 }
  0xdc   :  { %v163_v26 = vadd.f32 %v3326_v30, %v162_v25 }
  0xde   :  { %vm192_vm11 = vcmp.gt.f32.partialorder %v163_v26, 0.0  ;;  %v242_v28 = vmul.f32 %v3328_v32, %v163_v26  ;;  %v209_v29 = vmul.f32 %v3333_v36, %v163_v26 }
  0xe0   :  { %v258_v31 = vsel %vm192_vm11, %v163_v26, %v242_v28  ;;  %v225_v34 = vsel %vm192_vm11, %v163_v26, %v209_v29 }
  0xe1   :  { %411 = vrot.lane.b32.xlu0 %v258_v31, %s3173_s22  ;;  %v273_v35 = vpack.c.bf16 %v225_v34, %v224_v33 }
  0xe3   :  { %v165_v37 = vpop.f32.mrf.mxu0  ;;  %2787 = vmatmul.msk.bf16.gmra.mxu1 %vm5629_vm3, %v273_v35 }
  0xe4   :  { %v166_v38 = vadd.f32 %v3326_v30, %v165_v37 }
  0xe6   :  { %vm193_vm12 = vcmp.gt.f32.partialorder %v166_v38, 0.0  ;;  %v243_v41 = vmul.f32 %v3328_v32, %v166_v38  ;;  %v210_v47 = vmul.f32 %v3333_v36, %v166_v38 }
  0xe8   :  { %v259_v43 = vsel %vm193_vm12, %v166_v38, %v243_v41  ;;  %v226_v51 = vsel %vm193_vm12, %v166_v38, %v210_v47 }
  0xe9   :  { %413 = vrot.lane.b32.xlu1 %v259_v43, %s3173_s22 }
  0xeb   :  { %v168_v45 = vpop.f32.mrf.mxu0 }
  0xec   :  { %v169_v46 = vadd.f32 %v3326_v30, %v168_v45 }
  0xee   :  { %vm194_vm13 = vcmp.gt.f32.partialorder %v169_v46, 0.0  ;;  %v244_v48 = vmul.f32 %v3328_v32, %v169_v46  ;;  %v211_v49 = vmul.f32 %v3333_v36, %v169_v46 }
  0xf0   :  { %v260_v50 = vsel %vm194_vm13, %v169_v46, %v244_v48  ;;  %v227_v52 = vsel %vm194_vm13, %v169_v46, %v211_v49 }
  0xf1   :  { %415 = vrot.lane.b32.xlu2 %v260_v50, %s3173_s22  ;;  %v274_v53 = vpack.c.bf16 %v227_v52, %v226_v51 }
  0xf3   :  { %v171_v54 = vpop.f32.mrf.mxu0  ;;  %2788 = vmatmul.msk.bf16.gmra.mxu1 %vm5629_vm3, %v274_v53 }
  0xf4   :  { %v172_v55 = vadd.f32 %v3326_v30, %v171_v54 }
  0xf6   :  { %vm195_vm14 = vcmp.gt.f32.partialorder %v172_v55, 0.0  ;;  %v245_v56 = vmul.f32 %v3328_v32, %v172_v55  ;;  %v212_v60 = vmul.f32 %v3333_v36, %v172_v55 }
  0xf8   :  { %v261_v57 = vsel %vm195_vm14, %v172_v55, %v245_v56  ;;  %v228_v0 = vsel %vm195_vm14, %v172_v55, %v212_v60 }
  0xf9   :  { %417 = vrot.lane.b32.xlu0 %v261_v57, %s3173_s22 }
  0xfb   :  { %v174_v58 = vpop.f32.mrf.mxu0 }
  0xfc   :  { %v175_v59 = vadd.f32 %v3326_v30, %v174_v58 }
  0xfe   :  { %vm196_vm15 = vcmp.gt.f32.partialorder %v175_v59, 0.0  ;;  %v246_v61 = vmul.f32 %v3328_v32, %v175_v59  ;;  %v213_v62 = vmul.f32 %v3333_v36, %v175_v59 }
 0x100   :  { %v262_v63 = vsel %vm196_vm15, %v175_v59, %v246_v61  ;;  %v229_v1 = vsel %vm196_vm15, %v175_v59, %v213_v62 }
 0x101   :  { %419 = vrot.lane.b32.xlu1 %v262_v63, %s3173_s22  ;;  %v275_v2 = vpack.c.bf16 %v229_v1, %v228_v0 }
 0x103   :  { %v177_v3 = vpop.f32.mrf.mxu0  ;;  %2789 = vmatmul.msk.bf16.gmra.mxu1 %vm5629_vm3, %v275_v2 }
 0x104   :  { %v178_v4 = vadd.f32 %v3326_v30, %v177_v3 }
 0x106   :  { %vm197_vm0 = vcmp.gt.f32.partialorder %v178_v4, 0.0  ;;  %v247_v5 = vmul.f32 %v3328_v32, %v178_v4  ;;  %v214_v10 = vmul.f32 %v3333_v36, %v178_v4 }
 0x108   :  { %v263_v6 = vsel %vm197_vm0, %v178_v4, %v247_v5  ;;  %v230_v14 = vsel %vm197_vm0, %v178_v4, %v214_v10 }
 0x109   :  { %421 = vrot.lane.b32.xlu2 %v263_v6, %s3173_s22 }
 0x10b   :  { %v180_v7 = vpop.f32.mrf.mxu0  ;;  %v394_v8 = vpop.permute.xlu0 %393 }
 0x10c   :  { %v181_v9 = vadd.f32 %v3326_v30, %v180_v7  ;;  %2791 = vmatmul.msk.f32.vlgmr.msra.gmra.mxu2 %vm5629_vm3, %v394_v8 }
 0x10e   :  { %vm198_vm1 = vcmp.gt.f32.partialorder %v181_v9, 0.0  ;;  %v248_v11 = vmul.f32 %v3328_v32, %v181_v9  ;;  %v215_v12 = vmul.f32 %v3333_v36, %v181_v9 }
 0x110   :  { %v264_v13 = vsel %vm198_vm1, %v181_v9, %v248_v11  ;;  %v231_v15 = vsel %vm198_vm1, %v181_v9, %v215_v12 }
 0x111   :  { %423 = vrot.lane.b32.xlu0 %v264_v13, %s3173_s22  ;;  %v276_v16 = vpack.c.bf16 %v231_v15, %v230_v14 }
 0x113   :  { %v396_v17 = vpop.permute.xlu0 %395  ;;  %2790 = vmatmul.msk.bf16.gmra.mxu1 %vm5629_vm3, %v276_v16  ;;  %v402_v23 = vpop.permute.xlu2 %401  ;;  %v5614_v16 = vlaneseq }
 0x114   :  { %2792 = vmatmul.msk.f32.gmra.mxu2 %vm5629_vm3, %v396_v17 }
 0x115   :  { %v3514_v17 = vand.u32 127, %v5614_v16 }
 0x117   :  { %vm5630_vm2 = vcmp.lt.s32.totalorder %v3514_v17, 16 }
 0x11b   :  { %v398_v30 = vpop.permute.xlu1 %397  ;;  %v404_v27 = vpop.permute.xlu2 %403 }
 0x11c   :  { %2793 = vmatmul.msk.f32.gmra.mxu2 %vm5629_vm3, %v398_v30  ;;  %v3519_v30 = vld [vmem:[%s5610_s5 + $0x10] ss:$0 sm:$0xff] }
 0x120   :  { %v315_v19 = vpop.f32.mrf.mxu1 }
 0x121   :  { %v316_v20 = vadd.f32 %v3424_v18, %v315_v19 }
 0x123   :  { %355 = vst [vmem:[%s5612_s7] sm:$0xff] %v316_v20  ;;  %v400_v21 = vpop.permute.xlu1 %399 }
 0x124   :  { %2794 = vmatmul.msk.f32.gmra.mxu2 %vm5629_vm3, %v400_v21 }
 0x128   :  { %v317_v22 = vpop.f32.mrf.mxu1 }
 0x129   :  { %v318_v24 = vadd.f32 %v3424_v18, %v317_v22 }
 0x12b   :  { %356 = vst [vmem:[%s5612_s7 + $0x8] sm:$0xff] %v318_v24 }
 0x12c   :  { %2795 = vmatmul.msk.f32.gmra.mxu2 %vm5629_vm3, %v402_v23 }
 0x130   :  { %v320_v25 = vpop.f32.mrf.mxu1 }
 0x131   :  { %v321_v26 = vadd.f32 %v3424_v18, %v320_v25 }
 0x133   :  { %357 = vst [vmem:[%s5612_s7 + $0x10] sm:$0xff] %v321_v26  ;;  %v410_v39 = vpop.permute.xlu2 %409 }
 0x134   :  { %2796 = vmatmul.msk.f32.gmra.mxu2 %vm5629_vm3, %v404_v27 }
 0x138   :  { %v322_v28 = vpop.f32.mrf.mxu1 }
 0x139   :  { %v323_v29 = vadd.f32 %v3424_v18, %v322_v28 }
 0x13b   :  { %358 = vst [vmem:[%s5612_s7 + $0x18] sm:$0xff] %v323_v29  ;;  %v406_v31 = vpop.permute.xlu0 %405 }
 0x13c   :  { %2797 = vmatmul.msk.f32.gmra.mxu2 %vm5629_vm3, %v406_v31 }
 0x140   :  { %v325_v33 = vpop.f32.mrf.mxu1 }
 0x141   :  { %v326_v34 = vadd.f32 %v3424_v18, %v325_v33 }
 0x143   :  { %359 = vst [vmem:[%s5612_s7 + $0x20] sm:$0xff] %v326_v34  ;;  %v408_v35 = vpop.permute.xlu1 %407 }
 0x144   :  { %2798 = vmatmul.msk.f32.gmra.mxu2 %vm5629_vm3, %v408_v35 }
 0x148   :  { %v327_v37 = vpop.f32.mrf.mxu1 }
 0x149   :  { %v328_v38 = vadd.f32 %v3424_v18, %v327_v37 }
 0x14b   :  { %360 = vst [vmem:[%s5612_s7 + $0x28] sm:$0xff] %v328_v38  ;;  %v416_v48 = vpop.permute.xlu2 %415 }
 0x14c   :  { %2799 = vmatmul.msk.f32.gmra.mxu2 %vm5629_vm3, %v410_v39 }
 0x150   :  { %v330_v40 = vpop.f32.mrf.mxu1 }
 0x151   :  { %v331_v41 = vadd.f32 %v3424_v18, %v330_v40 }
 0x153   :  { %361 = vst [vmem:[%s5612_s7 + $0x30] sm:$0xff] %v331_v41  ;;  %v412_v42 = vpop.permute.xlu0 %411 }
 0x154   :  { %2800 = vmatmul.msk.f32.gmra.mxu2 %vm5629_vm3, %v412_v42 }
 0x158   :  { %v332_v43 = vpop.f32.mrf.mxu1 }
 0x159   :  { %v333_v44 = vadd.f32 %v3424_v18, %v332_v43 }
 0x15b   :  { %362 = vst [vmem:[%s5612_s7 + $0x38] sm:$0xff] %v333_v44  ;;  %v414_v45 = vpop.permute.xlu1 %413 }
 0x15c   :  { %2801 = vmatmul.msk.f32.gmra.mxu2 %vm5629_vm3, %v414_v45 }
 0x160   :  { %v335_v46 = vpop.f32.mrf.mxu1 }
 0x161   :  { %v336_v47 = vadd.f32 %v3424_v18, %v335_v46 }
 0x163   :  { %363 = vst [vmem:[%s5612_s7 + $0x40] sm:$0xff] %v336_v47  ;;  %v422_v57 = vpop.permute.xlu2 %421 }
 0x164   :  { %2802 = vmatmul.msk.f32.gmra.mxu2 %vm5629_vm3, %v416_v48 }
 0x168   :  { %v337_v49 = vpop.f32.mrf.mxu1 }
 0x169   :  { %v338_v50 = vadd.f32 %v3424_v18, %v337_v49 }
 0x16b   :  { %364 = vst [vmem:[%s5612_s7 + $0x48] sm:$0xff] %v338_v50  ;;  %v418_v51 = vpop.permute.xlu0 %417 }
 0x16c   :  { %2803 = vmatmul.msk.f32.gmra.mxu2 %vm5629_vm3, %v418_v51 }
 0x170   :  { %v340_v52 = vpop.f32.mrf.mxu1 }
 0x171   :  { %v341_v53 = vadd.f32 %v3424_v18, %v340_v52 }
 0x173   :  { %365 = vst [vmem:[%s5612_s7 + $0x50] sm:$0xff] %v341_v53  ;;  %v420_v54 = vpop.permute.xlu1 %419 }
 0x174   :  { %2804 = vmatmul.msk.f32.gmra.mxu2 %vm5629_vm3, %v420_v54 }
 0x178   :  { %v342_v55 = vpop.f32.mrf.mxu1 }
 0x179   :  { %v343_v56 = vadd.f32 %v3424_v18, %v342_v55 }
 0x17b   :  { %366 = vst [vmem:[%s5612_s7 + $0x58] sm:$0xff] %v343_v56 }
 0x17c   :  { %2805 = vmatmul.msk.f32.gmra.mxu2 %vm5629_vm3, %v422_v57 }
 0x180   :  { %v345_v58 = vpop.f32.mrf.mxu1 }
 0x181   :  { %v346_v59 = vadd.f32 %v3424_v18, %v345_v58 }
 0x183   :  { %367 = vst [vmem:[%s5612_s7 + $0x60] sm:$0xff] %v346_v59  ;;  %v424_v60 = vpop.permute.xlu0 %423 }
 0x184   :  { %2806 = vmatmul.msk.f32.gmra.mxu2 %vm5629_vm3, %v424_v60 }
 0x188   :  { %v347_v61 = vpop.f32.mrf.mxu1 }
 0x189   :  { %v348_v62 = vadd.f32 %v3424_v18, %v347_v61 }
 0x18b   :  { %368 = vst [vmem:[%s5612_s7 + $0x68] sm:$0xff] %v348_v62 }
 0x18f   :  { %v3495_v63 = vpop.f32.mrf.mxu2 }
 0x190   :  { %v350_v0 = vpop.f32.mrf.mxu1  ;;  %v3679_v52 = vadd.f32 %v3519_v30, %v3495_v63 }
 0x191   :  { %v351_v1 = vadd.f32 %v3424_v18, %v350_v0 }
 0x193   :  { %369 = vst [vmem:[%s5612_s7 + $0x70] sm:$0xff] %v351_v1 }
 0x197   :  { %v3501_v2 = vpop.f32.mrf.mxu2 }
 0x198   :  { %v352_v3 = vpop.f32.mrf.mxu1  ;;  %v3673_v51 = vadd.f32 %v3519_v30, %v3501_v2 }
 0x199   :  { %v353_v4 = vadd.f32 %v3424_v18, %v352_v3 }
 0x19b   :  { %370 = vst [vmem:[%s5612_s7 + $0x78] sm:$0xff] %v353_v4 }
 0x19f   :  { %v3507_v5 = vpop.f32.mrf.mxu2 }
 0x1a0   :  { %v3655_v48 = vadd.f32 %v3519_v30, %v3507_v5 }
 0x1a2   :  { %5652 = vst [vmem:[#allocation19_spill] sm:$0xff] %v3655_v48  ;;  %v3688_v53 = vsel %vm5630_vm2, %v3655_v48, -1e+30 }
 0x1a7   :  { %v483_v6 = vpop.f32.mrf.mxu2 }
 0x1a8   :  { %v3581_v35 = vadd.f32 %v3519_v30, %v483_v6  ;;  %v3705_v6 = vsel %vm5630_vm2, %v3679_v52, -1e+30 }
 0x1aa   :  { %5645 = vst [vmem:[#allocation12_spill] sm:$0xff] %v3581_v35  ;;  %v3597_v39 = vsel %vm5630_vm2, %v3581_v35, -1e+30 }
 0x1af   :  { %v3509_v7 = vpop.f32.mrf.mxu2 }
 0x1b0   :  { %v3647_v47 = vadd.f32 %v3519_v30, %v3509_v7 }
 0x1b2   :  { %5651 = vst [vmem:[#allocation18_spill] sm:$0xff] %v3647_v47  ;;  %v3662_v49 = vsel %vm5630_vm2, %v3647_v47, -1e+30 }
 0x1b7   :  { %v3511_v8 = vpop.f32.mrf.mxu2 }
 0x1b8   :  { %v3641_v46 = vadd.f32 %v3519_v30, %v3511_v8 }
 0x1ba   :  { %5650 = vst [vmem:[#allocation17_spill] sm:$0xff] %v3641_v46  ;;  %v3667_v50 = vsel %vm5630_vm2, %v3641_v46, -1e+30 }
 0x1bf   :  { %v492_v9 = vpop.f32.mrf.mxu2 }
 0x1c0   :  { %v3550_v26 = vadd.f32 %v3519_v30, %v492_v9 }
 0x1c2   :  { %5642 = vst [vmem:[#allocation9_spill] sm:$0xff] %v3550_v26  ;;  %v3563_v31 = vsel %vm5630_vm2, %v3550_v26, -1e+30 }
 0x1c7   :  { %v495_v10 = vpop.f32.mrf.mxu2 }
 0x1c8   :  { %v3616_v42 = vadd.f32 %v3519_v30, %v495_v10 }
 0x1ca   :  { %5648 = vst [vmem:[#allocation15_spill] sm:$0xff] %v3616_v42  ;;  %v3630_v44 = vsel %vm5630_vm2, %v3616_v42, -1e+30 }
 0x1cf   :  { %v498_v11 = vpop.f32.mrf.mxu2 }
 0x1d0   :  { %v3619_v43 = vadd.f32 %v3519_v30, %v498_v11 }
 0x1d2   :  { %5649 = vst [vmem:[#allocation16_spill] sm:$0xff] %v3619_v43  ;;  %v3635_v45 = vsel %vm5630_vm2, %v3619_v43, -1e+30 }
 0x1d7   :  { %v501_v12 = vpop.f32.mrf.mxu2 }
 0x1d8   :  { %v3532_v21 = vadd.f32 %v3519_v30, %v501_v12 }
 0x1da   :  { %5640 = vst [vmem:[#allocation7_spill] sm:$0xff] %v3532_v21  ;;  %v3545_v25 = vsel %vm5630_vm2, %v3532_v21, -1e+30 }
 0x1df   :  { %v504_v13 = vpop.f32.mrf.mxu2 }
 0x1e0   :  { %v3585_v37 = vadd.f32 %v3519_v30, %v504_v13 }
 0x1e2   :  { %5646 = vst [vmem:[#allocation13_spill] sm:$0xff] %v3585_v37  ;;  %v3604_v40 = vsel %vm5630_vm2, %v3585_v37, -1e+30 }
 0x1e7   :  { %v507_v14 = vpop.f32.mrf.mxu2 }
 0x1e8   :  { %v3588_v38 = vadd.f32 %v3519_v30, %v507_v14 }
 0x1ea   :  { %5647 = vst [vmem:[#allocation14_spill] sm:$0xff] %v3588_v38  ;;  %v3609_v41 = vsel %vm5630_vm2, %v3588_v38, -1e+30 }
 0x1ef   :  { %v510_v15 = vpop.f32.mrf.mxu2 }
 0x1f0   :  { %v3553_v27 = vadd.f32 %v3519_v30, %v510_v15 }
 0x1f2   :  { %5643 = vst [vmem:[#allocation10_spill] sm:$0xff] %v3553_v27  ;;  %v3568_v33 = vsel %vm5630_vm2, %v3553_v27, -1e+30 }
 0x1f7   :  { %v513_v18 = vpop.f32.mrf.mxu2 }
 0x1f8   :  { %v3522_v19 = vadd.f32 %v3519_v30, %v513_v18 }
 0x1fa   :  { %5639 = vst [vmem:[#allocation6_spill] sm:$0xff] %v3522_v19  ;;  %v3528_v20 = vsel %vm5630_vm2, %v3522_v19, -1e+30 }
 0x1fb   :  { %856 = vmax.xlane.f32.xlu0 %v3528_v20 }
 0x1ff   :  { %v516_v22 = vpop.f32.mrf.mxu2 }
 0x200   :  { %v3535_v23 = vadd.f32 %v3519_v30, %v516_v22 }
 0x202   :  { %5641 = vst [vmem:[#allocation8_spill] sm:$0xff] %v3535_v23  ;;  %v3540_v24 = vsel %vm5630_vm2, %v3535_v23, -1e+30 }
 0x203   :  { %858 = vmax.xlane.f32.xlu2 %v3540_v24  ;;  %848 = vmax.xlane.f32.xlu0 %v3545_v25 }
 0x207   :  { %v519_v28 = vpop.f32.mrf.mxu2 }
 0x208   :  { %v3556_v29 = vadd.f32 %v3519_v30, %v519_v28 }
 0x20a   :  { %5644 = vst [vmem:[#allocation11_spill] sm:$0xff] %v3556_v29  ;;  %2255 = vmatpush.msrb.mxu0 %v3556_v29  ;;  %2862 = vmatpush.msrb.mxu2 %v3556_v29  ;;  %v3573_v34 = vsel %vm5630_vm2, %v3556_v29, -1e+30 }
 0x20b   :  { %842 = vmax.xlane.f32.xlu0 %v3563_v31  ;;  %854 = vmax.xlane.f32.xlu2 %v3568_v33 }
 0x20c   :  { %860 = vmax.xlane.f32.xlu1 %v3573_v34  ;;  %2256 = vmatpush.msrb.mxu0 %v3535_v23 }
 0x20d   :  { %2863 = vmatpush.msrb.mxu2 %v3535_v23 }
 0x20e   :  { %2257 = vmatpush.msrb.mxu0 %v3522_v19 }
 0x20f   :  { %2864 = vmatpush.msrb.mxu2 %v3522_v19 }
 0x210   :  { %2258 = vmatpush.msrb.mxu0 %v3553_v27 }
 0x211   :  { %2865 = vmatpush.msrb.mxu2 %v3553_v27 }
 0x212   :  { %2259 = vmatpush.msrb.mxu0 %v3588_v38 }
 0x213   :  { %2866 = vmatpush.msrb.mxu2 %v3588_v38  ;;  %836 = vmax.xlane.f32.xlu0 %v3597_v39 }
 0x214   :  { %850 = vmax.xlane.f32.xlu2 %v3604_v40  ;;  %852 = vmax.xlane.f32.xlu1 %v3609_v41 }
 0x215   :  { %2260 = vmatpush.msrb.mxu0 %v3585_v37  ;;  %2867 = vmatpush.msrb.mxu2 %v3585_v37 }
 0x217   :  { %2261 = vmatpush.msrb.mxu0 %v3532_v21  ;;  %2868 = vmatpush.msrb.mxu2 %v3532_v21 }
 0x219   :  { %2262 = vmatpush.msrb.mxu0 %v3619_v43  ;;  %2869 = vmatpush.msrb.mxu2 %v3619_v43 }
 0x21b   :  { %2263 = vmatpush.msrb.mxu0 %v3616_v42  ;;  %2870 = vmatpush.msrb.mxu2 %v3616_v42 }
 0x21c   :  { %844 = vmax.xlane.f32.xlu2 %v3630_v44  ;;  %846 = vmax.xlane.f32.xlu1 %v3635_v45 }
 0x21d   :  { %2264 = vmatpush.msrb.mxu0 %v3550_v26  ;;  %2871 = vmatpush.msrb.mxu2 %v3550_v26 }
 0x21f   :  { %2265 = vmatpush.msrb.mxu0 %v3641_v46  ;;  %2872 = vmatpush.msrb.mxu2 %v3641_v46 }
 0x221   :  { %2266 = vmatpush.msrb.mxu0 %v3647_v47  ;;  %2873 = vmatpush.msrb.mxu2 %v3647_v47 }
 0x223   :  { %2267 = vmatpush.msrb.mxu0 %v3581_v35  ;;  %2874 = vmatpush.msrb.mxu2 %v3581_v35 }
 0x224   :  { %838 = vmax.xlane.f32.xlu2 %v3662_v49  ;;  %840 = vmax.xlane.f32.xlu1 %v3667_v50 }
 0x225   :  { %2268 = vmatpush.msrb.mxu0 %v3655_v48  ;;  %2875 = vmatpush.msrb.mxu2 %v3655_v48 }
 0x227   :  { %2269 = vmatpush.msrb.mxu0 %v3673_v51  ;;  %2876 = vmatpush.msrb.mxu2 %v3673_v51 }
 0x229   :  { %2270 = vmatpush.msrb.mxu0 %v3679_v52  ;;  %2877 = vmatpush.msrb.mxu2 %v3679_v52 }
 0x22c   :  { %834 = vmax.xlane.f32.xlu2 %v3688_v53 }
 0x26e   :  { %v857_v54 = vpop.xlane.xlu0 %856 }
 0x26f   :  { %v875_v55 = vsub.f32 %v3528_v20, %v857_v54 }
 0x271   :  { %v904_v56 = vmul.f32 1.442695, %v875_v55 }
 0x273   :  { %2896 = vpow2.f32 %v904_v56 }
 0x276   :  { %v859_v57 = vpop.xlane.xlu2 %858  ;;  %v849_v11 = vpop.xlane.xlu0 %848 }
 0x277   :  { %v876_v58 = vsub.f32 %v3540_v24, %v859_v57  ;;  %v3719_v24 = vsel %vm5630_vm2, %v3673_v51, -1e+30 }
 0x279   :  { %v3693_v59 = vpop.eup %2896  ;;  %v906_v60 = vmul.f32 1.442695, %v876_v58 }
 0x27a   :  { %936 = vadd.xlane.f32.xlu2 %v3693_v59 }
 0x27b   :  { %2898 = vpow2.f32 %v906_v60 }
 0x27e   :  { %v855_v61 = vpop.xlane.xlu2 %854 }
 0x27f   :  { %v861_v62 = vpop.xlane.xlu1 %860  ;;  %v874_v10 = vsub.f32 %v3568_v33, %v855_v61  ;;  %v871_v33 = vsub.f32 %v3545_v25, %v849_v11 }
 0x280   :  { %v877_v63 = vsub.f32 %v3573_v34, %v861_v62  ;;  %v843_v34 = vpop.xlane.xlu0 %842 }
 0x281   :  { %v3697_v0 = vpop.eup %2898  ;;  %v902_v12 = vmul.f32 1.442695, %v874_v10  ;;  %v868_v60 = vsub.f32 %v3563_v31, %v843_v34 }
 0x282   :  { %v908_v1 = vmul.f32 1.442695, %v877_v63  ;;  %938 = vadd.xlane.f32.xlu0 %v3697_v0 }
 0x284   :  { %2900 = vpow2.f32 %v908_v1 }
 0x287   :  { %v851_v2 = vpop.xlane.xlu2 %850  ;;  %v853_v3 = vpop.xlane.xlu1 %852 }
 0x288   :  { %v872_v4 = vsub.f32 %v3604_v40, %v851_v2  ;;  %v873_v5 = vsub.f32 %v3609_v41, %v853_v3  ;;  %v896_v40 = vmul.f32 1.442695, %v871_v33  ;;  %v837_v63 = vpop.xlane.xlu0 %836 }
 0x289   :  { %v865_v31 = vsub.f32 %v3597_v39, %v837_v63 }
 0x28a   :  { %v3707_v7 = vpop.eup %2900  ;;  %v898_v8 = vmul.f32 1.442695, %v872_v4  ;;  %v900_v9 = vmul.f32 1.442695, %v873_v5  ;;  %830 = vmax.xlane.f32.xlu0 %v3705_v6 }
 0x28b   :  { %940 = vadd.xlane.f32.xlu1 %v3707_v7  ;;  %v884_v4 = vmul.f32 1.442695, %v865_v31 }
 0x28c   :  { %2902 = vpow2.f32 %v898_v8 }
 0x28d   :  { %2904 = vpow2.f32 %v900_v9 }
 0x28e   :  { %2906 = vpow2.f32 %v902_v12 }
 0x28f   :  { %v845_v13 = vpop.xlane.xlu2 %844  ;;  %v847_v14 = vpop.xlane.xlu1 %846 }
 0x290   :  { %v869_v15 = vsub.f32 %v3630_v44, %v845_v13  ;;  %v870_v30 = vsub.f32 %v3635_v45, %v847_v14 }
 0x292   :  { %v3714_v18 = vpop.eup %2902  ;;  %v892_v20 = vmul.f32 1.442695, %v869_v15  ;;  %v894_v22 = vmul.f32 1.442695, %v870_v30 }
 0x293   :  { %v3721_v28 = vpop.eup %2904  ;;  %930 = vadd.xlane.f32.xlu0 %v3714_v18  ;;  %832 = vmax.xlane.f32.xlu1 %v3719_v24 }
 0x294   :  { %2908 = vpow2.f32 %v892_v20  ;;  %932 = vadd.xlane.f32.xlu2 %v3721_v28  ;;  %v3729_v55 = vpop.eup %2906 }
 0x295   :  { %2910 = vpow2.f32 %v894_v22 }
 0x296   :  { %2912 = vpow2.f32 %v896_v40 }
 0x297   :  { %v839_v41 = vpop.xlane.xlu2 %838  ;;  %v841_v44 = vpop.xlane.xlu1 %840 }
 0x298   :  { %v866_v45 = vsub.f32 %v3662_v49, %v839_v41  ;;  %v867_v54 = vsub.f32 %v3667_v50, %v841_v44  ;;  %v890_v49 = vmul.f32 1.442695, %v868_v60 }
 0x29a   :  { %v3731_v25 = vpop.eup %2908  ;;  %v886_v56 = vmul.f32 1.442695, %v866_v45  ;;  %v888_v57 = vmul.f32 1.442695, %v867_v54 }
 0x29b   :  { %v3733_v58 = vpop.eup %2910  ;;  %924 = vadd.xlane.f32.xlu0 %v3731_v25  ;;  %934 = vadd.xlane.f32.xlu1 %v3729_v55 }
 0x29c   :  { %2914 = vpow2.f32 %v886_v56  ;;  %926 = vadd.xlane.f32.xlu2 %v3733_v58  ;;  %v3740_v62 = vpop.eup %2912 }
 0x29d   :  { %2916 = vpow2.f32 %v888_v57 }
 0x29e   :  { %2918 = vpow2.f32 %v890_v49 }
 0x29f   :  { %v835_v50 = vpop.xlane.xlu2 %834 }
 0x2a0   :  { %v864_v61 = vsub.f32 %v3688_v53, %v835_v50 }
 0x2a2   :  { %v3742_v1 = vpop.eup %2914  ;;  %v882_v2 = vmul.f32 1.442695, %v864_v61 }
 0x2a3   :  { %v3744_v3 = vpop.eup %2916  ;;  %918 = vadd.xlane.f32.xlu0 %v3742_v1  ;;  %928 = vadd.xlane.f32.xlu1 %v3740_v62 }
 0x2a4   :  { %2920 = vpow2.f32 %v882_v2  ;;  %920 = vadd.xlane.f32.xlu2 %v3744_v3  ;;  %v3750_v53 = vpop.eup %2918 }
 0x2a5   :  { %2922 = vpow2.f32 %v884_v4 }
 0x2aa   :  { %v3752_v5 = vpop.eup %2920 }
 0x2ab   :  { %922 = vadd.xlane.f32.xlu1 %v3750_v53  ;;  %v3756_v8 = vpop.eup %2922 }
 0x2ac   :  { %914 = vadd.xlane.f32.xlu2 %v3752_v5 }
 0x2b3   :  { %916 = vadd.xlane.f32.xlu1 %v3756_v8 }
 0x2ed   :  { %v937_v9 = vpop.xlane.xlu2 %936 }
 0x2ee   :  { %2924 = vrcp.f32 %v937_v9  ;;  %v1135_v41 = vand.u32 2147483648, %v937_v9  ;;  %vm1129_vm5 = vweird.f32 %v937_v9  ;;  %v1133_v45 = vand.u32 2147483647, %v937_v9 }
 0x2f0   :  { %v1136_v49 = vor.u32 1.1754944e-38, %v1135_v41  ;;  %vm1134_vm9 = vcmp.eq.f32.partialorder %v1133_v45, 8.507059e+37 }
 0x2f4   :  { %v2925_v39 = vpop.eup %2924 }
 0x2f5   :  { %v1125_v10 = vmul.f32 %v2925_v39, %v937_v9  ;;  %v939_v11 = vpop.xlane.xlu0 %938  ;;  %vm1130_vm4 = vweird.f32 %v2925_v39 }
 0x2f6   :  { %2926 = vrcp.f32 %v939_v11  ;;  %vm3760_vm6 = vmor %vm1129_vm5, %vm1130_vm4  ;;  %v1149_v60 = vand.u32 2147483648, %v939_v11  ;;  %vm1143_vm8 = vweird.f32 %v939_v11  ;;  %v1147_v2 = vand.u32 2147483647, %v939_v11 }
 0x2f7   :  { %v1126_v12 = vsub.f32 1.0, %v1125_v10 }
 0x2f8   :  { %vm1148_vm11 = vcmp.eq.f32.partialorder %v1147_v2, 8.507059e+37 }
 0x2f9   :  { %v1127_v14 = vmul.f32 %v2925_v39, %v1126_v12 }
 0x2fb   :  { %v1128_v40 = vadd.f32 %v2925_v39, %v1127_v14 }
 0x2fc   :  { %v2927_v13 = vpop.eup %2926 }
 0x2fd   :  { %v1139_v15 = vmul.f32 %v2927_v13, %v939_v11  ;;  %v831_v30 = vpop.xlane.xlu0 %830  ;;  %v1132_v56 = vsel %vm3760_vm6, %v2925_v39, %v1128_v40  ;;  %vm1144_vm7 = vweird.f32 %v2927_v13 }
 0x2fe   :  { %v941_v20 = vpop.xlane.xlu1 %940  ;;  %v862_v22 = vsub.f32 %v3705_v6, %v831_v30  ;;  %v1137_v9 = vsel %vm1134_vm9, %v1136_v49, %v1132_v56  ;;  %vm3775_vm10 = vmor %vm1143_vm8, %vm1144_vm7 }
 0x2ff   :  { %v1140_v33 = vsub.f32 1.0, %v1139_v15  ;;  %2928 = vrcp.f32 %v941_v20  ;;  %v1163_v11 = vand.u32 2147483648, %v941_v20  ;;  %vm1157_vm13 = vweird.f32 %v941_v20 }
 0x300   :  { %v878_v34 = vmul.f32 1.442695, %v862_v22  ;;  %v3787_v22 = vmul.f32 %v3693_v59, %v1137_v9 }
 0x301   :  { %v1141_v44 = vmul.f32 %v2927_v13, %v1140_v33  ;;  %v1161_v33 = vand.u32 2147483647, %v941_v20  ;;  %v1164_v45 = vor.u32 1.1754944e-38, %v1163_v11 }
 0x302   :  { %2930 = vpow2.f32 %v878_v34 }
 0x303   :  { %v1142_v57 = vadd.f32 %v2927_v13, %v1141_v44  ;;  %vm3809_vm15 = vcmp.eq.f32.partialorder %v1161_v33, 8.507059e+37 }
 0x305   :  { %v3766_v6 = vpop.eup %2928  ;;  %v1146_v14 = vsel %vm3775_vm10, %v2927_v13, %v1142_v57 }
 0x306   :  { %v1153_v50 = vmul.f32 %v3766_v6, %v941_v20  ;;  %v833_v61 = vpop.xlane.xlu1 %832  ;;  %v3769_v63 = vpop.xlane.xlu0 %930  ;;  %vm1158_vm12 = vweird.f32 %v3766_v6 }
 0x307   :  { %v863_v31 = vsub.f32 %v3719_v24, %v833_v61  ;;  %v3772_v4 = vpop.xlane.xlu2 %932  ;;  %2932 = vrcp.f32 %v3769_v63  ;;  %v1150_v24 = vor.u32 1.1754944e-38, %v1149_v60  ;;  %v1093_v44 = vand.u32 2147483648, %v3769_v63  ;;  %vm3805_vm14 = vmor %vm1157_vm13, %vm1158_vm12 }
 0x308   :  { %v3779_v10 = vpop.eup %2930  ;;  %v1154_v12 = vsub.f32 1.0, %v1153_v50  ;;  %2934 = vrcp.f32 %v3772_v4  ;;  %v1107_v13 = vand.u32 2147483648, %v3772_v4  ;;  %v1195_v60 = vmul.f32 %v3787_v22, %v3787_v22 }
 0x309   :  { %v880_v15 = vmul.f32 1.442695, %v863_v31  ;;  %910 = vadd.xlane.f32.xlu1 %v3779_v10  ;;  %v1151_v34 = vsel %vm1148_vm11, %v1150_v24, %v1146_v14  ;;  %v1091_v9 = vand.u32 2147483647, %v3769_v63  ;;  %vm1087_vm0 = vweird.f32 %v3769_v63 }
 0x30a   :  { %v1155_v30 = vmul.f32 %v3766_v6, %v1154_v12  ;;  %v3814_v50 = vmul.f32 %v3697_v0, %v1151_v34  ;;  %v1105_v0 = vand.u32 2147483647, %v3772_v4  ;;  %vm1101_vm1 = vweird.f32 %v3772_v4 }
 0x30b   :  { %2936 = vpow2.f32 %v880_v15  ;;  %v1094_v11 = vor.u32 1.1754944e-38, %v1093_v44  ;;  %v1108_v15 = vor.u32 1.1754944e-38, %v1107_v13  ;;  %vm3844_vm5 = vcmp.eq.f32.partialorder %v1091_v9, 8.507059e+37 }
 0x30c   :  { %v1156_v40 = vadd.f32 %v3766_v6, %v1155_v30  ;;  %v1196_v33 = vmul.f32 %v3814_v50, %v3814_v50  ;;  %vm3850_vm7 = vcmp.eq.f32.partialorder %v1105_v0, 8.507059e+37 }
 0x30d   :  { %v3791_v41 = vpop.eup %2932 }
 0x30e   :  { %v3795_v54 = vpop.eup %2934  ;;  %v1083_v59 = vmul.f32 %v3791_v41, %v3769_v63  ;;  %v3799_v56 = vpop.xlane.xlu1 %934  ;;  %v1160_v31 = vsel %vm3805_vm14, %v3766_v6, %v1156_v40  ;;  %vm1088_vm4 = vweird.f32 %v3791_v41 }
 0x30f   :  { %v3801_v57 = vpop.xlane.xlu0 %924  ;;  %v1097_v61 = vmul.f32 %v3795_v54, %v3772_v4  ;;  %2938 = vrcp.f32 %v3799_v56  ;;  %v3819_v2 = vpop.xlane.xlu2 %926  ;;  %v1121_v24 = vand.u32 2147483648, %v3799_v56  ;;  %v1165_v30 = vsel %vm3809_vm15, %v1164_v45, %v1160_v31  ;;  %vm3874_vm9 = vmor %vm1087_vm0, %vm1088_vm4 }
 0x310   :  { %v1084_v39 = vsub.f32 1.0, %v1083_v59  ;;  %2940 = vrcp.f32 %v3819_v2  ;;  %v3841_v40 = vmul.f32 %v3707_v7, %v1165_v30  ;;  %vm1115_vm6 = vweird.f32 %v3799_v56 }
 0x311   :  { %v3828_v12 = vpop.eup %2936  ;;  %v1098_v14 = vsub.f32 1.0, %v1097_v61  ;;  %2942 = vrcp.f32 %v3801_v57  ;;  %1224 = vadd.xlane.f32.xlu1 %v1195_v60  ;;  %v1119_v59 = vand.u32 2147483647, %v3799_v56  ;;  %v1065_v7 = vand.u32 2147483648, %v3819_v2 }
 0x312   :  { %v1085_v6 = vmul.f32 %v3791_v41, %v1084_v39  ;;  %912 = vadd.xlane.f32.xlu0 %v3828_v12  ;;  %v1051_v49 = vand.u32 2147483648, %v3801_v57  ;;  %v1197_v20 = vmul.f32 %v3841_v40, %v3841_v40  ;;  %vm1102_vm8 = vweird.f32 %v3795_v54 }
 0x313   :  { %v1099_v34 = vmul.f32 %v3795_v54, %v1098_v14  ;;  %v3878_v14 = vor.u32 1.1754944e-38, %v1121_v24  ;;  %v1063_v30 = vand.u32 2147483647, %v3819_v2  ;;  %vm1045_vm10 = vweird.f32 %v3801_v57  ;;  %vm1103_vm13 = vmor %vm1101_vm1, %vm1102_vm8 }
 0x314   :  { %v1086_v44 = vadd.f32 %v3791_v41, %v1085_v6  ;;  %v1049_v6 = vand.u32 2147483647, %v3801_v57  ;;  %1228 = vadd.xlane.f32.xlu2 %v1197_v20  ;;  %vm3897_vm11 = vcmp.eq.f32.partialorder %v1119_v59, 8.507059e+37  ;;  %vm1059_vm12 = vweird.f32 %v3819_v2 }
 0x315   :  { %v3855_v60 = vpop.eup %2938  ;;  %v1100_v24 = vadd.f32 %v3795_v54, %v1099_v34  ;;  %vm3920_vm0 = vcmp.eq.f32.partialorder %v1063_v30, 8.507059e+37 }
 0x316   :  { %v3862_v61 = vpop.eup %2940  ;;  %v1111_v31 = vmul.f32 %v3855_v60, %v3799_v56  ;;  %v3866_v9 = vpop.xlane.xlu1 %928  ;;  %v1090_v63 = vsel %vm3874_vm9, %v3791_v41, %v1086_v44  ;;  %v1052_v41 = vor.u32 1.1754944e-38, %v1051_v49  ;;  %v1066_v44 = vor.u32 1.1754944e-38, %v1065_v7 }
 0x317   :  { %v3868_v39 = vpop.xlane.xlu0 %918  ;;  %v3882_v16 = vpop.eup %2942  ;;  %v1055_v29 = vmul.f32 %v3862_v61, %v3819_v2  ;;  %2944 = vrcp.f32 %v3866_v9  ;;  %v1095_v0 = vsel %vm3844_vm5, %v1094_v11, %v1090_v63  ;;  %vm1116_vm14 = vweird.f32 %v3855_v60 }
 0x318   :  { %v3886_v19 = vpop.xlane.xlu2 %920  ;;  %v1112_v23 = vsub.f32 1.0, %v1111_v31  ;;  %v1041_v27 = vmul.f32 %v3882_v16, %v3801_v57  ;;  %vm3911_vm15 = vcmp.eq.f32.partialorder %v1049_v6, 8.507059e+37  ;;  %vm1073_vm1 = vweird.f32 %v3866_v9  ;;  %vm3943_vm4 = vmor %vm1115_vm6, %vm1116_vm14 }
 0x319   :  { %2946 = vrcp.f32 %v3886_v19  ;;  %v1056_v38 = vsub.f32 1.0, %v1055_v29  ;;  %vm1003_vm5 = vweird.f32 %v3868_v39  ;;  %vm1046_vm6 = vweird.f32 %v3882_v16 }
 0x31a   :  { %2948 = vrcp.f32 %v3868_v39  ;;  %v1113_v34 = vmul.f32 %v3855_v60, %v1112_v23  ;;  %v1042_v31 = vsub.f32 1.0, %v1041_v27  ;;  %1226 = vadd.xlane.f32.xlu0 %v1196_v33  ;;  %v3917_v23 = vmul.f32 %v3714_v18, %v1095_v0  ;;  %vm1047_vm8 = vmor %vm1045_vm10, %vm1046_vm6 }
 0x31b   :  { %v1057_v59 = vmul.f32 %v3862_v61, %v1056_v38  ;;  %v1104_v27 = vsel %vm1103_vm13, %v3795_v54, %v1100_v24  ;;  %v1079_v33 = vand.u32 2147483648, %v3866_v9  ;;  %v1023_v38 = vand.u32 2147483648, %v3886_v19 }
 0x31c   :  { %v1043_v4 = vmul.f32 %v3882_v16, %v1042_v31  ;;  %v1109_v13 = vsel %vm3850_vm7, %v1108_v15, %v1104_v27  ;;  %v1114_v7 = vadd.f32 %v3855_v60, %v1113_v34  ;;  %v1009_v18 = vand.u32 2147483648, %v3868_v39 }
 0x31d   :  { %v3929_v49 = vpop.eup %2944  ;;  %v1192_v54 = vmul.f32 %v3917_v23, %v3917_v23  ;;  %v3937_v6 = vmul.f32 %v3721_v28, %v1109_v13  ;;  %v1058_v0 = vadd.f32 %v3862_v61, %v1057_v59  ;;  %vm1060_vm7 = vweird.f32 %v3862_v61 }
 0x31e   :  { %v1069_v30 = vmul.f32 %v3929_v49, %v3866_v9  ;;  %v3952_v63 = vpop.xlane.xlu1 %922  ;;  %v1118_v28 = vsel %vm3943_vm4, %v3855_v60, %v1114_v7  ;;  %v1044_v24 = vadd.f32 %v3882_v16, %v1043_v4  ;;  %v1077_v4 = vand.u32 2147483647, %v3866_v9 }
 0x31f   :  { %v3947_v45 = vpop.eup %2946  ;;  %1218 = vadd.xlane.f32.xlu1 %v1192_v54  ;;  %2950 = vrcp.f32 %v3952_v63  ;;  %v1193_v7 = vmul.f32 %v3937_v6, %v3937_v6  ;;  %v1123_v54 = vsel %vm3897_vm11, %v3878_v14, %v1118_v28  ;;  %vm1074_vm9 = vweird.f32 %v3929_v49  ;;  %vm1061_vm11 = vmor %vm1059_vm12, %vm1060_vm7 }
 0x320   :  { %v3959_v56 = vpop.eup %2948  ;;  %v1013_v34 = vmul.f32 %v3947_v45, %v3886_v19  ;;  %v3963_v31 = vpop.xlane.xlu2 %914  ;;  %v1070_v27 = vsub.f32 1.0, %v1069_v30  ;;  %vm1017_vm13 = vweird.f32 %v3886_v19  ;;  %v3985_v30 = vmul.f32 %v3729_v55, %v1123_v54  ;;  %vm4026_vm14 = vmor %vm1073_vm1, %vm1074_vm9 }
 0x321   :  { %v999_v60 = vmul.f32 %v3959_v56, %v3868_v39  ;;  %2952 = vrcp.f32 %v3963_v31  ;;  %v981_v57 = vand.u32 2147483648, %v3963_v31  ;;  %v1037_v14 = vand.u32 2147483648, %v3952_v63 }
 0x322   :  { %v1014_v13 = vsub.f32 1.0, %v1013_v34  ;;  %v1071_v59 = vmul.f32 %v3929_v49, %v1070_v27  ;;  %v1048_v34 = vsel %vm1047_vm8, %v3882_v16, %v1044_v24  ;;  %1220 = vadd.xlane.f32.xlu0 %v1193_v7  ;;  %v1062_v28 = vsel %vm1061_vm11, %v3862_v61, %v1058_v0 }
 0x323   :  { %v1000_v15 = vsub.f32 1.0, %v999_v60  ;;  %v1053_v20 = vsel %vm3911_vm15, %v1052_v41, %v1048_v34  ;;  %v1194_v16 = vmul.f32 %v3985_v30, %v3985_v30  ;;  %v1067_v2 = vsel %vm3920_vm0, %v1066_v44, %v1062_v28 }
 0x324   :  { %v4001_v24 = vmul.f32 %v3731_v25, %v1053_v20  ;;  %v1015_v60 = vmul.f32 %v3947_v45, %v1014_v13  ;;  %vm1031_vm10 = vweird.f32 %v3952_v63  ;;  %v4010_v41 = vmul.f32 %v3733_v58, %v1067_v2 }
 0x325   :  { %v1001_v55 = vmul.f32 %v3959_v56, %v1000_v15  ;;  %v4005_v27 = vpop.eup %2950  ;;  %v1072_v61 = vadd.f32 %v3929_v49, %v1071_v59  ;;  %vm1004_vm12 = vweird.f32 %v3959_v56  ;;  %1222 = vadd.xlane.f32.xlu2 %v1194_v16  ;;  %v1007_v13 = vand.u32 2147483647, %v3868_v39 }
 0x326   :  { %v1027_v25 = vmul.f32 %v4005_v27, %v3952_v63  ;;  %v1189_v44 = vmul.f32 %v4001_v24, %v4001_v24  ;;  %v4020_v11 = vpop.xlane.xlu1 %916  ;;  %vm975_vm15 = vweird.f32 %v3963_v31  ;;  %vm1078_vm0 = vcmp.eq.f32.partialorder %v1077_v4, 8.507059e+37  ;;  %vm4040_vm1 = vmor %vm1003_vm5, %vm1004_vm12 }
 0x327   :  { %v4014_v29 = vpop.eup %2952  ;;  %v1002_v0 = vadd.f32 %v3959_v56, %v1001_v55  ;;  %2954 = vrcp.f32 %v4020_v11  ;;  %v1080_v54 = vor.u32 1.1754944e-38, %v1079_v33  ;;  %v1190_v34 = vmul.f32 %v4010_v41, %v4010_v41 }
 0x328   :  { %v971_v7 = vmul.f32 %v4014_v29, %v3963_v31  ;;  %v1028_v15 = vsub.f32 1.0, %v1027_v25  ;;  %1212 = vadd.xlane.f32.xlu1 %v1189_v44  ;;  %v1076_v20 = vsel %vm4026_vm14, %v3929_v49, %v1072_v61  ;;  %vm1008_vm4 = vcmp.eq.f32.partialorder %v1007_v13, 8.507059e+37 }
 0x329   :  { %v1006_v9 = vsel %vm4040_vm1, %v3959_v56, %v1002_v0  ;;  %v1081_v4 = vsel %vm1078_vm0, %v1080_v54, %v1076_v20  ;;  %v1010_v28 = vor.u32 1.1754944e-38, %v1009_v18  ;;  %v1016_v2 = vadd.f32 %v3947_v45, %v1015_v60 }
 0x32a   :  { %v972_v33 = vsub.f32 1.0, %v971_v7  ;;  %v1029_v55 = vmul.f32 %v4005_v27, %v1028_v15  ;;  %v4056_v16 = vmul.f32 %v3740_v62, %v1081_v4  ;;  %vm1018_vm5 = vweird.f32 %v3947_v45  ;;  %1214 = vadd.xlane.f32.xlu0 %v1190_v34 }
 0x32b   :  { %v1011_v61 = vsel %vm1008_vm4, %v1010_v28, %v1006_v9  ;;  %vm4063_vm6 = vmor %vm1017_vm13, %vm1018_vm5  ;;  %v1021_v39 = vand.u32 2147483647, %v3886_v19  ;;  %v1024_v62 = vor.u32 1.1754944e-38, %v1023_v38  ;;  %vm1032_vm8 = vweird.f32 %v4005_v27 }
 0x32c   :  { %v973_v49 = vmul.f32 %v4014_v29, %v972_v33  ;;  %v1191_v18 = vmul.f32 %v4056_v16, %v4056_v16  ;;  %v4073_v60 = vmul.f32 %v3742_v1, %v1011_v61  ;;  %v1020_v25 = vsel %vm4063_vm6, %v3947_v45, %v1016_v2  ;;  %vm1033_vm9 = vmor %vm1031_vm10, %vm1032_vm8 }
 0x32d   :  { %v1030_v44 = vadd.f32 %v4005_v27, %v1029_v55  ;;  %v2955_v58 = vpop.eup %2954  ;;  %vm1022_vm7 = vcmp.eq.f32.partialorder %v1021_v39, 8.507059e+37  ;;  %v1035_v0 = vand.u32 2147483647, %v3952_v63  ;;  %v1038_v19 = vor.u32 1.1754944e-38, %v1037_v14 }
 0x32e   :  { %v985_v38 = vmul.f32 %v2955_v58, %v4020_v11  ;;  %1216 = vadd.xlane.f32.xlu2 %v1191_v18  ;;  %v1186_v1 = vmul.f32 %v4073_v60, %v4073_v60  ;;  %v1025_v13 = vsel %vm1022_vm7, %v1024_v62, %v1020_v25  ;;  %v974_v45 = vadd.f32 %v4014_v29, %v973_v49 }
 0x32f   :  { %v4088_v7 = vmul.f32 %v3744_v3, %v1025_v13  ;;  %v1034_v54 = vsel %vm1033_vm9, %v4005_v27, %v1030_v44  ;;  %vm1036_vm13 = vcmp.eq.f32.partialorder %v1035_v0, 8.507059e+37  ;;  %vm976_vm11 = vweird.f32 %v4014_v29 }
 0x330   :  { %v986_v14 = vsub.f32 1.0, %v985_v38  ;;  %v995_v59 = vand.u32 2147483648, %v4020_v11  ;;  %1206 = vadd.xlane.f32.xlu1 %v1186_v1  ;;  %v1039_v15 = vsel %vm1036_vm13, %v1038_v19, %v1034_v54  ;;  %vm977_vm12 = vmor %vm975_vm15, %vm976_vm11  ;;  %v979_v63 = vand.u32 2147483647, %v3963_v31 }
 0x331   :  { %v1187_v34 = vmul.f32 %v4088_v7, %v4088_v7  ;;  %v4099_v3 = vmul.f32 %v3750_v53, %v1039_v15  ;;  %v978_v27 = vsel %vm977_vm12, %v4014_v29, %v974_v45  ;;  %v982_v20 = vor.u32 1.1754944e-38, %v981_v57 }
 0x332   :  { %v987_v9 = vmul.f32 %v2955_v58, %v986_v14  ;;  %vm980_vm10 = vcmp.eq.f32.partialorder %v979_v63, 8.507059e+37  ;;  %vm990_vm14 = vweird.f32 %v2955_v58  ;;  %v993_v33 = vand.u32 2147483647, %v4020_v11 }
 0x333   :  { %1208 = vadd.xlane.f32.xlu0 %v1187_v34  ;;  %v1188_v4 = vmul.f32 %v4099_v3, %v4099_v3  ;;  %v983_v28 = vsel %vm980_vm10, %v982_v20, %v978_v27  ;;  %vm989_vm15 = vweird.f32 %v4020_v11  ;;  %v996_v29 = vor.u32 1.1754944e-38, %v995_v59 }
 0x334   :  { %v988_v55 = vadd.f32 %v2955_v58, %v987_v9  ;;  %v4109_v53 = vmul.f32 %v3752_v5, %v983_v28  ;;  %vm991_vm0 = vmor %vm989_vm15, %vm990_vm14  ;;  %vm994_vm1 = vcmp.eq.f32.partialorder %v993_v33, 8.507059e+37 }
 0x336   :  { %1210 = vadd.xlane.f32.xlu2 %v1188_v4  ;;  %v992_v31 = vsel %vm991_vm0, %v2955_v58, %v988_v55  ;;  %v1184_v49 = vmul.f32 %v4109_v53, %v4109_v53 }
 0x337   :  { %v997_v57 = vsel %vm994_vm1, %v996_v29, %v992_v31 }
 0x338   :  { %v4112_v2 = vmul.f32 %v3756_v8, %v997_v57 }
 0x33a   :  { %v1185_v61 = vmul.f32 %v4112_v2, %v4112_v2 }
 0x33b   :  { %1202 = vadd.xlane.f32.xlu0 %v1184_v49 }
 0x33e   :  { %1204 = vadd.xlane.f32.xlu2 %v1185_v61 }
 0x37c   :  { %v911_v11 = vpop.xlane.xlu1 %910 }
 0x37d   :  { %2956 = vrcp.f32 %v911_v11  ;;  %v953_v8 = vand.u32 2147483648, %v911_v11  ;;  %v951_v58 = vand.u32 2147483647, %v911_v11  ;;  %vm947_vm5 = vweird.f32 %v911_v11 }
 0x37f   :  { %v954_v1 = vor.u32 1.1754944e-38, %v953_v8  ;;  %vm952_vm7 = vcmp.eq.f32.partialorder %v951_v58, 8.507059e+37 }
 0x383   :  { %v2957_v5 = vpop.eup %2956 }
 0x384   :  { %v943_v56 = vmul.f32 %v2957_v5, %v911_v11  ;;  %v1225_v39 = vpop.xlane.xlu1 %1224  ;;  %vm948_vm4 = vweird.f32 %v2957_v5 }
 0x385   :  { %v4118_v62 = vmax.f32 %v1225_v39, 1e-18  ;;  %v913_v18 = vpop.xlane.xlu0 %912  ;;  %vm949_vm6 = vmor %vm947_vm5, %vm948_vm4 }
 0x386   :  { %v944_v25 = vsub.f32 1.0, %v943_v56  ;;  %2958 = vrcp.f32 %v913_v18  ;;  %v967_v9 = vand.u32 2147483648, %v913_v18  ;;  %v965_v28 = vand.u32 2147483647, %v913_v18 }
 0x387   :  { %2960 = vrsqrt.f32 %v4118_v62  ;;  %v1229_v0 = vpop.xlane.xlu2 %1228  ;;  %vm961_vm9 = vweird.f32 %v913_v18  ;;  %vm1409_vm12 = vcmp.eq.f32.partialorder %v4118_v62, inf  ;;  %vm1411_vm10 = vcmp.eq.f32.partialorder %v4118_v62, 0.0 }
 0x388   :  { %v945_v44 = vmul.f32 %v2957_v5, %v944_v25  ;;  %v4121_v38 = vmax.f32 %v1229_v0, 1e-18  ;;  %v968_v61 = vor.u32 1.1754944e-38, %v967_v9  ;;  %vm966_vm11 = vcmp.eq.f32.partialorder %v965_v28, 8.507059e+37 }
 0x389   :  { %v1412_v9 = vand.u32 2147483648, %v4118_v62 }
 0x38a   :  { %v946_v19 = vadd.f32 %v2957_v5, %v945_v44  ;;  %2962 = vrsqrt.f32 %v4121_v38  ;;  %vm1433_vm14 = vcmp.eq.f32.partialorder %v4121_v38, inf  ;;  %vm1435_vm15 = vcmp.eq.f32.partialorder %v4121_v38, 0.0 }
 0x38c   :  { %v2959_v13 = vpop.eup %2958  ;;  %v950_v45 = vsel %vm949_vm6, %v2957_v5, %v946_v19 }
 0x38d   :  { %v2961_v54 = vpop.eup %2960  ;;  %v957_v14 = vmul.f32 %v2959_v13, %v913_v18  ;;  %v1227_v59 = vpop.xlane.xlu0 %1226  ;;  %v955_v15 = vsel %vm952_vm7, %v954_v1, %v950_v45  ;;  %vm962_vm8 = vweird.f32 %v2959_v13 }
 0x38e   :  { %v1403_v63 = vmul.f32 %v2961_v54, %v4118_v62  ;;  %v4125_v34 = vmax.f32 %v1227_v59, 1e-18  ;;  %v4128_v27 = vmul.f32 %v3779_v10, %v955_v15  ;;  %vm963_vm13 = vmor %vm961_vm9, %vm962_vm8 }
 0x38f   :  { %v958_v20 = vsub.f32 1.0, %v957_v14 }
 0x390   :  { %2964 = vrsqrt.f32 %v4125_v34  ;;  %v1182_v33 = vmul.f32 %v4128_v27, %v4128_v27  ;;  %v1404_v55 = vmul.f32 %v2961_v54, %v1403_v63  ;;  %v2963_v31 = vpop.eup %2962  ;;  %vm1421_vm0 = vcmp.eq.f32.partialorder %v4125_v34, inf }
 0x391   :  { %v959_v4 = vmul.f32 %v2959_v13, %v958_v20  ;;  %v1427_v10 = vmul.f32 %v2963_v31, %v4121_v38  ;;  %vm1423_vm1 = vcmp.eq.f32.partialorder %v4125_v34, 0.0 }
 0x392   :  { %v1219_v29 = vpop.xlane.xlu1 %1218  ;;  %1198 = vadd.xlane.f32.xlu2 %v1182_v33  ;;  %v1405_v49 = vmul.f32 0.5, %v1404_v55 }
 0x393   :  { %v960_v57 = vadd.f32 %v2959_v13, %v959_v4  ;;  %v1428_v8 = vmul.f32 %v2963_v31, %v1427_v10  ;;  %v4140_v19 = vmax.f32 %v1219_v29, 1e-18 }
 0x394   :  { %v1406_v5 = vsub.f32 1.5, %v1405_v49  ;;  %v1436_v49 = vand.u32 2147483648, %v4121_v38 }
 0x395   :  { %v964_v11 = vsel %vm963_vm13, %v2959_v13, %v960_v57  ;;  %v1221_v39 = vpop.xlane.xlu0 %1220  ;;  %v1429_v1 = vmul.f32 0.5, %v1428_v8  ;;  %v1424_v8 = vand.u32 2147483648, %v4125_v34 }
 0x396   :  { %v2965_v56 = vpop.eup %2964  ;;  %v969_v25 = vsel %vm966_vm11, %v968_v61, %v964_v11  ;;  %v4135_v58 = vmax.f32 %v1221_v39, 1e-18  ;;  %v1407_v18 = vmul.f32 %v2961_v54, %v1406_v5 }
 0x397   :  { %v1415_v44 = vmul.f32 %v2965_v56, %v4125_v34  ;;  %v4138_v0 = vmul.f32 %v3828_v12, %v969_v25  ;;  %v1430_v63 = vsub.f32 1.5, %v1429_v1 }
 0x398   :  { %2966 = vrsqrt.f32 %v4135_v58  ;;  %v1223_v13 = vpop.xlane.xlu2 %1222  ;;  %v1408_v59 = vmul.f32 %v1407_v18, %v4118_v62  ;;  %vm1385_vm13 = vcmp.eq.f32.partialorder %v4135_v58, inf }
 0x399   :  { %v1183_v45 = vmul.f32 %v4138_v0, %v4138_v0  ;;  %v1416_v14 = vmul.f32 %v2965_v56, %v1415_v44  ;;  %v4146_v15 = vmax.f32 %v1223_v13, 1e-18  ;;  %v1431_v33 = vmul.f32 %v2963_v31, %v1430_v63 }
 0x39a   :  { %v1410_v20 = vsel %vm1409_vm12, %v4118_v62, %v1408_v59 }
 0x39b   :  { %v1213_v12 = vpop.xlane.xlu1 %1212  ;;  %1200 = vadd.xlane.f32.xlu1 %v1183_v45  ;;  %v1417_v54 = vmul.f32 0.5, %v1416_v14  ;;  %2968 = vrsqrt.f32 %v4146_v15  ;;  %v4154_v28 = vsel %vm1411_vm10, %v1412_v9, %v1410_v20  ;;  %v1432_v29 = vmul.f32 %v1431_v33, %v4121_v38 }
 0x39c   :  { %2970 = vrsqrt.f32 %v4140_v19  ;;  %v1644_v63 = vand.u32 2147483648, %v4154_v28  ;;  %vm1397_vm5 = vcmp.eq.f32.partialorder %v4146_v15, inf  ;;  %vm1638_vm7 = vweird.f32 %v4154_v28 }
 0x39d   :  { %v1418_v4 = vsub.f32 1.5, %v1417_v54  ;;  %v1215_v55 = vpop.xlane.xlu0 %1214  ;;  %2972 = vrcp.f32 %v4154_v28  ;;  %v1434_v31 = vsel %vm1433_vm14, %v4121_v38, %v1432_v29  ;;  %v1642_v29 = vand.u32 2147483647, %v4154_v28 }
 0x39e   :  { %v4157_v57 = vpop.eup %2966  ;;  %v4166_v11 = vsel %vm1435_vm15, %v1436_v49, %v1434_v31  ;;  %v4183_v14 = vmax.f32 %v1215_v55, 1e-18  ;;  %vm1399_vm8 = vcmp.eq.f32.partialorder %v4146_v15, 0.0  ;;  %vm1387_vm10 = vcmp.eq.f32.partialorder %v4135_v58, 0.0 }
 0x39f   :  { %v1419_v10 = vmul.f32 %v2965_v56, %v1418_v4  ;;  %v1379_v62 = vmul.f32 %v4157_v57, %v4135_v58  ;;  %v4171_v56 = vmax.f32 %v1213_v12, 1e-18  ;;  %2974 = vrcp.f32 %v4166_v11 }
 0x3a0   :  { %v1672_v54 = vand.u32 2147483647, %v4166_v11  ;;  %v1674_v20 = vand.u32 2147483648, %v4166_v11  ;;  %vm1668_vm4 = vweird.f32 %v4166_v11  ;;  %vm4233_vm12 = vcmp.eq.f32.partialorder %v1642_v29, 8.507059e+37 }
 0x3a1   :  { %v1217_v61 = vpop.xlane.xlu2 %1216  ;;  %v1420_v5 = vmul.f32 %v1419_v10, %v4125_v34  ;;  %v2969_v39 = vpop.eup %2968  ;;  %v1380_v13 = vmul.f32 %v4157_v57, %v1379_v62 }
 0x3a2   :  { %v4173_v25 = vmax.f32 %v1217_v61, 1e-18  ;;  %v4177_v44 = vpop.eup %2970  ;;  %v1391_v38 = vmul.f32 %v2969_v39, %v4146_v15  ;;  %vm4210_vm6 = vcmp.eq.f32.partialorder %v1672_v54, 8.507059e+37 }
 0x3a3   :  { %v1207_v18 = vpop.xlane.xlu1 %1206  ;;  %v1422_v1 = vsel %vm1421_vm0, %v4125_v34, %v1420_v5  ;;  %v4189_v12 = vpop.eup %2972  ;;  %v1367_v9 = vmul.f32 %v4177_v44, %v4140_v19  ;;  %v1381_v62 = vmul.f32 0.5, %v1380_v13  ;;  %v4206_v5 = vor.u32 1.1754944e-38, %v1644_v63 }
 0x3a4   :  { %2976 = vrsqrt.f32 %v4173_v25  ;;  %v4186_v59 = vsel %vm1423_vm1, %v1424_v8, %v1422_v1  ;;  %v4198_v33 = vmax.f32 %v1207_v18, 1e-18  ;;  %v1634_v55 = vmul.f32 %v4189_v12, %v4154_v28 }
 0x3a5   :  { %2978 = vrcp.f32 %v4186_v59  ;;  %v1392_v49 = vmul.f32 %v2969_v39, %v1391_v38  ;;  %v2975_v31 = vpop.eup %2974  ;;  %v1675_v38 = vor.u32 1.1754944e-38, %v1674_v20  ;;  %vm1653_vm9 = vweird.f32 %v4186_v59 }
 0x3a6   :  { %2980 = vrsqrt.f32 %v4171_v56  ;;  %v1209_v4 = vpop.xlane.xlu0 %1208  ;;  %v1635_v61 = vsub.f32 1.0, %v1634_v55  ;;  %v1664_v18 = vmul.f32 %v2975_v31, %v4166_v11  ;;  %v1382_v63 = vsub.f32 1.5, %v1381_v62 }
 0x3a7   :  { %2982 = vrsqrt.f32 %v4183_v14  ;;  %v1393_v13 = vmul.f32 0.5, %v1392_v49  ;;  %v1368_v55 = vmul.f32 %v4177_v44, %v1367_v9  ;;  %v4221_v54 = vmax.f32 %v1209_v4, 1e-18 }
 0x3a8   :  { %2984 = vrsqrt.f32 %v4198_v33  ;;  %v1665_v10 = vsub.f32 1.0, %v1664_v18  ;;  %v1636_v20 = vmul.f32 %v4189_v12, %v1635_v61  ;;  %v1657_v62 = vand.u32 2147483647, %v4186_v59 }
 0x3a9   :  { %v1211_v8 = vpop.xlane.xlu2 %1210  ;;  %v1394_v37 = vsub.f32 1.5, %v1393_v13  ;;  %vm1669_vm11 = vweird.f32 %v2975_v31  ;;  %v1383_v18 = vmul.f32 %v4157_v57, %v1382_v63  ;;  %v1659_v26 = vand.u32 2147483648, %v4186_v59 }
 0x3aa   :  { %v4216_v45 = vpop.eup %2976  ;;  %v4228_v43 = vmax.f32 %v1211_v8, 1e-18  ;;  %v1666_v9 = vmul.f32 %v2975_v31, %v1665_v10  ;;  %vm1639_vm14 = vweird.f32 %v4189_v12  ;;  %v1369_v46 = vmul.f32 0.5, %v1368_v55  ;;  %vm1670_vm15 = vmor %vm1668_vm4, %vm1669_vm11 }
 0x3ab   :  { %v2979_v34 = vpop.eup %2978  ;;  %v1355_v49 = vmul.f32 %v4216_v45, %v4173_v25  ;;  %v1395_v61 = vmul.f32 %v2969_v39, %v1394_v37  ;;  %2986 = vrsqrt.f32 %v4221_v54  ;;  %v1637_v47 = vadd.f32 %v4189_v12, %v1636_v20  ;;  %vm4266_vm4 = vmor %vm1638_vm7, %vm1639_vm14 }
 0x3ac   :  { %v4224_v21 = vpop.eup %2980  ;;  %v1649_v42 = vmul.f32 %v2979_v34, %v4186_v59  ;;  %v1667_v29 = vadd.f32 %v2975_v31, %v1666_v9  ;;  %2988 = vrsqrt.f32 %v4228_v43  ;;  %vm1654_vm0 = vweird.f32 %v2979_v34 }
 0x3ad   :  { %v4239_v13 = vpop.eup %2982  ;;  %v1396_v37 = vmul.f32 %v1395_v61, %v4146_v15  ;;  %v1356_v57 = vmul.f32 %v4216_v45, %v1355_v49  ;;  %v1384_v20 = vmul.f32 %v1383_v18, %v4135_v58  ;;  %v1370_v9 = vsub.f32 1.5, %v1369_v46 }
 0x3ae   :  { %v1650_v8 = vsub.f32 1.0, %v1649_v42  ;;  %v1203_v10 = vpop.xlane.xlu0 %1202  ;;  %v4246_v39 = vpop.eup %2984  ;;  %v1671_v63 = vsel %vm1670_vm15, %v2975_v31, %v1667_v29  ;;  %vm1373_vm1 = vcmp.eq.f32.partialorder %v4140_v19, inf  ;;  %v5687_v49 = vand.u32 2147483648, %v4146_v15 }
 0x3af   :  { %v1398_v55 = vsel %vm1397_vm5, %v4146_v15, %v1396_v37  ;;  %v4258_v61 = vmax.f32 %v1203_v10, 1e-18  ;;  %v1676_v11 = vsel %vm4210_vm6, %v1675_v38, %v1671_v63  ;;  %vm1375_vm5 = vcmp.eq.f32.partialorder %v4140_v19, 0.0  ;;  %vm1655_vm6 = vmor %vm1653_vm9, %vm1654_vm0 }
 0x3b0   :  { %v1651_v42 = vmul.f32 %v2979_v34, %v1650_v8  ;;  %v4274_v46 = vsel %vm1399_vm8, %v5687_v49, %v1398_v55  ;;  %v4278_v1 = vmul.f32 %v1676_v11, %v3841_v40  ;;  %v1660_v38 = vor.u32 1.1754944e-38, %v1659_v26 }
 0x3b1   :  { %v1641_v28 = vsel %vm4266_vm4, %v4189_v12, %v1637_v47  ;;  %2990 = vrcp.f32 %v4274_v46  ;;  %v1331_v15 = vmul.f32 %v4224_v21, %v4171_v56  ;;  %v1343_v18 = vmul.f32 %v4239_v13, %v4183_v14  ;;  %v1205_v8 = vpop.xlane.xlu2 %1204  ;;  %v4290_v40 = vpop.eup %2986 }
 0x3b2   :  { %v1652_v35 = vadd.f32 %v2979_v34, %v1651_v42  ;;  %vm1658_vm7 = vcmp.eq.f32.partialorder %v1657_v62, 8.507059e+37  ;;  %1694 = vmatpush.xpose.msrb.mxu1 %v4278_v1  ;;  %v1386_v47 = vsel %vm1385_vm13, %v4135_v58, %v1384_v20  ;;  %v1371_v59 = vmul.f32 %v4177_v44, %v1370_v9  ;;  %v4297_v29 = vpop.eup %2988 }
 0x3b3   :  { %v1357_v12 = vmul.f32 0.5, %v1356_v57  ;;  %2992 = vrsqrt.f32 %v4258_v61  ;;  %v4312_v42 = vmax.f32 %v1205_v8, 1e-18  ;;  %v1627_v44 = vand.u32 2147483647, %v4274_v46 }
 0x3b4   :  { %v1656_v10 = vsel %vm1655_vm6, %v2979_v34, %v1652_v35  ;;  %v1646_v35 = vsel %vm4233_vm12, %v4206_v5, %v1641_v28  ;;  %v5688_v34 = vand.u32 2147483648, %v4135_v58  ;;  %vm1361_vm8 = vcmp.eq.f32.partialorder %v4173_v25, inf }
 0x3b5   :  { %v1661_v26 = vsel %vm1658_vm7, %v1660_v38, %v1656_v10  ;;  %v1629_v5 = vand.u32 2147483648, %v4274_v46  ;;  %v1372_v4 = vmul.f32 %v1371_v59, %v4140_v19  ;;  %v1358_v57 = vsub.f32 1.5, %v1357_v12 }
 0x3b6   :  { %v4301_v37 = vmul.f32 %v1661_v26, %v3814_v50  ;;  %v4310_v62 = vsel %vm1387_vm10, %v5688_v34, %v1386_v47  ;;  %v4319_v50 = vmul.f32 %v4246_v39, %v4198_v33  ;;  %v4325_v63 = vmul.f32 %v4290_v40, %v4221_v54 }
 0x3b7   :  { %2994 = vrcp.f32 %v4310_v62  ;;  %v2991_v58 = vpop.eup %2990  ;;  %v4329_v55 = vmul.f32 %v4297_v29, %v4228_v43  ;;  %v4333_v20 = vmul.f32 %v1646_v35, %v3787_v22  ;;  %v1344_v9 = vmul.f32 %v4239_v13, %v1343_v18 }
 0x3b8   :  { %1695 = vmatpush.xpose.msrb.mxu1 %v4301_v37  ;;  %v1619_v11 = vmul.f32 %v2991_v58, %v4274_v46  ;;  %vm1623_vm9 = vweird.f32 %v4274_v46  ;;  %v1374_v31 = vsel %vm1373_vm1, %v4140_v19, %v1372_v4  ;;  %v1359_v49 = vmul.f32 %v4216_v45, %v1358_v57 }
 0x3b9   :  { %2996 = vrsqrt.f32 %v4312_v42  ;;  %vm4343_vm13 = vcmp.eq.f32.partialorder %v1627_v44, 8.507059e+37  ;;  %v5691_v22 = vand.u32 2147483648, %v4140_v19  ;;  %v1345_v18 = vmul.f32 0.5, %v1344_v9  ;;  %v4353_v8 = vpop.eup %2992 }
 0x3ba   :  { %v1620_v10 = vsub.f32 1.0, %v1619_v11  ;;  %v1630_v26 = vor.u32 1.1754944e-38, %v1629_v5  ;;  %vm1608_vm11 = vweird.f32 %v4310_v62  ;;  %v1612_v47 = vand.u32 2147483647, %v4310_v62 }
 0x3bb   :  { %v4351_v28 = vsel %vm1375_vm5, %v5691_v22, %v1374_v31  ;;  %v1614_v59 = vand.u32 2147483648, %v4310_v62  ;;  %v1360_v19 = vmul.f32 %v1359_v49, %v4173_v25  ;;  %v1346_v12 = vsub.f32 1.5, %v1345_v18 }
 0x3bc   :  { %2998 = vrcp.f32 %v4351_v28  ;;  %1696 = vmatpush.xpose.msrb.mxu1 %v4333_v20  ;;  %v1621_v35 = vmul.f32 %v2991_v58, %v1620_v10  ;;  %vm1624_vm12 = vweird.f32 %v2991_v58  ;;  %v1364_v44 = vand.u32 2147483648, %v4173_v25 }
 0x3bd   :  { %v2995_v45 = vpop.eup %2994  ;;  %v4365_v5 = vmul.f32 %v4353_v8, %v4258_v61  ;;  %v1362_v4 = vsel %vm1361_vm8, %v4173_v25, %v1360_v19  ;;  %vm1363_vm10 = vcmp.eq.f32.partialorder %v4173_v25, 0.0  ;;  %v1347_v57 = vmul.f32 %v4239_v13, %v1346_v12  ;;  %vm1625_vm14 = vmor %vm1623_vm9, %vm1624_vm12 }
 0x3be   :  { %v1604_v34 = vmul.f32 %v2995_v45, %v4310_v62  ;;  %v1622_v9 = vadd.f32 %v2991_v58, %v1621_v35  ;;  %v4372_v31 = vsel %vm1363_vm10, %v1364_v44, %v1362_v4  ;;  %v1332_v49 = vmul.f32 %v4224_v21, %v1331_v15 }
 0x3bf   :  { %v4375_v22 = vpop.eup %2996  ;;  %vm1609_vm15 = vweird.f32 %v2995_v45  ;;  %v1597_v18 = vand.u32 2147483647, %v4351_v28  ;;  %3000 = vrcp.f32 %v4372_v31  ;;  %vm1349_vm0 = vcmp.eq.f32.partialorder %v4183_v14, inf }
 0x3c0   :  { %v1605_v11 = vsub.f32 1.0, %v1604_v34  ;;  %v1626_v13 = vsel %vm1625_vm14, %v2991_v58, %v1622_v9  ;;  %v1348_v19 = vmul.f32 %v1347_v57, %v4183_v14  ;;  %v1333_v12 = vmul.f32 0.5, %v1332_v49  ;;  %vm1610_vm4 = vmor %vm1608_vm11, %vm1609_vm15 }
 0x3c1   :  { %v1631_v15 = vsel %vm4343_vm13, %v1630_v26, %v1626_v13  ;;  %v1599_v46 = vand.u32 2147483648, %v4351_v28  ;;  %v1352_v34 = vand.u32 2147483648, %v4183_v14  ;;  %vm1351_vm1 = vcmp.eq.f32.partialorder %v4183_v14, 0.0 }
 0x3c2   :  { %v2999_v25 = vpop.eup %2998  ;;  %v1606_v10 = vmul.f32 %v2995_v45, %v1605_v11  ;;  %v4389_v44 = vmul.f32 %v1631_v15, %v3985_v30  ;;  %v1350_v48 = vsel %vm1349_vm0, %v4183_v14, %v1348_v19  ;;  %v1615_v58 = vor.u32 1.1754944e-38, %v1614_v59 }
 0x3c3   :  { %v1589_v35 = vmul.f32 %v2999_v25, %v4351_v28  ;;  %v4396_v26 = vsel %vm1351_vm1, %v1352_v34, %v1350_v48  ;;  %v1334_v57 = vsub.f32 1.5, %v1333_v12  ;;  %vm1613_vm5 = vcmp.eq.f32.partialorder %v1612_v47, 8.507059e+37 }
 0x3c4   :  { %v1607_v4 = vadd.f32 %v2995_v45, %v1606_v10  ;;  %1697 = vmatpush.xpose.msrb.mxu1 %v4389_v44  ;;  %vm1593_vm6 = vweird.f32 %v4351_v28  ;;  %3002 = vrcp.f32 %v4396_v26  ;;  %vm1594_vm7 = vweird.f32 %v2999_v25 }
 0x3c5   :  { %v1590_v38 = vsub.f32 1.0, %v1589_v35  ;;  %v3001_v30 = vpop.eup %3000  ;;  %v1335_v62 = vmul.f32 %v4224_v21, %v1334_v57  ;;  %vm4405_vm8 = vcmp.eq.f32.partialorder %v1597_v18, 8.507059e+37  ;;  %v1600_v49 = vor.u32 1.1754944e-38, %v1599_v46  ;;  %vm1595_vm9 = vmor %vm1593_vm6, %vm1594_vm7 }
 0x3c6   :  { %v1611_v9 = vsel %vm1610_vm4, %v2995_v45, %v1607_v4  ;;  %v1574_v45 = vmul.f32 %v3001_v30, %v4372_v31  ;;  %v1582_v13 = vand.u32 2147483647, %v4372_v31  ;;  %v1584_v10 = vand.u32 2147483648, %v4372_v31 }
 0x3c7   :  { %v1616_v11 = vsel %vm1613_vm5, %v1615_v58, %v1611_v9  ;;  %v1591_v14 = vmul.f32 %v2999_v25, %v1590_v38  ;;  %v1336_v19 = vmul.f32 %v1335_v62, %v4171_v56  ;;  %vm1337_vm13 = vcmp.eq.f32.partialorder %v4171_v56, inf }
 0x3c8   :  { %v4403_v59 = vmul.f32 %v1616_v11, %v3937_v6  ;;  %v1575_v21 = vsub.f32 1.0, %v1574_v45  ;;  %v1340_v6 = vand.u32 2147483648, %v4171_v56  ;;  %v1320_v18 = vmul.f32 %v4297_v29, %v4329_v55 }
 0x3c9   :  { %v1592_v47 = vadd.f32 %v2999_v25, %v1591_v14  ;;  %vm1579_vm11 = vweird.f32 %v3001_v30  ;;  %v1338_v15 = vsel %vm1337_vm13, %v4171_v56, %v1336_v19  ;;  %vm1339_vm12 = vcmp.eq.f32.partialorder %v4171_v56, 0.0 }
 0x3ca   :  { %1698 = vmatpush.xpose.msrb.mxu1 %v4403_v59  ;;  %v3003_v35 = vpop.eup %3002  ;;  %v1576_v28 = vmul.f32 %v3001_v30, %v1575_v21  ;;  %v4424_v34 = vsel %vm1339_vm12, %v1340_v6, %v1338_v15  ;;  %v1321_v4 = vmul.f32 0.5, %v1320_v18  ;;  %v1283_v58 = vmul.f32 %v4375_v22, %v4312_v42 }
 0x3cb   :  { %v1596_v12 = vsel %vm1595_vm9, %v2999_v25, %v1592_v47  ;;  %v1559_v55 = vmul.f32 %v3003_v35, %v4396_v26  ;;  %3004 = vrcp.f32 %v4424_v34  ;;  %vm1578_vm10 = vweird.f32 %v4372_v31 }
 0x3cc   :  { %v1601_v46 = vsel %vm4405_vm8, %v1600_v49, %v1596_v12  ;;  %v1577_v25 = vadd.f32 %v3001_v30, %v1576_v28  ;;  %v1567_v56 = vand.u32 2147483647, %v4396_v26  ;;  %v1569_v57 = vand.u32 2147483648, %v4396_v26  ;;  %vm1580_vm14 = vmor %vm1578_vm10, %vm1579_vm11 }
 0x3cd   :  { %v4429_v38 = vmul.f32 %v1601_v46, %v3917_v23  ;;  %v1585_v9 = vor.u32 1.1754944e-38, %v1584_v10  ;;  %v1560_v11 = vsub.f32 1.0, %v1559_v55  ;;  %v1322_v14 = vsub.f32 1.5, %v1321_v4 }
 0x3ce   :  { %v1308_v23 = vmul.f32 %v4290_v40, %v4325_v63  ;;  %v1581_v62 = vsel %vm1580_vm14, %v3001_v30, %v1577_v25  ;;  %vm1583_vm15 = vcmp.eq.f32.partialorder %v1582_v13, 8.507059e+37  ;;  %vm1563_vm0 = vweird.f32 %v4396_v26 }
 0x3cf   :  { %1699 = vmatpush.xpose.msrb.mxu1 %v4429_v38  ;;  %vm1564_vm1 = vweird.f32 %v3003_v35  ;;  %v1586_v31 = vsel %vm1583_vm15, %v1585_v9, %v1581_v62  ;;  %v1561_v48 = vmul.f32 %v3003_v35, %v1560_v11  ;;  %v1323_v49 = vmul.f32 %v4297_v29, %v1322_v14 }
 0x3d0   :  { %v1309_v45 = vmul.f32 0.5, %v1308_v23  ;;  %v4443_v47 = vmul.f32 %v1586_v31, %v4056_v16  ;;  %vm4445_vm4 = vcmp.eq.f32.partialorder %v1567_v56, 8.507059e+37  ;;  %v1570_v19 = vor.u32 1.1754944e-38, %v1569_v57  ;;  %vm1565_vm6 = vmor %vm1563_vm0, %vm1564_vm1 }
 0x3d1   :  { %v1296_v63 = vmul.f32 %v4246_v39, %v4319_v50  ;;  %v3005_v30 = vpop.eup %3004  ;;  %v1562_v13 = vadd.f32 %v3003_v35, %v1561_v48  ;;  %v1324_v21 = vmul.f32 %v1323_v49, %v4228_v43  ;;  %vm1325_vm5 = vcmp.eq.f32.partialorder %v4228_v43, inf }
 0x3d2   :  { %v1310_v6 = vsub.f32 1.5, %v1309_v45  ;;  %v1544_v16 = vmul.f32 %v3005_v30, %v4424_v34  ;;  %vm1327_vm7 = vcmp.eq.f32.partialorder %v4228_v43, 0.0  ;;  %v1328_v29 = vand.u32 2147483648, %v4228_v43 }
 0x3d3   :  { %1700 = vmatpush.xpose.msrb.mxu1 %v4443_v47  ;;  %v1297_v50 = vmul.f32 0.5, %v1296_v63  ;;  %v1566_v18 = vsel %vm1565_vm6, %v3003_v35, %v1562_v13  ;;  %v1326_v12 = vsel %vm1325_vm5, %v4228_v43, %v1324_v21  ;;  %v1284_v46 = vmul.f32 %v4375_v22, %v1283_v58 }
 0x3d4   :  { %v1311_v15 = vmul.f32 %v4290_v40, %v1310_v6  ;;  %v1571_v28 = vsel %vm4445_vm4, %v1570_v19, %v1566_v18  ;;  %v1545_v4 = vsub.f32 1.0, %v1544_v16  ;;  %v4465_v26 = vsel %vm1327_vm7, %v1328_v29, %v1326_v12 }
 0x3d5   :  { %v1298_v55 = vsub.f32 1.5, %v1297_v50  ;;  %v4468_v25 = vmul.f32 %v1571_v28, %v4010_v41  ;;  %v1552_v56 = vand.u32 2147483647, %v4424_v34  ;;  %v1554_v35 = vand.u32 2147483648, %v4424_v34 }
 0x3d6   :  { %3006 = vrcp.f32 %v4465_v26  ;;  %v1546_v43 = vmul.f32 %v3005_v30, %v1545_v4  ;;  %vm1549_vm8 = vweird.f32 %v3005_v30  ;;  %v1312_v40 = vmul.f32 %v1311_v15, %v4221_v54 }
 0x3d7   :  { %v1299_v58 = vmul.f32 %v4246_v39, %v1298_v55  ;;  %1701 = vmatpush.xpose.msrb.mxu1 %v4468_v25  ;;  %vm1548_vm9 = vweird.f32 %v4424_v34  ;;  %vm1313_vm13 = vcmp.eq.f32.partialorder %v4221_v54, inf  ;;  %v1316_v41 = vand.u32 2147483648, %v4221_v54 }
 0x3d8   :  { %v1285_v57 = vmul.f32 0.5, %v1284_v46  ;;  %v1547_v9 = vadd.f32 %v3005_v30, %v1546_v43  ;;  %v1314_v11 = vsel %vm1313_vm13, %v4221_v54, %v1312_v40  ;;  %vm1315_vm11 = vcmp.eq.f32.partialorder %v4221_v54, 0.0  ;;  %vm1550_vm12 = vmor %vm1548_vm9, %vm1549_vm8 }
 0x3d9   :  { %v1300_v14 = vmul.f32 %v1299_v58, %v4198_v33  ;;  %v1555_v23 = vor.u32 1.1754944e-38, %v1554_v35  ;;  %v1317_v62 = vsel %vm1315_vm11, %v1316_v41, %v1314_v11  ;;  %v1272_v31 = vmul.f32 %v4353_v8, %v4365_v5 }
 0x3da   :  { %v1286_v39 = vsub.f32 1.5, %v1285_v57  ;;  %v1551_v34 = vsel %vm1550_vm12, %v3005_v30, %v1547_v9  ;;  %vm1553_vm10 = vcmp.eq.f32.partialorder %v1552_v56, 8.507059e+37  ;;  %3008 = vrcp.f32 %v1317_v62 }
 0x3db   :  { %vm1301_vm14 = vcmp.eq.f32.partialorder %v4198_v33, inf  ;;  %v1556_v49 = vsel %vm1553_vm10, %v1555_v23, %v1551_v34  ;;  %v1304_v54 = vand.u32 2147483648, %v4198_v33  ;;  %vm1303_vm15 = vcmp.eq.f32.partialorder %v4198_v33, 0.0 }
 0x3dc   :  { %v3007_v48 = vpop.eup %3006  ;;  %v1302_v45 = vsel %vm1301_vm14, %v4198_v33, %v1300_v14  ;;  %v1287_v10 = vmul.f32 %v4375_v22, %v1286_v39  ;;  %v4489_v19 = vmul.f32 %v1556_v49, %v4001_v24  ;;  %v1537_v5 = vand.u32 2147483647, %v4465_v26 }
 0x3dd   :  { %v1529_v63 = vmul.f32 %v3007_v48, %v4465_v26  ;;  %v4494_v30 = vsel %vm1303_vm15, %v1304_v54, %v1302_v45  ;;  %v1273_v21 = vmul.f32 0.5, %v1272_v31  ;;  %vm1289_vm0 = vcmp.eq.f32.partialorder %v4312_v42, inf }
 0x3de   :  { %v1288_v13 = vmul.f32 %v1287_v10, %v4312_v42  ;;  %1702 = vmatpush.xpose.msrb.mxu1 %v4489_v19  ;;  %3010 = vrcp.f32 %v4494_v30  ;;  %v1292_v24 = vand.u32 2147483648, %v4312_v42  ;;  %v1539_v22 = vand.u32 2147483648, %v4465_v26 }
 0x3df   :  { %v1530_v6 = vsub.f32 1.0, %v1529_v63  ;;  %vm1291_vm1 = vcmp.eq.f32.partialorder %v4312_v42, 0.0  ;;  %v1274_v16 = vsub.f32 1.5, %v1273_v21  ;;  %vm1534_vm4 = vweird.f32 %v3007_v48 }
 0x3e0   :  { %v1290_v33 = vsel %vm1289_vm0, %v4312_v42, %v1288_v13  ;;  %v3009_v29 = vpop.eup %3008  ;;  %v1522_v18 = vand.u32 2147483647, %v1317_v62  ;;  %vm1533_vm5 = vweird.f32 %v4465_v26  ;;  %v1524_v28 = vand.u32 2147483648, %v1317_v62 }
 0x3e1   :  { %v1531_v50 = vmul.f32 %v3007_v48, %v1530_v6  ;;  %v1293_v12 = vsel %vm1291_vm1, %v1292_v24, %v1290_v33  ;;  %v1514_v15 = vmul.f32 %v3009_v29, %v1317_v62  ;;  %vm1535_vm6 = vmor %vm1533_vm5, %vm1534_vm4  ;;  %v1540_v4 = vor.u32 1.1754944e-38, %v1539_v22 }
 0x3e2   :  { %3012 = vrcp.f32 %v1293_v12  ;;  %v1275_v56 = vmul.f32 %v4353_v8, %v1274_v16  ;;  %vm1538_vm7 = vcmp.eq.f32.partialorder %v1537_v5, 8.507059e+37  ;;  %vm1518_vm8 = vweird.f32 %v1317_v62 }
 0x3e3   :  { %v1532_v46 = vadd.f32 %v3007_v48, %v1531_v50  ;;  %v1515_v55 = vsub.f32 1.0, %v1514_v15  ;;  %vm4506_vm9 = vcmp.eq.f32.partialorder %v1522_v18, 8.507059e+37  ;;  %vm1519_vm13 = vweird.f32 %v3009_v29 }
 0x3e4   :  { %v3011_v35 = vpop.eup %3010  ;;  %v1525_v57 = vor.u32 1.1754944e-38, %v1524_v28  ;;  %v1507_v9 = vand.u32 2147483647, %v4494_v30  ;;  %v1276_v8 = vmul.f32 %v1275_v56, %v4258_v61  ;;  %vm1277_vm11 = vcmp.eq.f32.partialorder %v4258_v61, inf  ;;  %vm1520_vm12 = vmor %vm1518_vm8, %vm1519_vm13 }
 0x3e5   :  { %v1536_v43 = vsel %vm1535_vm6, %v3007_v48, %v1532_v46  ;;  %v1516_v58 = vmul.f32 %v3009_v29, %v1515_v55  ;;  %v1499_v41 = vmul.f32 %v3011_v35, %v4494_v30  ;;  %v1280_v39 = vand.u32 2147483648, %v4258_v61 }
 0x3e6   :  { %v1541_v40 = vsel %vm1538_vm7, %v1540_v4, %v1536_v43  ;;  %v1509_v31 = vand.u32 2147483648, %v4494_v30  ;;  %v1278_v34 = vsel %vm1277_vm11, %v4258_v61, %v1276_v8  ;;  %vm1279_vm10 = vcmp.eq.f32.partialorder %v4258_v61, 0.0 }
 0x3e7   :  { %v4512_v26 = vmul.f32 %v1541_v40, %v4099_v3  ;;  %v1517_v14 = vadd.f32 %v3009_v29, %v1516_v58  ;;  %v1500_v23 = vsub.f32 1.0, %v1499_v41  ;;  %vm1504_vm14 = vweird.f32 %v3011_v35 }
 0x3e8   :  { %v3013_v11 = vpop.eup %3012  ;;  %v1281_v45 = vsel %vm1279_vm10, %v1280_v39, %v1278_v34  ;;  %vm1503_vm15 = vweird.f32 %v4494_v30  ;;  %v1494_v5 = vand.u32 2147483648, %v1293_v12  ;;  %v1510_v13 = vor.u32 1.1754944e-38, %v1509_v31 }
 0x3e9   :  { %1703 = vmatpush.xpose.msrb.mxu1 %v4512_v26  ;;  %v1484_v3 = vmul.f32 %v3013_v11, %v1293_v12  ;;  %v1521_v48 = vsel %vm1520_vm12, %v3009_v29, %v1517_v14  ;;  %v1501_v49 = vmul.f32 %v3011_v35, %v1500_v23  ;;  %3014 = vrcp.f32 %v1281_v45  ;;  %vm1505_vm0 = vmor %vm1503_vm15, %vm1504_vm14 }
 0x3ea   :  { %v1526_v54 = vsel %vm4506_vm9, %v1525_v57, %v1521_v48  ;;  %vm1489_vm1 = vweird.f32 %v3013_v11  ;;  %v1492_v61 = vand.u32 2147483647, %v1293_v12  ;;  %vm1508_vm4 = vcmp.eq.f32.partialorder %v1507_v9, 8.507059e+37 }
 0x3eb   :  { %v1485_v10 = vsub.f32 1.0, %v1484_v3  ;;  %v4526_v63 = vmul.f32 %v1526_v54, %v4088_v7  ;;  %v1502_v62 = vadd.f32 %v3011_v35, %v1501_v49  ;;  %vm1488_vm5 = vweird.f32 %v1293_v12 }
 0x3ec   :  { %vm1490_vm6 = vmor %vm1488_vm5, %vm1489_vm1  ;;  %v1495_v7 = vor.u32 1.1754944e-38, %v1494_v5  ;;  %vm1493_vm7 = vcmp.eq.f32.partialorder %v1492_v61, 8.507059e+37  ;;  %v1479_v46 = vand.u32 2147483648, %v1281_v45  ;;  %vm1473_vm9 = vweird.f32 %v1281_v45 }
 0x3ed   :  { %v1486_v21 = vmul.f32 %v3013_v11, %v1485_v10  ;;  %1704 = vmatpush.xpose.msrb.mxu1 %v4526_v63  ;;  %v1506_v6 = vsel %vm1505_vm0, %v3011_v35, %v1502_v62 }
 0x3ee   :  { %v1511_v24 = vsel %vm1508_vm4, %v1510_v13, %v1506_v6  ;;  %v1480_v4 = vor.u32 1.1754944e-38, %v1479_v46 }
 0x3ef   :  { %v1487_v22 = vadd.f32 %v3013_v11, %v1486_v21  ;;  %v4531_v33 = vmul.f32 %v1511_v24, %v4073_v60  ;;  %v3015_v16 = vpop.eup %3014  ;;  %v1477_v60 = vand.u32 2147483647, %v1281_v45 }
 0x3f0   :  { %v1469_v50 = vmul.f32 %v3015_v16, %v1281_v45  ;;  %vm1474_vm8 = vweird.f32 %v3015_v16 }
 0x3f1   :  { %v1491_v30 = vsel %vm1490_vm6, %v3013_v11, %v1487_v22  ;;  %1705 = vmatpush.xpose.msrb.mxu1 %v4531_v33  ;;  %vm1475_vm13 = vmor %vm1473_vm9, %vm1474_vm8  ;;  %vm1478_vm11 = vcmp.eq.f32.partialorder %v1477_v60, 8.507059e+37 }
 0x3f2   :  { %v1496_v29 = vsel %vm1493_vm7, %v1495_v7, %v1491_v30  ;;  %v1470_v15 = vsub.f32 1.0, %v1469_v50 }
 0x3f3   :  { %v4535_v18 = vmul.f32 %v1496_v29, %v4112_v2 }
 0x3f4   :  { %v1471_v12 = vmul.f32 %v3015_v16, %v1470_v15 }
 0x3f5   :  { %1706 = vmatpush.xpose.msrb.mxu1 %v4535_v18 }
 0x3f6   :  { %v1472_v28 = vadd.f32 %v3015_v16, %v1471_v12 }
 0x3f8   :  { %v1476_v55 = vsel %vm1475_vm13, %v3015_v16, %v1472_v28 }
 0x3f9   :  { %v1481_v56 = vsel %vm1478_vm11, %v1480_v4, %v1476_v55 }
 0x3fa   :  { %v4539_v35 = vmul.f32 %v1481_v56, %v4109_v53 }
 0x3fc   :  { %1707 = vmatpush.xpose.msrb.mxu1 %v4539_v35 }
 0x405   :  { %v1199_v2 = vpop.xlane.xlu2 %1198 }
 0x406   :  { %v1230_v43 = vmax.f32 %v1199_v2, 1e-18 }
 0x408   :  { %3016 = vrsqrt.f32 %v1230_v43  ;;  %vm1253_vm12 = vcmp.eq.f32.partialorder %v1230_v43, inf  ;;  %v1256_v49 = vand.u32 2147483648, %v1230_v43  ;;  %vm1255_vm14 = vcmp.eq.f32.partialorder %v1230_v43, 0.0 }
 0x40e   :  { %v1201_v42 = vpop.xlane.xlu1 %1200  ;;  %v3017_v58 = vpop.eup %3016 }
 0x40f   :  { %v1231_v40 = vmax.f32 %v1201_v42, 1e-18  ;;  %v1247_v41 = vmul.f32 %v3017_v58, %v1230_v43 }
 0x411   :  { %3018 = vrsqrt.f32 %v1231_v40  ;;  %v1248_v8 = vmul.f32 %v3017_v58, %v1247_v41  ;;  %vm1265_vm10 = vcmp.eq.f32.partialorder %v1231_v40, inf  ;;  %v1268_v45 = vand.u32 2147483648, %v1231_v40 }
 0x412   :  { %vm1267_vm15 = vcmp.eq.f32.partialorder %v1231_v40, 0.0 }
 0x413   :  { %v1249_v14 = vmul.f32 0.5, %v1248_v8 }
 0x415   :  { %v1250_v39 = vsub.f32 1.5, %v1249_v14  ;;  %v4596_v14 = vstv %s2766_s18 }
 0x417   :  { %v3019_v57 = vpop.eup %3018  ;;  %v1251_v53 = vmul.f32 %v3017_v58, %v1250_v39 }
 0x418   :  { %v1259_v9 = vmul.f32 %v3019_v57, %v1231_v40 }
 0x419   :  { %v1252_v34 = vmul.f32 %v1251_v53, %v1230_v43 }
 0x41a   :  { %v1260_v11 = vmul.f32 %v3019_v57, %v1259_v9 }
 0x41b   :  { %v1254_v54 = vsel %vm1253_vm12, %v1230_v43, %v1252_v34  ;;  %v2856_v34 = vld [vmem:[%s5608_s3 + $0x10] sm:$0xff]  }
 0x41c   :  { %v1261_v23 = vmul.f32 0.5, %v1260_v11  ;;  %v1257_v62 = vsel %vm1255_vm14, %v1256_v49, %v1254_v54 }
 0x41d   :  { %3020 = vrcp.f32 %v1257_v62  ;;  %vm1443_vm4 = vweird.f32 %v1257_v62  ;;  %v1449_v15 = vand.u32 2147483648, %v1257_v62  ;;  %v1447_v12 = vand.u32 2147483647, %v1257_v62 }
 0x41e   :  { %v1262_v31 = vsub.f32 1.5, %v1261_v23 }
 0x41f   :  { %v1450_v56 = vor.u32 1.1754944e-38, %v1449_v15  ;;  %vm1448_vm9 = vcmp.eq.f32.partialorder %v1447_v12, 8.507059e+37 }
 0x420   :  { %v1263_v3 = vmul.f32 %v3019_v57, %v1262_v31  ;;  %v4606_v31 = vstv %s1824_s2 }
 0x422   :  { %v1264_v48 = vmul.f32 %v1263_v3, %v1231_v40 }
 0x423   :  { %v3021_v13 = vpop.eup %3020 }
 0x424   :  { %v1266_v10 = vsel %vm1265_vm10, %v1231_v40, %v1264_v48  ;;  %v1439_v61 = vmul.f32 %v3021_v13, %v1257_v62  ;;  %vm1444_vm0 = vweird.f32 %v3021_v13  ;;  %v2855_v40 = vld [vmem:[%s5608_s3 + $0x8] sm:$0xff]  }
 0x425   :  { %v1269_v5 = vsel %vm1267_vm15, %v1268_v45, %v1266_v10  ;;  %vm1445_vm6 = vmor %vm1443_vm4, %vm1444_vm0  ;;  %v2829_v11 = vunpack.c.l.bf16 %v2855_v40  ;;  %v2830_v3 = vunpack.c.h.bf16 %v2855_v40 }
 0x426   :  { %3022 = vrcp.f32 %v1269_v5  ;;  %v1440_v24 = vsub.f32 1.0, %v1439_v61  ;;  %v1464_v7 = vand.u32 2147483648, %v1269_v5  ;;  %v1462_v29 = vand.u32 2147483647, %v1269_v5 }
 0x427   :  { %vm1458_vm5 = vweird.f32 %v1269_v5  ;;  %v1810_v62 = vmul.f32 %v2829_v11, %v4596_v14  ;;  %v2833_v61 = vunpack.c.l.bf16 %v2856_v34 }
 0x428   :  { %v1441_v16 = vmul.f32 %v3021_v13, %v1440_v24  ;;  %v1465_v60 = vor.u32 1.1754944e-38, %v1464_v7  ;;  %vm1463_vm8 = vcmp.eq.f32.partialorder %v1462_v29, 8.507059e+37  ;;  %v1811_v24 = vmul.f32 %v2830_v3, %v4596_v14 }
 0x429   :  { %v2834_v29 = vunpack.c.h.bf16 %v2856_v34 }
 0x42a   :  { %v1442_v50 = vadd.f32 %v3021_v13, %v1441_v16 }
 0x42c   :  { %v3023_v21 = vpop.eup %3022  ;;  %v1446_v4 = vsel %vm1445_vm6, %v3021_v13, %v1442_v50 }
 0x42d   :  { %v1454_v6 = vmul.f32 %v3023_v21, %v1269_v5  ;;  %vm1459_vm1 = vweird.f32 %v3023_v21  ;;  %v1451_v43 = vsel %vm1448_vm9, %v1450_v56, %v1446_v4 }
 0x42e   :  { %vm1460_vm7 = vmor %vm1458_vm5, %vm1459_vm1  ;;  %v1678_v42 = vmul.f32 %v1451_v43, %v4128_v27 }
 0x42f   :  { %v1455_v22 = vsub.f32 1.0, %v1454_v6  ;;  %v2857_v6 = vld [vmem:[%s5608_s3 + $0x18] sm:$0xff]  }
 0x430   :  { %v2837_v15 = vunpack.c.l.bf16 %v2857_v6 }
 0x431   :  { %v1456_v30 = vmul.f32 %v3023_v21, %v1455_v22 }
 0x433   :  { %v1457_v46 = vadd.f32 %v3023_v21, %v1456_v30 }
 0x435   :  { %v1461_v28 = vsel %vm1460_vm7, %v3023_v21, %v1457_v46 }
 0x436   :  { %v1466_v55 = vsel %vm1463_vm8, %v1465_v60, %v1461_v28  ;;  %v1812_v28 = vmul.f32 %v2833_v61, %v4596_v14 }
 0x437   :  { %v1679_v2 = vmul.f32 %v1466_v55, %v4138_v0 }
 0x439   :  { %1708 = vmatpush.xpose.msrb.mxu1 %v1679_v2 }
 0x43d   :  { %1709 = vmatpush.xpose.msrb.mxu1 %v1678_v42 }
 0x440   :  { %1710 = vmatmul.f32.vlgmr.msrb.gmra.mxu1 %v1678_v42 }
 0x448   :  { %1713 = vmatmul.f32.gmra.mxu1 %v1679_v2 }
 0x450   :  { %1716 = vmatmul.f32.gmra.mxu1 %v4539_v35  ;;  %v2824_v35 = vld [vmem:[%s5608_s3] sm:$0xff]  }
 0x451   :  { %v2826_v41 = vunpack.c.h.bf16 %v2824_v35  ;;  %v2825_v9 = vunpack.c.l.bf16 %v2824_v35 }
 0x453   :  { %v1809_v49 = vmul.f32 %v2826_v41, %v4596_v14  ;;  %v1808_v10 = vmul.f32 %v2825_v9, %v4596_v14  ;;  %v2859_v9 = vld [vmem:[%s5608_s3 + $0x28] sm:$0xff]  }
 0x458   :  { %1719 = vmatmul.f32.gmra.mxu1 %v4535_v18 }
 0x460   :  { %1722 = vmatmul.f32.gmra.mxu1 %v4531_v33 }
 0x468   :  { %1725 = vmatmul.f32.gmra.mxu1 %v4526_v63 }
 0x470   :  { %1728 = vmatmul.f32.gmra.mxu1 %v4512_v26 }
 0x478   :  { %1731 = vmatmul.f32.gmra.mxu1 %v4489_v19 }
 0x480   :  { %1734 = vmatmul.f32.gmra.mxu1 %v4468_v25 }
 0x488   :  { %1737 = vmatmul.f32.gmra.mxu1 %v4443_v47 }
 0x490   :  { %1740 = vmatmul.f32.gmra.mxu1 %v4429_v38 }
 0x498   :  { %1743 = vmatmul.f32.gmra.mxu1 %v4403_v59 }
 0x4a0   :  { %1746 = vmatmul.f32.gmra.mxu1 %v4389_v44  ;;  %v5698_v44 = vlaneseq }
 0x4a8   :  { %1749 = vmatmul.f32.gmra.mxu1 %v4333_v20  ;;  %v4565_v20 = vshrl.u32 %v5698_v44, 7 }
 0x4aa   :  { %v4573_v18 = vadd.s32 16, %v4565_v20  ;;  %v4584_v58 = vadd.s32 24, %v4565_v20  ;;  %vm798_vm11 = vcmp.eq.s32.totalorder %v4565_v20, %v3514_v17  ;;  %v4591_v57 = vadd.s32 32, %v4565_v20 }
 0x4ab   :  { %v4601_v23 = vadd.s32 40, %v4565_v20  ;;  %v4621_v54 = vadd.s32 48, %v4565_v20  ;;  %v4640_v7 = vadd.s32 56, %v4565_v20  ;;  %v4651_v46 = vadd.s32 64, %v4565_v20 }
 0x4ac   :  { %vm800_vm12 = vcmp.eq.s32.totalorder %v4573_v18, %v3514_v17  ;;  %vm801_vm10 = vcmp.eq.s32.totalorder %v4584_v58, %v3514_v17  ;;  %vm802_vm14 = vcmp.eq.s32.totalorder %v4591_v57, %v3514_v17  ;;  %v4665_v56 = vadd.s32 72, %v4565_v20 }
 0x4ad   :  { %vm803_vm15 = vcmp.eq.s32.totalorder %v4601_v23, %v3514_v17  ;;  %vm804_vm0 = vcmp.eq.s32.totalorder %v4621_v54, %v3514_v17  ;;  %vm5638_vm1 = vcmp.eq.s32.totalorder %v4640_v7, %v3514_v17  ;;  %vm5637_vm4 = vcmp.eq.s32.totalorder %v4651_v46, %v3514_v17 }
 0x4ae   :  { %vm5636_vm5 = vcmp.eq.s32.totalorder %v4665_v56, %v3514_v17 }
 0x4b0   :  { %1752 = vmatmul.f32.gmra.mxu1 %v4301_v37  ;;  %v4568_v37 = vadd.s32 8, %v4565_v20 }
 0x4b2   :  { %vm799_vm13 = vcmp.eq.s32.totalorder %v4568_v37, %v3514_v17 }
 0x4b8   :  { %1755 = vmatmul.f32.gmra.mxu1 %v4278_v1 }
 0x4bd   :  { %v1711_v27 = vpop.f32.mrf.mxu1 }
 0x4be   :  { %v1759_v39 = vsel %vm798_vm11, 0.0, %v1711_v27  ;;  %v1813_v27 = vmul.f32 %v2834_v29, %v4596_v14 }
 0x4bf   :  { %v1826_v13 = vmul.f32 %v4606_v31, %v1759_v39 }
 0x4c1   :  { %v4653_v12 = vadd.f32 %v1826_v13, %v1808_v10 }
 0x4c5   :  { %v1714_v0 = vpop.f32.mrf.mxu1 }
 0x4c6   :  { %v1760_v8 = vsel %vm799_vm13, 0.0, %v1714_v0 }
 0x4c7   :  { %v1827_v45 = vmul.f32 %v4606_v31, %v1760_v8  ;;  %v4696_v8 = vadd.s32 88, %v4565_v20 }
 0x4c9   :  { %v4642_v16 = vadd.f32 %v1827_v45, %v1809_v49  ;;  %v4710_v49 = vadd.s32 96, %v4565_v20  ;;  %vm5634_vm7 = vcmp.eq.s32.totalorder %v4696_v8, %v3514_v17 }
 0x4cb   :  { %v1858_v43 = vadd.f32 %v4642_v16, %v4653_v12  ;;  %vm5633_vm8 = vcmp.eq.s32.totalorder %v4710_v49, %v3514_v17 }
 0x4cd   :  { %v1717_v26 = vpop.f32.mrf.mxu1 }
 0x4ce   :  { %v1761_v53 = vsel %vm800_vm12, 0.0, %v1717_v26  ;;  %v2858_v26 = vld [vmem:[%s5608_s3 + $0x20] sm:$0xff]  }
 0x4cf   :  { %v1828_v21 = vmul.f32 %v4606_v31, %v1761_v53  ;;  %v2841_v41 = vunpack.c.l.bf16 %v2858_v26  ;;  %v2842_v53 = vunpack.c.h.bf16 %v2858_v26 }
 0x4d1   :  { %v4655_v60 = vadd.f32 %v1828_v21, %v1810_v62  ;;  %v2845_v62 = vunpack.c.l.bf16 %v2859_v9  ;;  %v4724_v21 = vadd.s32 104, %v4565_v20 }
 0x4d3   :  { %vm5632_vm9 = vcmp.eq.s32.totalorder %v4724_v21, %v3514_v17 }
 0x4d5   :  { %v1720_v19 = vpop.f32.mrf.mxu1 }
 0x4d6   :  { %v1762_v5 = vsel %vm801_vm10, 0.0, %v1720_v19  ;;  %v1814_v19 = vmul.f32 %v2837_v15, %v4596_v14  ;;  %v4741_v15 = vadd.s32 112, %v4565_v20 }
 0x4d7   :  { %v1829_v30 = vmul.f32 %v4606_v31, %v1762_v5  ;;  %v1816_v5 = vmul.f32 %v2841_v41, %v4596_v14 }
 0x4d8   :  { %vm5631_vm3 = vcmp.eq.s32.totalorder %v4741_v15, %v3514_v17 }
 0x4d9   :  { %v4669_v42 = vadd.f32 %v1829_v30, %v1811_v24  ;;  %v1817_v24 = vmul.f32 %v2842_v53, %v4596_v14  ;;  %v2860_v30 = vld [vmem:[%s5608_s3 + $0x30] sm:$0xff]  }
 0x4dd   :  { %v1723_v63 = vpop.f32.mrf.mxu1 }
 0x4de   :  { %v1763_v22 = vsel %vm802_vm14, 0.0, %v1723_v63  ;;  %v2838_v63 = vunpack.c.h.bf16 %v2857_v6 }
 0x4df   :  { %v1830_v4 = vmul.f32 %v4606_v31, %v1763_v22  ;;  %v2846_v22 = vunpack.c.h.bf16 %v2859_v9 }
 0x4e0   :  { %v1815_v3 = vmul.f32 %v2838_v63, %v4596_v14  ;;  %v2850_v63 = vunpack.c.h.bf16 %v2860_v30 }
 0x4e1   :  { %v4683_v44 = vadd.f32 %v1830_v4, %v1812_v28  ;;  %v1818_v4 = vmul.f32 %v2845_v62, %v4596_v14  ;;  %v1819_v26 = vmul.f32 %v2846_v22, %v4596_v14 }
 0x4e5   :  { %v1726_v25 = vpop.f32.mrf.mxu1 }
 0x4e6   :  { %v1764_v50 = vsel %vm803_vm15, 0.0, %v1726_v25  ;;  %v4680_v25 = vadd.s32 80, %v4565_v20 }
 0x4e7   :  { %v1831_v0 = vmul.f32 %v4606_v31, %v1764_v50 }
 0x4e8   :  { %vm5635_vm6 = vcmp.eq.s32.totalorder %v4680_v25, %v3514_v17 }
 0x4e9   :  { %v4699_v39 = vadd.f32 %v1831_v0, %v1813_v27  ;;  %v2849_v27 = vunpack.c.l.bf16 %v2860_v30  ;;  %v2861_v0 = vld [vmem:[%s5608_s3 + $0x38] sm:$0xff]  }
 0x4ea   :  { %v2853_v41 = vunpack.c.l.bf16 %v2861_v0 }
 0x4ed   :  { %v1729_v33 = vpop.f32.mrf.mxu1 }
 0x4ee   :  { %v1765_v55 = vsel %vm804_vm0, 0.0, %v1729_v33  ;;  %v1859_v33 = vadd.f32 %v1858_v43, %v4655_v60 }
 0x4ef   :  { %v1832_v35 = vmul.f32 %v4606_v31, %v1765_v55 }
 0x4f0   :  { %v1860_v11 = vadd.f32 %v1859_v33, %v4669_v42 }
 0x4f1   :  { %v4713_v10 = vadd.f32 %v1832_v35, %v1814_v19 }
 0x4f2   :  { %v1861_v45 = vadd.f32 %v1860_v11, %v4683_v44 }
 0x4f4   :  { %v1862_v6 = vadd.f32 %v1861_v45, %v4699_v39 }
 0x4f5   :  { %v4558_v47 = vpop.f32.mrf.mxu1 }
 0x4f6   :  { %v1766_v40 = vsel %vm5638_vm1, 0.0, %v4558_v47  ;;  %v1863_v28 = vadd.f32 %v1862_v6, %v4713_v10 }
 0x4f7   :  { %v1833_v34 = vmul.f32 %v4606_v31, %v1766_v40 }
 0x4f9   :  { %v4735_v29 = vadd.f32 %v1833_v34, %v1815_v3  ;;  %v1821_v3 = vmul.f32 %v2850_v63, %v4596_v14 }
 0x4fd   :  { %v4560_v38 = vpop.f32.mrf.mxu1 }
 0x4fe   :  { %v1767_v47 = vsel %vm5637_vm4, 0.0, %v4560_v38 }
 0x4ff   :  { %v1834_v13 = vmul.f32 %v4606_v31, %v1767_v47 }
 0x501   :  { %v4749_v55 = vadd.f32 %v1834_v13, %v1816_v5  ;;  %v4784_v5 = vadd.s32 120, %v4565_v20  ;;  %v1822_v13 = vmul.f32 %v2853_v41, %v4596_v14 }
 0x503   :  { %vm813_vm2 = vcmp.eq.s32.totalorder %v4784_v5, %v3514_v17 }
 0x505   :  { %v4562_v59 = vpop.f32.mrf.mxu1 }
 0x506   :  { %v1768_v38 = vsel %vm5636_vm5, 0.0, %v4562_v59 }
 0x507   :  { %v1835_v50 = vmul.f32 %v4606_v31, %v1768_v38 }
 0x509   :  { %v4762_v33 = vadd.f32 %v1835_v50, %v1817_v24  ;;  %v2854_v24 = vunpack.c.h.bf16 %v2861_v0  ;;  %v1891_v0 = vmax.f32 %v4653_v12, %v4683_v44 }
 0x50d   :  { %v4570_v1 = vpop.f32.mrf.mxu1 }
 0x50e   :  { %v1769_v59 = vsel %vm5635_vm6, 0.0, %v4570_v1 }
 0x50f   :  { %v1836_v43 = vmul.f32 %v4606_v31, %v1769_v59 }
 0x511   :  { %v4771_v11 = vadd.f32 %v1836_v43, %v1818_v4  ;;  %v1823_v4 = vmul.f32 %v2854_v24, %v4596_v14  ;;  %v1892_v43 = vmax.f32 %v4642_v16, %v4699_v39 }
 0x515   :  { %v4614_v48 = vpop.f32.mrf.mxu1 }
 0x516   :  { %v1770_v1 = vsel %vm5634_vm7, 0.0, %v4614_v48  ;;  %v1864_v48 = vadd.f32 %v1863_v28, %v4735_v29 }
 0x517   :  { %v1837_v35 = vmul.f32 %v4606_v31, %v1770_v1 }
 0x518   :  { %v1865_v9 = vadd.f32 %v1864_v48, %v4749_v55  ;;  %v1896_v48 = vmax.f32 %v1892_v43, %v4762_v33 }
 0x519   :  { %v4780_v38 = vadd.f32 %v1837_v35, %v1819_v26  ;;  %v1893_v26 = vmax.f32 %v4655_v60, %v4713_v10  ;;  %v1895_v35 = vmax.f32 %v1891_v0, %v4749_v55 }
 0x51a   :  { %v1866_v45 = vadd.f32 %v1865_v9, %v4762_v33 }
 0x51c   :  { %v1867_v59 = vadd.f32 %v1866_v45, %v4771_v11 }
 0x51d   :  { %v1747_v2 = vpop.f32.mrf.mxu1 }
 0x51e   :  { %v1771_v19 = vsel %vm5633_vm8, 0.0, %v1747_v2  ;;  %v1820_v2 = vmul.f32 %v2849_v27, %v4596_v14  ;;  %v1868_v30 = vadd.f32 %v1867_v59, %v4780_v38  ;;  %v1894_v14 = vmax.f32 %v4669_v42, %v4735_v29 }
 0x51f   :  { %v1838_v47 = vmul.f32 %v4606_v31, %v1771_v19 }
 0x525   :  { %v1750_v61 = vpop.f32.mrf.mxu1 }
 0x526   :  { %v1772_v40 = vsel %vm5632_vm9, 0.0, %v1750_v61  ;;  %v4787_v61 = vadd.f32 %v1838_v47, %v1820_v2  ;;  %v1898_v2 = vmax.f32 %v1894_v14, %v4780_v38 }
 0x527   :  { %v1839_v62 = vmul.f32 %v4606_v31, %v1772_v40  ;;  %v1897_v40 = vmax.f32 %v1893_v26, %v4771_v11 }
 0x528   :  { %v1869_v1 = vadd.f32 %v1868_v30, %v4787_v61 }
 0x529   :  { %v4791_v22 = vadd.f32 %v1839_v62, %v1821_v3 }
 0x52b   :  { %v1870_v63 = vadd.f32 %v1869_v1, %v4791_v22  ;;  %v1900_v47 = vmax.f32 %v1896_v48, %v4791_v22 }
 0x52d   :  { %v1753_v53 = vpop.f32.mrf.mxu1 }
 0x52e   :  { %v1773_v34 = vsel %vm5631_vm3, 0.0, %v1753_v53  ;;  %v1899_v53 = vmax.f32 %v1895_v35, %v4787_v61 }
 0x52f   :  { %v1840_v6 = vmul.f32 %v4606_v31, %v1773_v34 }
 0x530   :  { %v1903_v45 = vmax.f32 %v1899_v53, %v1900_v47 }
 0x531   :  { %v4796_v50 = vadd.f32 %v1840_v6, %v1822_v13  ;;  %v3174_v6 = vmov 16384.0  }
 0x532   :  { %3024 = vrcp.f32 %v3174_v6 }
 0x533   :  { %v1871_v9 = vadd.f32 %v1870_v63, %v4796_v50  ;;  %v1901_v3 = vmax.f32 %v1897_v40, %v4796_v50 }
 0x535   :  { %v1756_v28 = vpop.f32.mrf.mxu1 }
 0x536   :  { %v1774_v27 = vsel %vm813_vm2, 0.0, %v1756_v28 }
 0x537   :  { %v1841_v19 = vmul.f32 %v4606_v31, %v1774_v27 }
 0x538   :  { %v3025_v24 = vpop.eup %3024 }
 0x539   :  { %v4816_v41 = vadd.f32 %v1841_v19, %v1823_v4  ;;  %v1883_v59 = vmul.f32 16384.0, %v3025_v24  ;;  %vm1887_vm3 = vweird.f32 %v3025_v24 }
 0x53b   :  { %v1872_v31 = vadd.f32 %v1871_v9, %v4816_v41  ;;  %v1902_v34 = vmax.f32 %v1898_v2, %v4816_v41  ;;  %v1884_v30 = vsub.f32 1.0, %v1883_v59 }
 0x53d   :  { %1873 = vadd.xlane.f32.xlu0 %v1872_v31  ;;  %v1904_v62 = vmax.f32 %v1901_v3, %v1902_v34  ;;  %v1885_v43 = vmul.f32 %v3025_v24, %v1884_v30 }
 0x53f   :  { %v1905_v13 = vmax.f32 %v1903_v45, %v1904_v62  ;;  %v1886_v14 = vadd.f32 %v3025_v24, %v1885_v43 }
 0x541   :  { %1906 = vmax.xlane.f32.xlu1 %v1905_v13  ;;  %v1888_v9 = vsel %vm1887_vm3, %v3025_v24, %v1886_v14 }
 0x5b0   :  { %v1874_v28 = vpop.xlane.xlu0 %1873 }
 0x5b1   :  { %v1875_v4 = vrot.slane %v1874_v28, 4 }
 0x5b3   :  { %v1876_v1 = vadd.f32 %v1875_v4, %v1874_v28 }
 0x5b4   :  { %v1907_v27 = vpop.xlane.xlu1 %1906 }
 0x5b5   :  { %v1877_v0 = vrot.slane %v1876_v1, 2  ;;  %v1908_v26 = vrot.slane %v1907_v27, 4 }
 0x5b7   :  { %v1909_v19 = vmax.f32 %v1907_v27, %v1908_v26  ;;  %v1878_v63 = vadd.f32 %v1877_v0, %v1876_v1 }
 0x5b9   :  { %v1910_v48 = vrot.slane %v1909_v19, 2  ;;  %v1879_v35 = vrot.slane %v1878_v63, 1 }
 0x5bb   :  { %v1880_v40 = vadd.f32 %v1879_v35, %v1878_v63  ;;  %v1911_v2 = vmax.f32 %v1909_v19, %v1910_v48 }
 0x5bd   :  { %2878 = vpush %v1880_v40  ;;  %v1912_v47 = vrot.slane %v1911_v2, 1 }
 0x5be   :  { %2880 = vpush %v1888_v9 }
 0x5bf   :  { %v1913_v31 = vmax.f32 %v1911_v2, %v1912_v47 }
 0x5c1   :  { %2882 = vpush %v1913_v31 }
 0x5ee   :  { %s2879_s3 = spop %2878 }
 0x5ef   :  { %s2881_s13 = spop %2880 }
 0x5f0   :  { %s1890_s14 = smul.f32 %s2881_s13, %s2879_s3 }
 0x5f2   :  { %v4825_v53 = vstv %s1890_s14  ;;  %s2883_s0 = spop %2882 }
 0x5f3   :  { %s1915_s15 = ssub.f32 %s2883_s0, %s1890_s14  ;;  %3026 = vrcp.f32 %v4825_v53  ;;  %v1944_v43 = vand.u32 2147483648, %v4825_v53  ;;  %vm1938_vm8 = vweird.f32 %v4825_v53  ;;  %v1942_v27 = vand.u32 2147483647, %v4825_v53 }
 0x5f4   :  { %v1949_v2 = vsub.f32 %v4653_v12, %v4825_v53  ;;  %v1964_v47 = vsub.f32 %v4816_v41, %v4825_v53  ;;  %v1950_v31 = vsub.f32 %v4642_v16, %v4825_v53  ;;  %v1956_v23 = vsub.f32 %v4735_v29, %v4825_v53 }
 0x5f5   :  { %v1916_v3 = vstv %s1915_s15  ;;  %v1945_v14 = vor.u32 1.1754944e-38, %v1944_v43  ;;  %vm1943_vm1 = vcmp.eq.f32.partialorder %v1942_v27, 8.507059e+37  ;;  %v1951_v43 = vsub.f32 %v4655_v60, %v4825_v53 }
 0x5f6   :  { %3028 = vrcp.f32 %v1916_v3  ;;  %v1928_v30 = vand.u32 2147483648, %v1916_v3  ;;  %v1926_v1 = vand.u32 2147483647, %v1916_v3  ;;  %vm1922_vm7 = vweird.f32 %v1916_v3 }
 0x5f8   :  { %v1929_v26 = vor.u32 1.1754944e-38, %v1928_v30  ;;  %vm1927_vm4 = vcmp.eq.f32.partialorder %v1926_v1, 8.507059e+37 }
 0x5f9   :  { %v3027_v34 = vpop.eup %3026 }
 0x5fa   :  { %v1934_v45 = vmul.f32 %v3027_v34, %v4825_v53  ;;  %vm1939_vm3 = vweird.f32 %v3027_v34 }
 0x5fb   :  { %vm1940_vm6 = vmor %vm1938_vm8, %vm1939_vm3 }
 0x5fc   :  { %v3029_v62 = vpop.eup %3028  ;;  %v1935_v13 = vsub.f32 1.0, %v1934_v45 }
 0x5fd   :  { %v1918_v6 = vmul.f32 %v3029_v62, %v1916_v3  ;;  %vm1923_vm9 = vweird.f32 %v3029_v62 }
 0x5fe   :  { %v1936_v24 = vmul.f32 %v3027_v34, %v1935_v13  ;;  %vm1924_vm5 = vmor %vm1922_vm7, %vm1923_vm9 }
 0x5ff   :  { %v1919_v59 = vsub.f32 1.0, %v1918_v6 }
 0x600   :  { %v1937_v28 = vadd.f32 %v3027_v34, %v1936_v24 }
 0x601   :  { %v1920_v4 = vmul.f32 %v3029_v62, %v1919_v59 }
 0x602   :  { %v1941_v19 = vsel %vm1940_vm6, %v3027_v34, %v1937_v28 }
 0x603   :  { %v1921_v0 = vadd.f32 %v3029_v62, %v1920_v4  ;;  %v1946_v35 = vsel %vm1943_vm1, %v1945_v14, %v1941_v19  ;;  %vm1965_vm1 = vcmp.gt.f32.partialorder %v1949_v2, 0.0 }
 0x605   :  { %v1925_v63 = vsel %vm1924_vm5, %v3029_v62, %v1921_v0  ;;  %vm1966_vm5 = vcmp.gt.f32.partialorder %v1950_v31, 0.0 }
 0x606   :  { %v1930_v48 = vsel %vm1927_vm4, %v1929_v26, %v1925_v63  ;;  %vm1980_vm4 = vcmp.gt.f32.partialorder %v1964_v47, 0.0 }
 0x607   :  { %2884 = vpush %v1930_v48 }
 0x608   :  { %2886 = vpush %v1946_v35 }
 0x638   :  { %s2885_s16 = spop %2884 }
 0x639   :  { %v4832_v40 = vstv %s2885_s16  ;;  %s2887_s17 = spop %2886 }
 0x63a   :  { %v4834_v9 = vstv %s2887_s17  ;;  %v1982_v62 = vmul.f32 %v4832_v40, %v1949_v2  ;;  %v1997_v13 = vmul.f32 %v4832_v40, %v1964_v47  ;;  %v1983_v59 = vmul.f32 %v4832_v40, %v1950_v31 }
 0x63b   :  { %v1999_v3 = vmul.f32 %v4834_v9, %v4653_v12  ;;  %v2014_v34 = vmul.f32 %v4834_v9, %v4816_v41  ;;  %v2000_v45 = vmul.f32 %v4834_v9, %v4642_v16  ;;  %v2001_v12 = vmul.f32 %v4834_v9, %v4655_v60 }
 0x63c   :  { %v1984_v60 = vmul.f32 %v4832_v40, %v1951_v43  ;;  %v2002_v20 = vmul.f32 %v4834_v9, %v4669_v42  ;;  %v1952_v31 = vsub.f32 %v4669_v42, %v4825_v53  ;;  %v2003_v42 = vmul.f32 %v4834_v9, %v4683_v44 }
 0x63d   :  { %v2015_v6 = vsub.f32 0.0, %v1999_v3  ;;  %v2030_v24 = vsub.f32 0.0, %v2014_v34  ;;  %v2016_v30 = vsub.f32 0.0, %v2000_v45  ;;  %v2017_v19 = vsub.f32 0.0, %v2001_v12 }
 0x63e   :  { %v2018_v3 = vsub.f32 0.0, %v2002_v20  ;;  %vm1968_vm9 = vcmp.gt.f32.partialorder %v1952_v31, 0.0  ;;  %v1957_v12 = vsub.f32 %v4749_v55, %v4825_v53 }
 0x63f   :  { %v2031_v28 = vsel %vm1965_vm1, %v1982_v62, %v2015_v6  ;;  %v2046_v41 = vsel %vm1980_vm4, %v1997_v13, %v2030_v24  ;;  %v2032_v4 = vsel %vm1966_vm5, %v1983_v59, %v2016_v30  ;;  %v1985_v13 = vmul.f32 %v4832_v40, %v1952_v31 }
 0x640   :  { %v2047_v1 = vadd.f32 1.0, %v2031_v28  ;;  %v2062_v16 = vadd.f32 1.0, %v2046_v41  ;;  %v2048_v26 = vadd.f32 1.0, %v2032_v4  ;;  %v1990_v18 = vmul.f32 %v4832_v40, %v1957_v12 }
 0x641   :  { %v2034_v6 = vsel %vm1968_vm9, %v1985_v13, %v2018_v3  ;;  %vm1973_vm1 = vcmp.gt.f32.partialorder %v1957_v12, 0.0  ;;  %v2004_v3 = vmul.f32 %v4834_v9, %v4699_v39 }
 0x642   :  { %v2063_v27 = vsel %vm798_vm11, %v2047_v1, %v2031_v28  ;;  %v4861_v0 = vsel %vm813_vm2, %v2062_v16, %v2046_v41  ;;  %vm1967_vm2 = vcmp.gt.f32.partialorder %v1951_v43, 0.0  ;;  %v2064_v2 = vsel %vm799_vm13, %v2048_v26, %v2032_v4 }
 0x643   :  { %vm2079_vm6 = vcmp.gt.f32.partialorder %v2063_v27, 0.0  ;;  %v2095_v63 = vmul.f32 %v2063_v27, %v3328_v32  ;;  %vm2094_vm7 = vcmp.gt.f32.partialorder %v4861_v0, 0.0  ;;  %v2110_v14 = vmul.f32 %v4861_v0, %v3328_v32 }
 0x644   :  { %v2143_v35 = vsub.f32 0.0, %v2063_v27  ;;  %v2033_v47 = vsel %vm1967_vm2, %v1984_v60, %v2017_v19  ;;  %v2096_v34 = vmul.f32 %v2064_v2, %v3328_v32  ;;  %vm2080_vm11 = vcmp.gt.f32.partialorder %v2064_v2, 0.0 }
 0x645   :  { %v2111_v48 = vsel %vm2079_vm6, %v2063_v27, %v2095_v63  ;;  %v2126_v5 = vsel %vm2094_vm7, %v4861_v0, %v2110_v14  ;;  %v2049_v62 = vadd.f32 1.0, %v2033_v47  ;;  %v2144_v30 = vsub.f32 0.0, %v2064_v2 }
 0x646   :  { %2271 = vmatmul.f32.vlgmr.msrb.gmra.mxu0 %v2111_v48  ;;  %2316 = vmatmul.f32.vlgmr.msrb.gmra.mxu2 %v2126_v5  ;;  %v2175_v45 = vmul.f32 %v2143_v35, %v3328_v32  ;;  %vm2159_vm8 = vcmp.gt.f32.partialorder %v2143_v35, 0.0  ;;  %v2112_v24 = vsel %vm2080_vm11, %v2064_v2, %v2096_v34  ;;  %v1953_v28 = vsub.f32 %v4683_v44, %v4825_v53 }
 0x647   :  { %v2065_v37 = vsel %vm800_vm12, %v2049_v62, %v2033_v47  ;;  %v1958_v41 = vsub.f32 %v4762_v33, %v4825_v53  ;;  %v2050_v1 = vadd.f32 1.0, %v2034_v6  ;;  %v1959_v16 = vsub.f32 %v4771_v11, %v4825_v53 }
 0x648   :  { %v2191_v59 = vsel %vm2159_vm8, %v2143_v35, %v2175_v45  ;;  %v2097_v4 = vmul.f32 %v2065_v37, %v3328_v32  ;;  %vm2081_vm13 = vcmp.gt.f32.partialorder %v2065_v37, 0.0  ;;  %v2176_v43 = vmul.f32 %v2144_v30, %v3328_v32 }
 0x649   :  { %v2007_v27 = vmul.f32 %v4834_v9, %v4749_v55  ;;  %v1991_v26 = vmul.f32 %v4832_v40, %v1958_v41  ;;  %vm2160_vm12 = vcmp.gt.f32.partialorder %v2144_v30, 0.0  ;;  %v2019_v44 = vsub.f32 0.0, %v2003_v42 }
 0x64a   :  { %v2008_v19 = vmul.f32 %v4834_v9, %v4762_v33  ;;  %v1992_v63 = vmul.f32 %v4832_v40, %v1959_v16  ;;  %vm1969_vm3 = vcmp.gt.f32.partialorder %v1953_v28, 0.0  ;;  %v1960_v14 = vsub.f32 %v4780_v38, %v4825_v53 }
 0x64b   :  { %v2113_v60 = vsel %vm2081_vm13, %v2065_v37, %v2097_v4  ;;  %v2066_v20 = vsel %vm801_vm10, %v2050_v1, %v2034_v6  ;;  %v1986_v55 = vmul.f32 %v4832_v40, %v1953_v28  ;;  %v2023_v48 = vsub.f32 0.0, %v2007_v27 }
 0x64c   :  { %v2192_v5 = vsel %vm2160_vm12, %v2144_v30, %v2176_v43  ;;  %v2145_v35 = vsub.f32 0.0, %v2065_v37  ;;  %v2024_v2 = vsub.f32 0.0, %v2008_v19  ;;  %v1993_v33 = vmul.f32 %v4832_v40, %v1960_v14 }
 0x64d   :  { %v2035_v47 = vsel %vm1969_vm3, %v1986_v55, %v2019_v44  ;;  %v4908_v31 = vsel %vm1973_vm1, %v1990_v18, %v2023_v48  ;;  %vm2082_vm4 = vcmp.gt.f32.partialorder %v2066_v20, 0.0  ;;  %v2098_v58 = vmul.f32 %v2066_v20, %v3328_v32 }
 0x64e   :  { %2274 = vmatmul.f32.gmra.mxu0 %v2112_v24  ;;  %2319 = vmatmul.f32.gmra.mxu2 %v2191_v59  ;;  %vm1974_vm10 = vcmp.gt.f32.partialorder %v1958_v41, 0.0  ;;  %v2009_v34 = vmul.f32 %v4834_v9, %v4771_v11  ;;  %v2177_v45 = vmul.f32 %v2145_v35, %v3328_v32  ;;  %v2051_v62 = vadd.f32 1.0, %v2035_v47 }
 0x64f   :  { %v4916_v13 = vsel %vm1974_vm10, %v1991_v26, %v2024_v2  ;;  %v2010_v6 = vmul.f32 %v4834_v9, %v4780_v38  ;;  %vm2161_vm5 = vcmp.gt.f32.partialorder %v2145_v35, 0.0  ;;  %v1954_v24 = vsub.f32 %v4699_v39, %v4825_v53 }
 0x650   :  { %v2020_v59 = vsub.f32 0.0, %v2004_v3  ;;  %vm1975_vm6 = vcmp.gt.f32.partialorder %v1959_v16, 0.0  ;;  %v1961_v37 = vsub.f32 %v4787_v61, %v4825_v53  ;;  %v2114_v30 = vsel %vm2082_vm4, %v2066_v20, %v2098_v58 }
 0x651   :  { %v2146_v42 = vsub.f32 0.0, %v2066_v20  ;;  %v1987_v11 = vmul.f32 %v4832_v40, %v1954_v24  ;;  %v2025_v12 = vsub.f32 0.0, %v2009_v34  ;;  %v2193_v28 = vsel %vm2161_vm5, %v2145_v35, %v2177_v45 }
 0x652   :  { %v2067_v41 = vsel %vm802_vm14, %v2051_v62, %v2035_v47  ;;  %v2026_v38 = vsub.f32 0.0, %v2010_v6  ;;  %v1994_v4 = vmul.f32 %v4832_v40, %v1961_v37  ;;  %vm1970_vm7 = vcmp.gt.f32.partialorder %v1954_v24, 0.0 }
 0x653   :  { %v4929_v39 = vsel %vm1975_vm6, %v1992_v63, %v2025_v12  ;;  %v1962_v1 = vsub.f32 %v4791_v22, %v4825_v53  ;;  %v2036_v18 = vsel %vm1970_vm7, %v1987_v11, %v2020_v59  ;;  %v2005_v16 = vmul.f32 %v4834_v9, %v4713_v10 }
 0x654   :  { %vm1976_vm2 = vcmp.gt.f32.partialorder %v1960_v14, 0.0  ;;  %v2099_v43 = vmul.f32 %v2067_v41, %v3328_v32  ;;  %v2011_v27 = vmul.f32 %v4834_v9, %v4787_v61  ;;  %vm2083_vm14 = vcmp.gt.f32.partialorder %v2067_v41, 0.0 }
 0x655   :  { %v4936_v57 = vsel %vm1976_vm2, %v1993_v33, %v2026_v38  ;;  %v1995_v26 = vmul.f32 %v4832_v40, %v1962_v1  ;;  %v2178_v44 = vmul.f32 %v2146_v42, %v3328_v32  ;;  %v1963_v19 = vsub.f32 %v4796_v50, %v4825_v53 }
 0x656   :  { %2277 = vmatmul.f32.gmra.mxu0 %v2113_v60  ;;  %2322 = vmatmul.f32.gmra.mxu2 %v2192_v5  ;;  %vm2162_vm11 = vcmp.gt.f32.partialorder %v2146_v42, 0.0  ;;  %v2052_v63 = vadd.f32 1.0, %v2036_v18  ;;  %v1955_v14 = vsub.f32 %v4713_v10, %v4825_v53  ;;  %v2021_v60 = vsub.f32 0.0, %v2005_v16 }
 0x657   :  { %v2027_v20 = vsub.f32 0.0, %v2011_v27  ;;  %v2012_v55 = vmul.f32 %v4834_v9, %v4791_v22  ;;  %v1996_v61 = vmul.f32 %v4832_v40, %v1963_v19  ;;  %v2115_v48 = vsel %vm2083_vm14, %v2067_v41, %v2099_v43 }
 0x658   :  { %vm1977_vm8 = vcmp.gt.f32.partialorder %v1961_v37, 0.0  ;;  %v2194_v5 = vsel %vm2162_vm11, %v2146_v42, %v2178_v44  ;;  %v2147_v35 = vsub.f32 0.0, %v2067_v41  ;;  %v1988_v2 = vmul.f32 %v4832_v40, %v1955_v14 }
 0x659   :  { %v4950_v33 = vsel %vm1977_vm8, %v1994_v4, %v2027_v20  ;;  %v2068_v10 = vsel %vm803_vm15, %v2052_v63, %v2036_v18  ;;  %vm1971_vm9 = vcmp.gt.f32.partialorder %v1955_v14, 0.0  ;;  %v2028_v47 = vsub.f32 0.0, %v2012_v55 }
 0x65a   :  { %v2013_v22 = vmul.f32 %v4834_v9, %v4796_v50  ;;  %v2037_v3 = vsel %vm1971_vm9, %v1988_v2, %v2021_v60  ;;  %v2006_v58 = vmul.f32 %v4834_v9, %v4735_v29  ;;  %vm1978_vm13 = vcmp.gt.f32.partialorder %v1962_v1, 0.0 }
 0x65b   :  { %v4959_v34 = vsel %vm1978_vm13, %v1995_v26, %v2028_v47  ;;  %v2100_v62 = vmul.f32 %v2068_v10, %v3328_v32  ;;  %v2179_v6 = vmul.f32 %v2147_v35, %v3328_v32  ;;  %vm1979_vm15 = vcmp.gt.f32.partialorder %v1963_v19, 0.0 }
 0x65c   :  { %v2029_v45 = vsub.f32 0.0, %v2013_v22  ;;  %vm2084_vm12 = vcmp.gt.f32.partialorder %v2068_v10, 0.0  ;;  %vm2163_vm3 = vcmp.gt.f32.partialorder %v2147_v35, 0.0  ;;  %v2053_v24 = vadd.f32 1.0, %v2037_v3 }
 0x65d   :  { %v2022_v59 = vsub.f32 0.0, %v2006_v58  ;;  %v2116_v37 = vsel %vm2084_vm12, %v2068_v10, %v2100_v62  ;;  %v2195_v9 = vsel %vm2163_vm3, %v2147_v35, %v2179_v6  ;;  %v1989_v42 = vmul.f32 %v4832_v40, %v1956_v23  ;;  %v522_v58 = vld [vmem:[%s5606_s1] sm:$0xff]  ;;  %v523_v62 = vld [vmem:[%s5606_s1 + $0x8] sm:$0xff] }
 0x65e   :  { %2280 = vmatmul.f32.gmra.mxu0 %v2114_v30  ;;  %2325 = vmatmul.f32.gmra.mxu2 %v2193_v28  ;;  %v4965_v50 = vsel %vm1979_vm15, %v1996_v61, %v2029_v45  ;;  %v2148_v30 = vsub.f32 0.0, %v2068_v10  ;;  %v2069_v11 = vsel %vm804_vm0, %v2053_v24, %v2037_v3  ;;  %vm1972_vm1 = vcmp.gt.f32.partialorder %v1956_v23, 0.0 }
 0x65f   :  { %v2038_v29 = vsel %vm1972_vm1, %v1989_v42, %v2022_v59  ;;  %v2101_v53 = vmul.f32 %v2069_v11, %v3328_v32  ;;  %vm2085_vm4 = vcmp.gt.f32.partialorder %v2069_v11, 0.0  ;;  %v2149_v4 = vsub.f32 0.0, %v2069_v11 }
 0x660   :  { %v2180_v12 = vmul.f32 %v2148_v30, %v3328_v32  ;;  %vm2164_vm10 = vcmp.gt.f32.partialorder %v2148_v30, 0.0  ;;  %v2054_v28 = vadd.f32 1.0, %v2038_v29  ;;  %vm5699_vm5 = vcmp.eq.s32.totalorder %v4640_v7, %v3514_v17 }
 0x661   :  { %v2117_v41 = vsel %vm2085_vm4, %v2069_v11, %v2101_v53  ;;  %v2181_v1 = vmul.f32 %v2149_v4, %v3328_v32  ;;  %vm2165_vm6 = vcmp.gt.f32.partialorder %v2149_v4, 0.0  ;;  %v2055_v18 = vadd.f32 1.0, %v4908_v31 }
 0x662   :  { %v2196_v38 = vsel %vm2164_vm10, %v2148_v30, %v2180_v12  ;;  %v2070_v40 = vsel %vm5699_vm5, %v2054_v28, %v2038_v29  ;;  %vm5700_vm7 = vcmp.eq.s32.totalorder %v4651_v46, %v3514_v17  ;;  %v2056_v19 = vadd.f32 1.0, %v4916_v13 }
 0x663   :  { %v2102_v54 = vmul.f32 %v2070_v40, %v3328_v32  ;;  %vm2086_vm0 = vcmp.gt.f32.partialorder %v2070_v40, 0.0  ;;  %v2197_v43 = vsel %vm2165_vm6, %v2149_v4, %v2181_v1  ;;  %v2150_v27 = vsub.f32 0.0, %v2070_v40  ;;  %v525_v4 = vld [vmem:[%s5606_s1 + $0x18] sm:$0xff] }
 0x664   :  { %v2071_v26 = vsel %vm5700_vm7, %v2055_v18, %v4908_v31  ;;  %vm5701_vm11 = vcmp.eq.s32.totalorder %v4665_v56, %v3514_v17  ;;  %v2057_v55 = vadd.f32 1.0, %v4929_v39  ;;  %vm5702_vm13 = vcmp.eq.s32.totalorder %v4680_v25, %v3514_v17  ;;  %v538_v25 = vld [vmem:[%s5609_s4 + $0x80] sm:$0xff] }
 0x665   :  { %v2118_v16 = vsel %vm2086_vm0, %v2070_v40, %v2102_v54  ;;  %v2103_v7 = vmul.f32 %v2071_v26, %v3328_v32  ;;  %v2182_v44 = vmul.f32 %v2150_v27, %v3328_v32  ;;  %vm2087_vm2 = vcmp.gt.f32.partialorder %v2071_v26, 0.0 }
 0x666   :  { %2283 = vmatmul.f32.gmra.mxu0 %v2115_v48  ;;  %2328 = vmatmul.f32.gmra.mxu2 %v2194_v5  ;;  %vm2166_vm14 = vcmp.gt.f32.partialorder %v2150_v27, 0.0  ;;  %v2151_v60 = vsub.f32 0.0, %v2071_v26  ;;  %v2072_v20 = vsel %vm5701_vm11, %v2056_v19, %v4916_v13  ;;  %v2073_v35 = vsel %vm5702_vm13, %v2057_v55, %v4929_v39  ;;  %v539_v39 = vld [vmem:[%s5609_s4 + $0x88] sm:$0xff] }
 0x667   :  { %v2119_v63 = vsel %vm2087_vm2, %v2071_v26, %v2103_v7  ;;  %v2198_v14 = vsel %vm2166_vm14, %v2150_v27, %v2182_v44  ;;  %v2104_v46 = vmul.f32 %v2072_v20, %v3328_v32  ;;  %vm2088_vm8 = vcmp.gt.f32.partialorder %v2072_v20, 0.0  ;;  %v675_v44 = vld [vmem:[%s5609_s4 + $0xa0] sm:$0xff] }
 0x668   :  { %v2183_v31 = vmul.f32 %v2151_v60, %v3328_v32  ;;  %vm2167_vm9 = vcmp.gt.f32.partialorder %v2151_v60, 0.0  ;;  %v2152_v5 = vsub.f32 0.0, %v2072_v20  ;;  %v2105_v56 = vmul.f32 %v2073_v35, %v3328_v32 }
 0x669   :  { %v2120_v61 = vsel %vm2088_vm8, %v2072_v20, %v2104_v46  ;;  %vm2089_vm15 = vcmp.gt.f32.partialorder %v2073_v35, 0.0  ;;  %v2058_v2 = vadd.f32 1.0, %v4936_v57  ;;  %v2153_v22 = vsub.f32 0.0, %v2073_v35 }
 0x66a   :  { %v2199_v48 = vsel %vm2167_vm9, %v2151_v60, %v2183_v31  ;;  %v2184_v13 = vmul.f32 %v2152_v5, %v3328_v32  ;;  %vm2168_vm12 = vcmp.gt.f32.partialorder %v2152_v5, 0.0  ;;  %v2121_v10 = vsel %vm2089_vm15, %v2073_v35, %v2105_v56 }
 0x66b   :  { %vm5703_vm3 = vcmp.eq.s32.totalorder %v4696_v8, %v3514_v17  ;;  %v548_v45 = vpack.c.bf16 %v539_v39, %v538_v25  ;;  %v540_v6 = vpack.c.bf16 %v523_v62, %v522_v58  ;;  %vm551_vm1 = vcmask 130048   ;;  %v530_v58 = vld [vmem:[%s5606_s1 + $0x40] sm:$0xff] }
 0x66c   :  { %v2200_v47 = vsel %vm2168_vm12, %v2152_v5, %v2184_v13  ;;  %v2074_v3 = vsel %vm5703_vm3, %v2058_v2, %v4936_v57  ;;  %v2185_v57 = vmul.f32 %v2153_v22, %v3328_v32  ;;  %vm2169_vm10 = vcmp.gt.f32.partialorder %v2153_v22, 0.0 }
 0x66d   :  { %v2106_v8 = vmul.f32 %v2074_v3, %v3328_v32  ;;  %583 = vmatpush.bf16.msra.mxu3 %v548_v45  ;;  %vm2090_vm4 = vcmp.gt.f32.partialorder %v2074_v3, 0.0  ;;  %v2059_v23 = vadd.f32 1.0, %v4950_v33  ;;  %vm5704_vm5 = vcmp.eq.s32.totalorder %v4710_v49, %v3514_v17  ;;  %v531_v45 = vld [vmem:[%s5606_s1 + $0x48] sm:$0xff] }
 0x66e   :  { %2286 = vmatmul.f32.gmra.mxu0 %v2116_v37  ;;  %2331 = vmatmul.f32.gmra.mxu2 %v2195_v9  ;;  %v2201_v59 = vsel %vm2169_vm10, %v2153_v22, %v2185_v57  ;;  %v2154_v37 = vsub.f32 0.0, %v2074_v3  ;;  %v2060_v11 = vadd.f32 1.0, %v4959_v34  ;;  %vm5705_vm7 = vcmp.eq.s32.totalorder %v4724_v21, %v3514_v17 }
 0x66f   :  { %v2122_v24 = vsel %vm2090_vm4, %v2074_v3, %v2106_v8  ;;  %v2075_v9 = vsel %vm5704_vm5, %v2059_v23, %v4950_v33  ;;  %vm5706_vm11 = vcmp.eq.s32.totalorder %v4741_v15, %v3514_v17  ;;  %v526_v15 = vld [vmem:[%s5606_s1 + $0x20] sm:$0xff]  ;;  %v2158_v60 = vsub.f32 0.0, %v4861_v0  ;;  %v528_v0 = vld [vmem:[%s5606_s1 + $0x30] sm:$0xff] }
 0x670   :  { %2807 = vmatmul.msk.bf16.vlgmr.msra.gmra.mxu3 %vm551_vm1, %v540_v6  ;;  %v2107_v30 = vmul.f32 %v2075_v9, %v3328_v32  ;;  %v2186_v42 = vmul.f32 %v2154_v37, %v3328_v32  ;;  %vm2091_vm0 = vcmp.gt.f32.partialorder %v2075_v9, 0.0  ;;  %vm2170_vm6 = vcmp.gt.f32.partialorder %v2154_v37, 0.0 }
 0x671   :  { %v2155_v12 = vsub.f32 0.0, %v2075_v9  ;;  %v2076_v28 = vsel %vm5705_vm7, %v2060_v11, %v4959_v34  ;;  %v2190_v46 = vmul.f32 %v2158_v60, %v3328_v32  ;;  %vm2174_vm15 = vcmp.gt.f32.partialorder %v2158_v60, 0.0 }
 0x672   :  { %v2123_v29 = vsel %vm2091_vm0, %v2075_v9, %v2107_v30  ;;  %v2202_v53 = vsel %vm2170_vm6, %v2154_v37, %v2186_v42  ;;  %v2108_v49 = vmul.f32 %v2076_v28, %v3328_v32  ;;  %vm2092_vm2 = vcmp.gt.f32.partialorder %v2076_v28, 0.0  ;;  %v532_v30 = vld [vmem:[%s5606_s1 + $0x50] sm:$0xff]  ;;  %v533_v42 = vld [vmem:[%s5606_s1 + $0x58] sm:$0xff] }
 0x673   :  { %v2187_v33 = vmul.f32 %v2155_v12, %v3328_v32  ;;  %vm2171_vm14 = vcmp.gt.f32.partialorder %v2155_v12, 0.0  ;;  %v2156_v34 = vsub.f32 0.0, %v2076_v28  ;;  %vm5707_vm12 = vcmp.lt.s32.totalorder %v3514_v17, 16 }
 0x674   :  { %v2124_v54 = vsel %vm2092_vm2, %v2076_v28, %v2108_v49  ;;  %vm5708_vm3 = vmmov %vm5707_vm12  ;;  %v544_v62 = vpack.c.bf16 %v531_v45, %v530_v58  ;;  %v545_v11 = vpack.c.bf16 %v533_v42, %v532_v30 }
 0x675   :  { %v2203_v21 = vsel %vm2171_vm14, %v2155_v12, %v2187_v33  ;;  %vm2172_vm9 = vcmp.gt.f32.partialorder %v2156_v34, 0.0  ;;  %vm5709_vm4 = vmmov %vm5708_vm3 }
 0x676   :  { %2289 = vmatmul.f32.gmra.mxu0 %v2117_v41  ;;  %2334 = vmatmul.f32.gmra.mxu2 %v2196_v38  ;;  %v2061_v41 = vadd.f32 1.0, %v4965_v50  ;;  %v524_v38 = vld [vmem:[%s5606_s1 + $0x10] sm:$0xff]  ;;  %vm5710_vm10 = vmmov %vm5708_vm3 }
 0x677   :  { %v541_v40 = vpack.c.bf16 %v525_v4, %v524_v38  ;;  %vm5711_vm5 = vmmov %vm5708_vm3  ;;  %v534_v4 = vld [vmem:[%s5606_s1 + $0x60] sm:$0xff] }
 0x678   :  { %v2077_v1 = vsel %vm5706_vm11, %v2061_v41, %v4965_v50  ;;  %v527_v50 = vld [vmem:[%s5606_s1 + $0x28] sm:$0xff]  ;;  %vm5712_vm0 = vmmov %vm5708_vm3 }
 0x679   :  { %v2109_v18 = vmul.f32 %v2077_v1, %v3328_v32  ;;  %vm2093_vm8 = vcmp.gt.f32.partialorder %v2077_v1, 0.0  ;;  %v2157_v26 = vsub.f32 0.0, %v2077_v1  ;;  %v542_v19 = vpack.c.bf16 %v527_v50, %v526_v15  ;;  %vm5713_vm6 = vmmov %vm5712_vm0 }
 0x67a   :  { %vm5714_vm7 = vmmov %vm5712_vm0 }
 0x67b   :  { %v2189_v7 = vmul.f32 %v2157_v26, %v3328_v32  ;;  %vm2173_vm13 = vcmp.gt.f32.partialorder %v2157_v26, 0.0  ;;  %vm5715_vm2 = vmmov %vm5712_vm0 }
 0x67c   :  { %vm5716_vm14 = vmmov %vm5712_vm0 }
 0x67d   :  { %vm5717_vm11 = vmmov %vm5712_vm0 }
 0x67e   :  { %2292 = vmatmul.f32.gmra.mxu0 %v2118_v16  ;;  %2337 = vmatmul.f32.gmra.mxu2 %v2197_v43  ;;  %v2188_v16 = vmul.f32 %v2156_v34, %v3328_v32  ;;  %v2125_v43 = vsel %vm2093_vm8, %v2077_v1, %v2109_v18  ;;  %v529_v32 = vld [vmem:[%s5606_s1 + $0x38] sm:$0xff]  ;;  %vm5718_vm8 = vmmov %vm5712_vm0 }
 0x67f   :  { %v543_v13 = vpack.c.bf16 %v529_v32, %v528_v0 }
 0x680   :  { %2808 = vmatmul.msk.bf16.gmra.mxu3 %vm551_vm1, %v541_v40  ;;  %v2204_v27 = vsel %vm2172_vm9, %v2156_v34, %v2188_v16  ;;  %vm5719_vm9 = vmmov %vm5712_vm0  ;;  %v535_v40 = vld [vmem:[%s5606_s1 + $0x68] sm:$0xff]  ;;  %v674_v34 = vld [vmem:[%s5609_s4 + $0x98] sm:$0xff] }
 0x686   :  { %2295 = vmatmul.f32.gmra.mxu0 %v2119_v63  ;;  %2340 = vmatmul.f32.gmra.mxu2 %v2198_v14  ;;  %v676_v63 = vld [vmem:[%s5609_s4 + $0xa8] sm:$0xff]  ;;  %v2205_v14 = vsel %vm2173_vm13, %v2157_v26, %v2189_v7  ;;  %vm5720_vm13 = vmmov %vm5712_vm0 }
 0x687   :  { %v686_v20 = vpack.c.bf16 %v676_v63, %v675_v44  ;;  %v536_v44 = vld [vmem:[%s5606_s1 + $0x70] sm:$0xff] }
 0x689   :  { %719 = vmatpush.bf16.msrb.mxu3 %v686_v20 }
 0x68e   :  { %2298 = vmatmul.f32.gmra.mxu0 %v2120_v61  ;;  %2343 = vmatmul.f32.gmra.mxu2 %v2199_v48  ;;  %v2206_v61 = vsel %vm2174_vm15, %v2158_v60, %v2190_v46  ;;  %vm5721_vm15 = vmmov %vm5712_vm0 }
 0x690   :  { %2809 = vmatmul.msk.bf16.gmra.mxu3 %vm551_vm1, %v542_v19  ;;  %v537_v19 = vld [vmem:[%s5606_s1 + $0x78] sm:$0xff] }
 0x691   :  { %v547_v63 = vpack.c.bf16 %v537_v19, %v536_v44 }
 0x696   :  { %2301 = vmatmul.f32.gmra.mxu0 %v2121_v10  ;;  %2346 = vmatmul.f32.gmra.mxu2 %v2200_v47 }
 0x69e   :  { %2304 = vmatmul.f32.gmra.mxu0 %v2122_v24  ;;  %2349 = vmatmul.f32.gmra.mxu2 %v2201_v59 }
 0x6a0   :  { %2810 = vmatmul.msk.bf16.gmra.mxu3 %vm551_vm1, %v543_v13 }
 0x6a6   :  { %2307 = vmatmul.f32.gmra.mxu0 %v2123_v29  ;;  %2352 = vmatmul.f32.gmra.mxu2 %v2202_v53 }
 0x6ae   :  { %2310 = vmatmul.f32.gmra.mxu0 %v2124_v54  ;;  %2355 = vmatmul.f32.gmra.mxu2 %v2203_v21  ;;  %v673_v54 = vld [vmem:[%s5609_s4 + $0x90] sm:$0xff]  ;;  %v546_v21 = vpack.c.bf16 %v535_v40, %v534_v4 }
 0x6af   :  { %v685_v1 = vpack.c.bf16 %v674_v34, %v673_v54 }
 0x6b0   :  { %2811 = vmatmul.msk.bf16.gmra.mxu3 %vm551_vm1, %v544_v62 }
 0x6b1   :  { %720 = vmatpush.bf16.msrb.mxu3 %v685_v1 }
 0x6b6   :  { %2313 = vmatmul.f32.gmra.mxu0 %v2125_v43  ;;  %2358 = vmatmul.f32.gmra.mxu2 %v2204_v27 }
 0x6be   :  { %2361 = vmatmul.f32.gmra.mxu2 %v2205_v14 }
 0x6c0   :  { %2812 = vmatmul.msk.bf16.gmra.mxu3 %vm551_vm1, %v545_v11 }
 0x6c3   :  { %v2272_v31 = vpop.f32.mrf.mxu0 }
 0x6c4   :  { %v5065_v55 = vsel %vm5707_vm12, %v2272_v31, -1e+30  ;;  %vm5722_vm12 = vmmov %vm5712_vm0 }
 0x6c5   :  { %2384 = vmax.xlane.f32.xlu2 %v5065_v55 }
 0x6c6   :  { %2364 = vmatmul.f32.gmra.mxu2 %v2206_v61 }
 0x6c9   :  { %v2317_v48 = vpop.f32.mrf.mxu2 }
 0x6ca   :  { %v5076_v35 = vsel %vm5708_vm3, %v2317_v48, -1e+30  ;;  %vm5723_vm3 = vmmov %vm5712_vm0 }
 0x6cb   :  { %v2275_v5 = vpop.f32.mrf.mxu0 }
 0x6cc   :  { %v5080_v56 = vsel %vm5709_vm4, %v2275_v5, -1e+30  ;;  %vm5724_vm4 = vmmov %vm5712_vm0 }
 0x6cd   :  { %2414 = vmax.xlane.f32.xlu2 %v5076_v35  ;;  %2386 = vmax.xlane.f32.xlu0 %v5080_v56 }
 0x6d0   :  { %2813 = vmatmul.msk.bf16.gmra.mxu3 %vm551_vm1, %v546_v21 }
 0x6d1   :  { %v2320_v2 = vpop.f32.mrf.mxu2 }
 0x6d2   :  { %v5087_v10 = vsel %vm5710_vm10, %v2320_v2, -1e+30  ;;  %vm5725_vm10 = vmmov %vm5712_vm0 }
 0x6d3   :  { %2544 = vmax.xlane.f32.xlu1 %v5087_v10  ;;  %v2278_v47 = vpop.f32.mrf.mxu0 }
 0x6d4   :  { %v5096_v25 = vsel %vm5712_vm0, %v2278_v47, -1e+30  ;;  %v5225_v47 = vld [vmem:[%s5610_s5 + $0x18] ss:$0 sm:$0xff] }
 0x6d9   :  { %v2323_v22 = vpop.f32.mrf.mxu2 }
 0x6da   :  { %v5092_v3 = vsel %vm5711_vm5, %v2323_v22, -1e+30  ;;  %vm5726_vm5 = vmmov %vm5712_vm0 }
 0x6db   :  { %2546 = vmax.xlane.f32.xlu2 %v5092_v3  ;;  %2388 = vmax.xlane.f32.xlu1 %v5096_v25  ;;  %v2281_v39 = vpop.f32.mrf.mxu0 }
 0x6dc   :  { %v5113_v57 = vsel %vm5714_vm7, %v2281_v39, -1e+30  ;;  %vm5729_vm7 = vmmov %vm5712_vm0 }
 0x6e0   :  { %2814 = vmatmul.msk.bf16.gmra.mxu3 %vm551_vm1, %v547_v63  ;;  %vm5727_vm1 = vmmov %vm5712_vm0 }
 0x6e1   :  { %v2326_v6 = vpop.f32.mrf.mxu2 }
 0x6e2   :  { %v5109_v8 = vsel %vm5713_vm6, %v2326_v6, -1e+30  ;;  %vm5728_vm6 = vmmov %vm5712_vm0 }
 0x6e3   :  { %2548 = vmax.xlane.f32.xlu0 %v5109_v8  ;;  %2390 = vmax.xlane.f32.xlu2 %v5113_v57  ;;  %v2284_v23 = vpop.f32.mrf.mxu0 }
 0x6e4   :  { %v5123_v37 = vsel %vm5716_vm14, %v2284_v23, -1e+30  ;;  %vm5731_vm14 = vmmov %vm5712_vm0 }
 0x6e9   :  { %v2329_v24 = vpop.f32.mrf.mxu2 }
 0x6ea   :  { %v5119_v59 = vsel %vm5715_vm2, %v2329_v24, -1e+30  ;;  %vm5730_vm2 = vmmov %vm5712_vm0 }
 0x6eb   :  { %2550 = vmax.xlane.f32.xlu1 %v5119_v59  ;;  %2392 = vmax.xlane.f32.xlu0 %v5123_v37  ;;  %v2287_v9 = vpop.f32.mrf.mxu0 }
 0x6ec   :  { %v5140_v12 = vsel %vm5718_vm8, %v2287_v9, -1e+30 }
 0x6f1   :  { %v2332_v29 = vpop.f32.mrf.mxu2 }
 0x6f2   :  { %v5136_v53 = vsel %vm5717_vm11, %v2332_v29, -1e+30 }
 0x6f3   :  { %2552 = vmax.xlane.f32.xlu2 %v5136_v53  ;;  %2394 = vmax.xlane.f32.xlu1 %v5140_v12  ;;  %v2290_v28 = vpop.f32.mrf.mxu0  ;;  %v585_v32 = vpop.f32.mrf.mxu3 }
 0x6f4   :  { %v5150_v41 = vsel %vm5720_vm13, %v2290_v28, -1e+30  ;;  %v586_v39 = vadd.f32 %v5225_v47, %v585_v32  ;;  %vm5733_vm13 = vmmov %vm5712_vm0 }
 0x6f6   :  { %v641_v6 = vmul.f32 %v586_v39, %v3333_v36  ;;  %vm625_vm11 = vcmp.gt.f32.partialorder %v586_v39, 0.0 }
 0x6f8   :  { %v657_v30 = vsel %vm625_vm11, %v586_v39, %v641_v6 }
 0x6f9   :  { %v2335_v49 = vpop.f32.mrf.mxu2 }
 0x6fa   :  { %v5146_v33 = vsel %vm5719_vm9, %v2335_v49, -1e+30  ;;  %vm5732_vm9 = vmmov %vm5712_vm0 }
 0x6fb   :  { %2554 = vmax.xlane.f32.xlu0 %v5146_v33  ;;  %2396 = vmax.xlane.f32.xlu2 %v5150_v41  ;;  %v2293_v38 = vpop.f32.mrf.mxu0  ;;  %v587_v23 = vpop.f32.mrf.mxu3 }
 0x6fc   :  { %v5173_v43 = vsel %vm5722_vm12, %v2293_v38, -1e+30  ;;  %v588_v24 = vadd.f32 %v5225_v47, %v587_v23  ;;  %vm5735_vm12 = vmmov %vm5712_vm0 }
 0x6fe   :  { %vm626_vm8 = vcmp.gt.f32.partialorder %v588_v24, 0.0  ;;  %v642_v42 = vmul.f32 %v588_v24, %v3333_v36 }
 0x700   :  { %v658_v11 = vsel %vm626_vm8, %v588_v24, %v642_v42 }
 0x701   :  { %v2338_v18 = vpop.f32.mrf.mxu2  ;;  %v677_v28 = vpack.c.bf16 %v658_v11, %v657_v30 }
 0x702   :  { %v5169_v16 = vsel %vm5721_vm15, %v2338_v18, -1e+30  ;;  %vm5734_vm15 = vcmask 261120  }
 0x703   :  { %2556 = vmax.xlane.f32.xlu1 %v5169_v16  ;;  %2398 = vmax.xlane.f32.xlu0 %v5173_v43  ;;  %v2296_v27 = vpop.f32.mrf.mxu0  ;;  %v590_v4 = vpop.f32.mrf.mxu3 }
 0x704   :  { %v5183_v15 = vsel %vm5724_vm4, %v2296_v27, -1e+30  ;;  %2815 = vmatmul.msk.bf16.vlgmr.msrb.gmra.mxu3 %vm5734_vm15, %v677_v28  ;;  %v591_v27 = vadd.f32 %v5225_v47, %v590_v4 }
 0x706   :  { %v643_v63 = vmul.f32 %v591_v27, %v3333_v36  ;;  %vm627_vm4 = vcmp.gt.f32.partialorder %v591_v27, 0.0 }
 0x708   :  { %v659_v32 = vsel %vm627_vm4, %v591_v27, %v643_v63 }
 0x709   :  { %v2341_v26 = vpop.f32.mrf.mxu2 }
 0x70a   :  { %v5179_v7 = vsel %vm5723_vm3, %v2341_v26, -1e+30  ;;  %vm5736_vm3 = vmmov %vm5712_vm0 }
 0x70b   :  { %2558 = vmax.xlane.f32.xlu2 %v5179_v7  ;;  %2400 = vmax.xlane.f32.xlu1 %v5183_v15  ;;  %v2299_v50 = vpop.f32.mrf.mxu0  ;;  %v592_v26 = vpop.f32.mrf.mxu3 }
 0x70c   :  { %v5200_v20 = vsel %vm5726_vm5, %v2299_v50, -1e+30  ;;  %v593_v50 = vadd.f32 %v5225_v47, %v592_v26  ;;  %vm5737_vm5 = vmmov %vm5712_vm0 }
 0x711   :  { %v2344_v14 = vpop.f32.mrf.mxu2 }
 0x712   :  { %v5196_v60 = vsel %vm5725_vm10, %v2344_v14, -1e+30  ;;  %v644_v14 = vmul.f32 %v593_v50, %v3333_v36  ;;  %vm628_vm10 = vcmp.gt.f32.partialorder %v593_v50, 0.0 }
 0x713   :  { %2560 = vmax.xlane.f32.xlu0 %v5196_v60  ;;  %2402 = vmax.xlane.f32.xlu2 %v5200_v20  ;;  %v2302_v46 = vpop.f32.mrf.mxu0 }
 0x714   :  { %v5210_v48 = vsel %vm5727_vm1, %v2302_v46, -1e+30 }
 0x719   :  { %v2347_v31 = vpop.f32.mrf.mxu2 }
 0x71a   :  { %v5206_v61 = vsel %vm5712_vm0, %v2347_v31, -1e+30  ;;  %vm5738_vm0 = vmmov %vm5734_vm15 }
 0x71b   :  { %2562 = vmax.xlane.f32.xlu1 %v5206_v61  ;;  %2404 = vmax.xlane.f32.xlu0 %v5210_v48  ;;  %v2305_v5 = vpop.f32.mrf.mxu0  ;;  %vm5741_vm8 = vmmov %vm5738_vm0 }
 0x71c   :  { %v5220_v2 = vsel %vm5729_vm7, %v2305_v5, -1e+30  ;;  %vm5739_vm7 = vmmov %vm5730_vm2 }
 0x71d   :  { %vm5742_vm15 = vmmov %vm5738_vm0 }
 0x71e   :  { %vm5743_vm4 = vmmov %vm5738_vm0 }
 0x721   :  { %v2350_v0 = vpop.f32.mrf.mxu2 }
 0x722   :  { %v5216_v13 = vsel %vm5728_vm6, %v2350_v0, -1e+30  ;;  %v595_v0 = vpop.f32.mrf.mxu3 }
 0x723   :  { %2564 = vmax.xlane.f32.xlu2 %v5216_v13  ;;  %2406 = vmax.xlane.f32.xlu1 %v5220_v2  ;;  %v2308_v22 = vpop.f32.mrf.mxu0  ;;  %v596_v42 = vadd.f32 %v5225_v47, %v595_v0 }
 0x724   :  { %v5236_v62 = vsel %vm5731_vm14, %v2308_v22, -1e+30  ;;  %v660_v22 = vsel %vm628_vm10, %v593_v50, %v644_v14 }
 0x725   :  { %v678_v39 = vpack.c.bf16 %v660_v22, %v659_v32  ;;  %vm629_vm1 = vcmp.gt.f32.partialorder %v596_v42, 0.0 }
 0x727   :  { %2816 = vmatmul.msk.bf16.gmra.mxu3 %vm5738_vm0, %v678_v39 }
 0x729   :  { %v2353_v58 = vpop.f32.mrf.mxu2 }
 0x72a   :  { %v5232_v45 = vsel %vm5730_vm2, %v2353_v58, -1e+30  ;;  %v597_v11 = vpop.f32.mrf.mxu3  ;;  %vm5740_vm2 = vmmov %vm5738_vm0 }
 0x72b   :  { %2566 = vmax.xlane.f32.xlu0 %v5232_v45  ;;  %2408 = vmax.xlane.f32.xlu2 %v5236_v62  ;;  %v2311_v9 = vpop.f32.mrf.mxu0 }
 0x72c   :  { %v5249_v38 = vsel %vm5733_vm13, %v2311_v9, -1e+30 }
 0x731   :  { %v2356_v29 = vpop.f32.mrf.mxu2 }
 0x732   :  { %v5245_v49 = vsel %vm5732_vm9, %v2356_v29, -1e+30 }
 0x733   :  { %2568 = vmax.xlane.f32.xlu1 %v5245_v49  ;;  %2410 = vmax.xlane.f32.xlu0 %v5249_v38  ;;  %v2314_v40 = vpop.f32.mrf.mxu0 }
 0x734   :  { %v5260_v1 = vsel %vm5736_vm3, %v2314_v40, -1e+30 }
 0x738   :  { %v2385_v54 = vpop.xlane.xlu2 %2384 }
 0x739   :  { %v2359_v21 = vpop.f32.mrf.mxu2  ;;  %v2416_v18 = vsub.f32 %v5065_v55, %v2385_v54 }
 0x73a   :  { %v5256_v34 = vsel %vm5735_vm12, %v2359_v21, -1e+30 }
 0x73b   :  { %2570 = vmax.xlane.f32.xlu2 %v5256_v34  ;;  %2412 = vmax.xlane.f32.xlu1 %v5260_v1  ;;  %v2432_v44 = vmul.f32 1.442695, %v2416_v18  ;;  %v645_v18 = vmul.f32 %v596_v42, %v3333_v36 }
 0x73d   :  { %3030 = vpow2.f32 %v2432_v44  ;;  %v661_v44 = vsel %vm629_vm1, %v596_v42, %v645_v18 }
 0x740   :  { %v2415_v19 = vpop.xlane.xlu2 %2414 }
 0x741   :  { %v2431_v46 = vsub.f32 %v5076_v35, %v2415_v19  ;;  %v2362_v31 = vpop.f32.mrf.mxu2  ;;  %v2387_v35 = vpop.xlane.xlu0 %2386 }
 0x742   :  { %v5272_v5 = vsel %vm5737_vm5, %v2362_v31, -1e+30  ;;  %v2417_v30 = vsub.f32 %v5080_v56, %v2387_v35 }
 0x743   :  { %v2462_v55 = vmul.f32 1.442695, %v2431_v46  ;;  %2572 = vmax.xlane.f32.xlu0 %v5272_v5  ;;  %v5277_v24 = vpop.eup %3030 }
 0x744   :  { %v2434_v54 = vmul.f32 1.442695, %v2417_v30 }
 0x745   :  { %3032 = vpow2.f32 %v2462_v55 }
 0x746   :  { %v2545_v58 = vpop.xlane.xlu1 %2544 }
 0x747   :  { %v2576_v6 = vsub.f32 %v5087_v10, %v2545_v58  ;;  %v598_v10 = vadd.f32 %v5225_v47, %v597_v11 }
 0x749   :  { %v2592_v23 = vmul.f32 1.442695, %v2576_v6  ;;  %v2365_v21 = vpop.f32.mrf.mxu2  ;;  %v646_v27 = vmul.f32 %v598_v10, %v3333_v36  ;;  %vm630_vm6 = vcmp.gt.f32.partialorder %v598_v10, 0.0 }
 0x74b   :  { %v5279_v9 = vpop.eup %3032  ;;  %3034 = vpow2.f32 %v2592_v23  ;;  %2464 = vadd.xlane.f32.xlu0 %v5277_v24  ;;  %v662_v19 = vsel %vm630_vm6, %v598_v10, %v646_v27 }
 0x74c   :  { %2494 = vadd.xlane.f32.xlu1 %v5279_v9  ;;  %v679_v63 = vpack.c.bf16 %v662_v19, %v661_v44 }
 0x74e   :  { %v2547_v29 = vpop.xlane.xlu2 %2546  ;;  %v2389_v28 = vpop.xlane.xlu1 %2388  ;;  %2817 = vmatmul.msk.bf16.gmra.mxu3 %vm5740_vm2, %v679_v63 }
 0x74f   :  { %v2577_v4 = vsub.f32 %v5092_v3, %v2547_v29  ;;  %v2418_v40 = vsub.f32 %v5096_v25, %v2389_v28  ;;  %v5295_v3 = vsel %vm5739_vm7, %v2365_v21, -1e+30  ;;  %v600_v25 = vpop.f32.mrf.mxu3  ;;  %vm5744_vm7 = vmmov %vm5738_vm0 }
 0x751   :  { %v5290_v56 = vpop.eup %3034  ;;  %v2594_v26 = vmul.f32 1.442695, %v2577_v4  ;;  %v2436_v50 = vmul.f32 1.442695, %v2418_v40 }
 0x752   :  { %2624 = vadd.xlane.f32.xlu2 %v5290_v56 }
 0x753   :  { %3036 = vpow2.f32 %v2594_v26 }
 0x754   :  { %3038 = vpow2.f32 %v2436_v50  ;;  %2574 = vmax.xlane.f32.xlu1 %v5295_v3 }
 0x755   :  { %3040 = vpow2.f32 %v2434_v54 }
 0x756   :  { %v2549_v14 = vpop.xlane.xlu0 %2548  ;;  %v2391_v46 = vpop.xlane.xlu2 %2390 }
 0x757   :  { %v2578_v31 = vsub.f32 %v5109_v8, %v2549_v14  ;;  %v2419_v55 = vsub.f32 %v5113_v57, %v2391_v46  ;;  %v601_v8 = vadd.f32 %v5225_v47, %v600_v25  ;;  %v602_v57 = vpop.f32.mrf.mxu3 }
 0x758   :  { %v603_v58 = vadd.f32 %v5225_v47, %v602_v57 }
 0x759   :  { %v5301_v0 = vpop.eup %3036  ;;  %v2596_v17 = vmul.f32 1.442695, %v2578_v31  ;;  %v2438_v32 = vmul.f32 1.442695, %v2419_v55  ;;  %v647_v42 = vmul.f32 %v601_v8, %v3333_v36  ;;  %vm631_vm14 = vcmp.gt.f32.partialorder %v601_v8, 0.0 }
 0x75a   :  { %v5303_v22 = vpop.eup %3038  ;;  %2626 = vadd.xlane.f32.xlu0 %v5301_v0  ;;  %v648_v11 = vmul.f32 %v603_v58, %v3333_v36  ;;  %vm632_vm11 = vcmp.gt.f32.partialorder %v603_v58, 0.0 }
 0x75b   :  { %v5306_v39 = vpop.eup %3040  ;;  %2468 = vadd.xlane.f32.xlu2 %v5303_v22  ;;  %3042 = vpow2.f32 %v2438_v32  ;;  %v663_v40 = vsel %vm631_vm14, %v601_v8, %v647_v42 }
 0x75c   :  { %2466 = vadd.xlane.f32.xlu1 %v5306_v39  ;;  %3044 = vpow2.f32 %v2596_v17 }
 0x75e   :  { %v2551_v6 = vpop.xlane.xlu1 %2550  ;;  %v2393_v35 = vpop.xlane.xlu0 %2392 }
 0x75f   :  { %v2579_v23 = vsub.f32 %v5119_v59, %v2551_v6  ;;  %v2420_v30 = vsub.f32 %v5123_v37, %v2393_v35  ;;  %v605_v59 = vpop.f32.mrf.mxu3  ;;  %v664_v37 = vsel %vm632_vm11, %v603_v58, %v648_v11 }
 0x760   :  { %v680_v54 = vpack.c.bf16 %v664_v37, %v663_v40  ;;  %v606_v50 = vadd.f32 %v5225_v47, %v605_v59 }
 0x761   :  { %v2598_v10 = vmul.f32 1.442695, %v2579_v23  ;;  %v2440_v29 = vmul.f32 1.442695, %v2420_v30  ;;  %v5316_v28 = vpop.eup %3042 }
 0x762   :  { %v5318_v4 = vpop.eup %3044  ;;  %2470 = vadd.xlane.f32.xlu0 %v5316_v28  ;;  %2818 = vmatmul.msk.bf16.gmra.mxu3 %vm5741_vm8, %v680_v54  ;;  %vm633_vm9 = vcmp.gt.f32.partialorder %v606_v50, 0.0 }
 0x763   :  { %3046 = vpow2.f32 %v2598_v10 }
 0x764   :  { %2628 = vadd.xlane.f32.xlu1 %v5318_v4  ;;  %3048 = vpow2.f32 %v2440_v29 }
 0x766   :  { %v2553_v21 = vpop.xlane.xlu2 %2552  ;;  %v2395_v18 = vpop.xlane.xlu1 %2394 }
 0x767   :  { %v2580_v27 = vsub.f32 %v5136_v53, %v2553_v21  ;;  %v2421_v26 = vsub.f32 %v5140_v12, %v2395_v18  ;;  %v649_v53 = vmul.f32 %v606_v50, %v3333_v36  ;;  %v607_v14 = vpop.f32.mrf.mxu3 }
 0x768   :  { %v608_v12 = vadd.f32 %v5225_v47, %v607_v14 }
 0x769   :  { %v5326_v25 = vpop.eup %3046  ;;  %v2600_v44 = vmul.f32 1.442695, %v2580_v27  ;;  %v2442_v19 = vmul.f32 1.442695, %v2421_v26  ;;  %v665_v8 = vsel %vm633_vm9, %v606_v50, %v649_v53 }
 0x76a   :  { %2630 = vadd.xlane.f32.xlu2 %v5326_v25  ;;  %v5329_v63 = vpop.eup %3048  ;;  %vm634_vm13 = vcmp.gt.f32.partialorder %v608_v12, 0.0  ;;  %v650_v32 = vmul.f32 %v608_v12, %v3333_v36 }
 0x76b   :  { %3050 = vpow2.f32 %v2600_v44 }
 0x76c   :  { %3052 = vpow2.f32 %v2442_v19  ;;  %2472 = vadd.xlane.f32.xlu1 %v5329_v63  ;;  %v666_v35 = vsel %vm634_vm13, %v608_v12, %v650_v32 }
 0x76d   :  { %v681_v30 = vpack.c.bf16 %v666_v35, %v665_v8 }
 0x76e   :  { %v2555_v46 = vpop.xlane.xlu0 %2554  ;;  %v2397_v31 = vpop.xlane.xlu2 %2396 }
 0x76f   :  { %v2581_v55 = vsub.f32 %v5146_v33, %v2555_v46  ;;  %v2422_v17 = vsub.f32 %v5150_v41, %v2397_v31  ;;  %v610_v33 = vpop.f32.mrf.mxu3 }
 0x770   :  { %v611_v29 = vadd.f32 %v5225_v47, %v610_v33 }
 0x771   :  { %v5337_v57 = vpop.eup %3050  ;;  %v2602_v58 = vmul.f32 1.442695, %v2581_v55  ;;  %v2444_v6 = vmul.f32 1.442695, %v2422_v17 }
 0x772   :  { %v5339_v23 = vpop.eup %3052  ;;  %2632 = vadd.xlane.f32.xlu0 %v5337_v57  ;;  %2819 = vmatmul.msk.bf16.gmra.mxu3 %vm5742_vm15, %v681_v30  ;;  %vm635_vm12 = vcmp.gt.f32.partialorder %v611_v29, 0.0 }
 0x773   :  { %3054 = vpow2.f32 %v2602_v58  ;;  %2474 = vadd.xlane.f32.xlu2 %v5339_v23 }
 0x774   :  { %3056 = vpow2.f32 %v2444_v6 }
 0x776   :  { %v2557_v41 = vpop.xlane.xlu1 %2556  ;;  %v2399_v42 = vpop.xlane.xlu0 %2398 }
 0x777   :  { %v2582_v11 = vsub.f32 %v5169_v16, %v2557_v41  ;;  %v2423_v10 = vsub.f32 %v5173_v43, %v2399_v42  ;;  %v651_v16 = vmul.f32 %v611_v29, %v3333_v36  ;;  %v612_v21 = vpop.f32.mrf.mxu3 }
 0x778   :  { %v613_v43 = vadd.f32 %v5225_v47, %v612_v21 }
 0x779   :  { %v5347_v59 = vpop.eup %3054  ;;  %v2604_v40 = vmul.f32 1.442695, %v2582_v11  ;;  %v2446_v37 = vmul.f32 1.442695, %v2423_v10  ;;  %v667_v19 = vsel %vm635_vm12, %v611_v29, %v651_v16 }
 0x77a   :  { %v5349_v54 = vpop.eup %3056  ;;  %2634 = vadd.xlane.f32.xlu1 %v5347_v59  ;;  %vm636_vm3 = vcmp.gt.f32.partialorder %v613_v43, 0.0  ;;  %v652_v44 = vmul.f32 %v613_v43, %v3333_v36 }
 0x77b   :  { %3058 = vpow2.f32 %v2604_v40  ;;  %2476 = vadd.xlane.f32.xlu0 %v5349_v54 }
 0x77c   :  { %3060 = vpow2.f32 %v2446_v37  ;;  %v668_v46 = vsel %vm636_vm3, %v613_v43, %v652_v44 }
 0x77d   :  { %v682_v55 = vpack.c.bf16 %v668_v46, %v667_v19 }
 0x77e   :  { %v2559_v18 = vpop.xlane.xlu2 %2558  ;;  %v2401_v27 = vpop.xlane.xlu1 %2400 }
 0x77f   :  { %v2583_v26 = vsub.f32 %v5179_v7, %v2559_v18  ;;  %v2424_v50 = vsub.f32 %v5183_v15, %v2401_v27  ;;  %v615_v7 = vpop.f32.mrf.mxu3 }
 0x780   :  { %v616_v58 = vadd.f32 %v5225_v47, %v615_v7 }
 0x781   :  { %v5358_v53 = vpop.eup %3058  ;;  %v2606_v14 = vmul.f32 1.442695, %v2583_v26  ;;  %v2448_v12 = vmul.f32 1.442695, %v2424_v50 }
 0x782   :  { %v5360_v31 = vpop.eup %3060  ;;  %2636 = vadd.xlane.f32.xlu2 %v5358_v53  ;;  %2820 = vmatmul.msk.bf16.gmra.mxu3 %vm5743_vm4, %v682_v55  ;;  %vm637_vm10 = vcmp.gt.f32.partialorder %v616_v58, 0.0 }
 0x783   :  { %3062 = vpow2.f32 %v2606_v14  ;;  %2478 = vadd.xlane.f32.xlu1 %v5360_v31 }
 0x784   :  { %3064 = vpow2.f32 %v2448_v12 }
 0x786   :  { %v2561_v15 = vpop.xlane.xlu0 %2560  ;;  %v2403_v17 = vpop.xlane.xlu2 %2402 }
 0x787   :  { %v2584_v32 = vsub.f32 %v5196_v60, %v2561_v15  ;;  %v2425_v8 = vsub.f32 %v5200_v20, %v2403_v17  ;;  %v653_v60 = vmul.f32 %v616_v58, %v3333_v36  ;;  %v617_v41 = vpop.f32.mrf.mxu3 }
 0x788   :  { %v618_v20 = vadd.f32 %v5225_v47, %v617_v41 }
 0x789   :  { %v5368_v6 = vpop.eup %3062  ;;  %v2608_v35 = vmul.f32 1.442695, %v2584_v32  ;;  %v2450_v30 = vmul.f32 1.442695, %v2425_v8  ;;  %v669_v37 = vsel %vm637_vm10, %v616_v58, %v653_v60 }
 0x78a   :  { %v5370_v33 = vpop.eup %3064  ;;  %2638 = vadd.xlane.f32.xlu0 %v5368_v6  ;;  %vm638_vm5 = vcmp.gt.f32.partialorder %v618_v20, 0.0  ;;  %v654_v40 = vmul.f32 %v618_v20, %v3333_v36 }
 0x78b   :  { %3066 = vpow2.f32 %v2608_v35  ;;  %2480 = vadd.xlane.f32.xlu2 %v5370_v33 }
 0x78c   :  { %3068 = vpow2.f32 %v2450_v30  ;;  %v670_v18 = vsel %vm638_vm5, %v618_v20, %v654_v40 }
 0x78d   :  { %v683_v26 = vpack.c.bf16 %v670_v18, %v669_v37 }
 0x78e   :  { %v2563_v42 = vpop.xlane.xlu1 %2562  ;;  %v2405_v11 = vpop.xlane.xlu0 %2404 }
 0x78f   :  { %v2585_v10 = vsub.f32 %v5206_v61, %v2563_v42  ;;  %v2426_v29 = vsub.f32 %v5210_v48, %v2405_v11  ;;  %v620_v61 = vpop.f32.mrf.mxu3 }
 0x790   :  { %v621_v14 = vadd.f32 %v5225_v47, %v620_v61 }
 0x791   :  { %v5379_v16 = vpop.eup %3066  ;;  %v2610_v21 = vmul.f32 1.442695, %v2585_v10  ;;  %v2452_v43 = vmul.f32 1.442695, %v2426_v29 }
 0x792   :  { %v5381_v27 = vpop.eup %3068  ;;  %2640 = vadd.xlane.f32.xlu1 %v5379_v16  ;;  %2821 = vmatmul.msk.bf16.gmra.mxu3 %vm5738_vm0, %v683_v26  ;;  %vm639_vm1 = vcmp.gt.f32.partialorder %v621_v14, 0.0 }
 0x793   :  { %3070 = vpow2.f32 %v2610_v21  ;;  %2482 = vadd.xlane.f32.xlu0 %v5381_v27 }
 0x794   :  { %3072 = vpow2.f32 %v2452_v43 }
 0x796   :  { %v2565_v48 = vpop.xlane.xlu2 %2564  ;;  %v2407_v50 = vpop.xlane.xlu1 %2406 }
 0x797   :  { %v2586_v44 = vsub.f32 %v5216_v13, %v2565_v48  ;;  %v2427_v19 = vsub.f32 %v5220_v2, %v2407_v50  ;;  %v655_v13 = vmul.f32 %v621_v14, %v3333_v36  ;;  %v622_v15 = vpop.f32.mrf.mxu3 }
 0x798   :  { %v623_v2 = vadd.f32 %v5225_v47, %v622_v15 }
 0x799   :  { %v5389_v12 = vpop.eup %3070  ;;  %v2612_v46 = vmul.f32 1.442695, %v2586_v44  ;;  %v2454_v55 = vmul.f32 1.442695, %v2427_v19  ;;  %v671_v30 = vsel %vm639_vm1, %v621_v14, %v655_v13 }
 0x79a   :  { %v5391_v7 = vpop.eup %3072  ;;  %2642 = vadd.xlane.f32.xlu2 %v5389_v12  ;;  %vm640_vm6 = vcmp.gt.f32.partialorder %v623_v2, 0.0  ;;  %v656_v35 = vmul.f32 %v623_v2, %v3333_v36 }
 0x79b   :  { %3074 = vpow2.f32 %v2612_v46  ;;  %2484 = vadd.xlane.f32.xlu1 %v5391_v7 }
 0x79c   :  { %3076 = vpow2.f32 %v2454_v55  ;;  %v672_v42 = vsel %vm640_vm6, %v623_v2, %v656_v35 }
 0x79d   :  { %v684_v47 = vpack.c.bf16 %v672_v42, %v671_v30 }
 0x79e   :  { %v2567_v17 = vpop.xlane.xlu0 %2566  ;;  %v2409_v32 = vpop.xlane.xlu2 %2408 }
 0x79f   :  { %v2587_v8 = vsub.f32 %v5232_v45, %v2567_v17  ;;  %v2428_v58 = vsub.f32 %v5236_v62, %v2409_v32 }
 0x7a1   :  { %v5400_v60 = vpop.eup %3074  ;;  %v2614_v41 = vmul.f32 1.442695, %v2587_v8  ;;  %v2456_v20 = vmul.f32 1.442695, %v2428_v58 }
 0x7a2   :  { %v5402_v11 = vpop.eup %3076  ;;  %2644 = vadd.xlane.f32.xlu0 %v5400_v60  ;;  %2822 = vmatmul.msk.bf16.gmra.mxu3 %vm5744_vm7, %v684_v47 }
 0x7a3   :  { %3078 = vpow2.f32 %v2614_v41  ;;  %2486 = vadd.xlane.f32.xlu2 %v5402_v11 }
 0x7a4   :  { %3080 = vpow2.f32 %v2456_v20 }
 0x7a6   :  { %v2569_v45 = vpop.xlane.xlu1 %2568  ;;  %v2411_v62 = vpop.xlane.xlu0 %2410 }
 0x7a7   :  { %v2429_v10 = vsub.f32 %v5249_v38, %v2411_v62  ;;  %v2588_v37 = vsub.f32 %v5245_v49, %v2569_v45 }
 0x7a9   :  { %v5408_v36 = vpop.eup %3078  ;;  %v2458_v29 = vmul.f32 1.442695, %v2429_v10  ;;  %v2616_v43 = vmul.f32 1.442695, %v2588_v37 }
 0x7aa   :  { %v5410_v40 = vpop.eup %3080  ;;  %2646 = vadd.xlane.f32.xlu1 %v5408_v36 }
 0x7ab   :  { %2488 = vadd.xlane.f32.xlu0 %v5410_v40  ;;  %3082 = vpow2.f32 %v2458_v29 }
 0x7ac   :  { %3084 = vpow2.f32 %v2616_v43 }
 0x7ae   :  { %v2413_v21 = vpop.xlane.xlu1 %2412  ;;  %v2571_v26 = vpop.xlane.xlu2 %2570 }
 0x7af   :  { %v2430_v18 = vsub.f32 %v5260_v1, %v2413_v21  ;;  %v2589_v48 = vsub.f32 %v5256_v34, %v2571_v26  ;;  %v5432_v34 = vld [vmem:[%s5610_s5 + $0x20] ss:$0 sm:$0xff] }
 0x7b1   :  { %v2460_v38 = vmul.f32 1.442695, %v2430_v18  ;;  %v5416_v61 = vpop.eup %3082  ;;  %v2618_v44 = vmul.f32 1.442695, %v2589_v48 }
 0x7b2   :  { %2490 = vadd.xlane.f32.xlu2 %v5416_v61  ;;  %v5421_v19 = vpop.eup %3084 }
 0x7b3   :  { %3086 = vpow2.f32 %v2460_v38 }
 0x7b6   :  { %v2573_v50 = vpop.xlane.xlu0 %2572 }
 0x7b7   :  { %v2590_v49 = vsub.f32 %v5272_v5, %v2573_v50  ;;  %v722_v5 = vpop.f32.mrf.mxu3 }
 0x7b8   :  { %v723_v15 = vadd.f32 %v5432_v34, %v722_v5 }
 0x7b9   :  { %v2620_v14 = vmul.f32 1.442695, %v2590_v49  ;;  %v5423_v46 = vpop.eup %3086 }
 0x7ba   :  { %2648 = vadd.xlane.f32.xlu2 %v5421_v19  ;;  %2492 = vadd.xlane.f32.xlu0 %v5423_v46  ;;  %762 = vst [vmem:[%s5611_s6] sm:$0xff] %v723_v15 }
 0x7bb   :  { %3088 = vpow2.f32 %v2620_v14 }
 0x7bc   :  { %3090 = vpow2.f32 %v2618_v44 }
 0x7be   :  { %v2465_v13 = vpop.xlane.xlu0 %2464 }
 0x7bf   :  { %v5427_v1 = vpop.xlane.xlu1 %2494  ;;  %3092 = vrcp.f32 %v2465_v13  ;;  %v724_v8 = vpop.f32.mrf.mxu3 }
 0x7c0   :  { %v725_v35 = vadd.f32 %v5432_v34, %v724_v8 }
 0x7c1   :  { %v5434_v55 = vpop.eup %3088 }
 0x7c2   :  { %v5437_v2 = vpop.eup %3090  ;;  %2652 = vadd.xlane.f32.xlu1 %v5434_v55  ;;  %763 = vst [vmem:[%s5611_s6 + $0x8] sm:$0xff] %v725_v35 }
 0x7c3   :  { %2650 = vadd.xlane.f32.xlu0 %v5437_v2 }
 0x7c5   :  { %v2625_v17 = vpop.xlane.xlu2 %2624  ;;  %v3093_v30 = vpop.eup %3092 }
 0x7c6   :  { %3094 = vrcp.f32 %v2625_v17  ;;  %v2512_v42 = vmul.f32 %v3093_v30, %v5277_v24  ;;  %v5745_v30 = vld [vmem:[#allocation19_spill] sm:$0xff] }
 0x7c7   :  { %v2575_v32 = vpop.xlane.xlu1 %2574  ;;  %v727_v29 = vpop.f32.mrf.mxu3 }
 0x7c8   :  { %v2591_v58 = vsub.f32 %v5295_v3, %v2575_v32  ;;  %v728_v3 = vadd.f32 %v5432_v34, %v727_v29  ;;  %v5746_v29 = vld [vmem:[#allocation12_spill] sm:$0xff] }
 0x7ca   :  { %v2622_v41 = vmul.f32 1.442695, %v2591_v58  ;;  %764 = vst [vmem:[%s5611_s6 + $0x10] sm:$0xff] %v728_v3 }
 0x7cc   :  { %v3095_v20 = vpop.eup %3094  ;;  %3096 = vpow2.f32 %v2622_v41 }
 0x7cd   :  { %v2672_v47 = vmul.f32 %v3095_v20, %v5290_v56  ;;  %v2627_v45 = vpop.xlane.xlu0 %2626 }
 0x7ce   :  { %3098 = vrcp.f32 %v2627_v45  ;;  %v2469_v24 = vpop.xlane.xlu2 %2468 }
 0x7cf   :  { %v2688_v62 = vsub.f32 %v2512_v42, %v2672_v47  ;;  %v2467_v10 = vpop.xlane.xlu1 %2466  ;;  %v729_v48 = vpop.f32.mrf.mxu3 }
 0x7d0   :  { %3100 = vrcp.f32 %v2467_v10  ;;  %v730_v50 = vadd.f32 %v5432_v34, %v729_v48  ;;  %v5747_v48 = vld [vmem:[#allocation18_spill] sm:$0xff] }
 0x7d1   :  { %v2704_v37 = vadd.f32 %v2688_v62, %v3679_v52  ;;  %3102 = vrcp.f32 %v2469_v24 }
 0x7d2   :  { %v5453_v21 = vpop.eup %3096  ;;  %765 = vst [vmem:[%s5611_s6 + $0x18] sm:$0xff] %v730_v50 }
 0x7d3   :  { %v2720_v43 = vmul.f32 0.5, %v2704_v37  ;;  %2654 = vadd.xlane.f32.xlu2 %v5453_v21 }
 0x7d4   :  { %v3099_v56 = vpop.eup %3098 }
 0x7d5   :  { %2736 = vst [vmem:[%s5613_s8] sm:$0xff] %v2720_v43  ;;  %v2673_v26 = vmul.f32 %v3099_v56, %v5301_v0  ;;  %v2471_v44 = vpop.xlane.xlu0 %2470 }
 0x7d6   :  { %v3101_v18 = vpop.eup %3100 }
 0x7d7   :  { %v2513_v52 = vmul.f32 %v3101_v18, %v5306_v39  ;;  %v2629_v38 = vpop.xlane.xlu1 %2628  ;;  %v3103_v5 = vpop.eup %3102 }
 0x7d8   :  { %3104 = vrcp.f32 %v2629_v38  ;;  %v2514_v39 = vmul.f32 %v3103_v5, %v5303_v22  ;;  %v732_v32 = vpop.f32.mrf.mxu3 }
 0x7d9   :  { %v2689_v49 = vsub.f32 %v2513_v52, %v2673_v26  ;;  %3106 = vrcp.f32 %v2471_v44  ;;  %v733_v8 = vadd.f32 %v5432_v34, %v732_v32 }
 0x7db   :  { %v2705_v14 = vadd.f32 %v2689_v49, %v3673_v51  ;;  %766 = vst [vmem:[%s5611_s6 + $0x20] sm:$0xff] %v733_v8 }
 0x7dd   :  { %v2721_v13 = vmul.f32 0.5, %v2705_v14  ;;  %v2631_v15 = vpop.xlane.xlu2 %2630 }
 0x7de   :  { %v3105_v0 = vpop.eup %3104  ;;  %3108 = vrcp.f32 %v2631_v15 }
 0x7df   :  { %2737 = vst [vmem:[%s5613_s8 + $0x8] sm:$0xff] %v2721_v13  ;;  %v2674_v17 = vmul.f32 %v3105_v0, %v5318_v4  ;;  %v2473_v35 = vpop.xlane.xlu1 %2472  ;;  %v3107_v51 = vpop.eup %3106 }
 0x7e0   :  { %3110 = vrcp.f32 %v2473_v35  ;;  %v2515_v22 = vmul.f32 %v3107_v51, %v5316_v28  ;;  %v734_v62 = vpop.f32.mrf.mxu3 }
 0x7e1   :  { %v2690_v58 = vsub.f32 %v2514_v39, %v2674_v17  ;;  %v735_v10 = vadd.f32 %v5432_v34, %v734_v62  ;;  %v5748_v17 = vld [vmem:[#allocation17_spill] sm:$0xff] }
 0x7e3   :  { %v2706_v41 = vadd.f32 %v2690_v58, %v5745_v30  ;;  %767 = vst [vmem:[%s5611_s6 + $0x28] sm:$0xff] %v735_v10 }
 0x7e4   :  { %v3109_v20 = vpop.eup %3108 }
 0x7e5   :  { %v2722_v42 = vmul.f32 0.5, %v2706_v41  ;;  %v2675_v47 = vmul.f32 %v3109_v20, %v5326_v25  ;;  %v2633_v4 = vpop.xlane.xlu0 %2632 }
 0x7e6   :  { %3112 = vrcp.f32 %v2633_v4  ;;  %v2475_v37 = vpop.xlane.xlu2 %2474  ;;  %v3111_v43 = vpop.eup %3110 }
 0x7e7   :  { %2738 = vst [vmem:[%s5613_s8 + $0x10] sm:$0xff] %v2722_v42  ;;  %v2691_v45 = vsub.f32 %v2515_v22, %v2675_v47  ;;  %3114 = vrcp.f32 %v2475_v37  ;;  %v2516_v24 = vmul.f32 %v3111_v43, %v5329_v63  ;;  %v5749_v42 = vld [vmem:[#allocation9_spill] sm:$0xff] }
 0x7e8   :  { %v737_v52 = vpop.f32.mrf.mxu3 }
 0x7e9   :  { %v2707_v3 = vadd.f32 %v2691_v45, %v5746_v29  ;;  %v738_v38 = vadd.f32 %v5432_v34, %v737_v52 }
 0x7eb   :  { %v2723_v28 = vmul.f32 0.5, %v2707_v3  ;;  %768 = vst [vmem:[%s5611_s6 + $0x30] sm:$0xff] %v738_v38 }
 0x7ec   :  { %v3113_v25 = vpop.eup %3112 }
 0x7ed   :  { %2739 = vst [vmem:[%s5613_s8 + $0x18] sm:$0xff] %v2723_v28  ;;  %v2676_v56 = vmul.f32 %v3113_v25, %v5337_v57  ;;  %v2635_v18 = vpop.xlane.xlu1 %2634  ;;  %v3115_v44 = vpop.eup %3114  ;;  %v5750_v28 = vld [vmem:[#allocation15_spill] sm:$0xff] }
 0x7ee   :  { %3116 = vrcp.f32 %v2635_v18  ;;  %v2477_v49 = vpop.xlane.xlu0 %2476  ;;  %v2517_v63 = vmul.f32 %v3115_v44, %v5339_v23 }
 0x7ef   :  { %v2692_v26 = vsub.f32 %v2516_v24, %v2676_v56  ;;  %3118 = vrcp.f32 %v2477_v49  ;;  %v5751_v49 = vld [vmem:[#allocation16_spill] sm:$0xff] }
 0x7f0   :  { %v739_v0 = vpop.f32.mrf.mxu3 }
 0x7f1   :  { %v2708_v50 = vadd.f32 %v2692_v26, %v5747_v48  ;;  %v740_v39 = vadd.f32 %v5432_v34, %v739_v0 }
 0x7f3   :  { %v2724_v14 = vmul.f32 0.5, %v2708_v50  ;;  %769 = vst [vmem:[%s5611_s6 + $0x38] sm:$0xff] %v740_v39 }
 0x7f4   :  { %v3117_v5 = vpop.eup %3116 }
 0x7f5   :  { %2740 = vst [vmem:[%s5613_s8 + $0x20] sm:$0xff] %v2724_v14  ;;  %v2677_v57 = vmul.f32 %v3117_v5, %v5347_v59  ;;  %v2637_v13 = vpop.xlane.xlu2 %2636  ;;  %v3119_v58 = vpop.eup %3118 }
 0x7f6   :  { %3120 = vrcp.f32 %v2637_v13  ;;  %v2479_v8 = vpop.xlane.xlu1 %2478  ;;  %v2518_v51 = vmul.f32 %v3119_v58, %v5349_v54 }
 0x7f7   :  { %v2693_v15 = vsub.f32 %v2517_v63, %v2677_v57  ;;  %3122 = vrcp.f32 %v2479_v8 }
 0x7f8   :  { %v742_v20 = vpop.f32.mrf.mxu3 }
 0x7f9   :  { %v2709_v32 = vadd.f32 %v2693_v15, %v5748_v17  ;;  %v743_v22 = vadd.f32 %v5432_v34, %v742_v20  ;;  %v5752_v17 = vld [vmem:[#allocation7_spill] sm:$0xff]  ;;  %v5753_v20 = vld [vmem:[#allocation13_spill] sm:$0xff] }
 0x7fb   :  { %v2725_v23 = vmul.f32 0.5, %v2709_v32  ;;  %770 = vst [vmem:[%s5611_s6 + $0x40] sm:$0xff] %v743_v22 }
 0x7fc   :  { %v3121_v35 = vpop.eup %3120 }
 0x7fd   :  { %2741 = vst [vmem:[%s5613_s8 + $0x28] sm:$0xff] %v2725_v23  ;;  %v2678_v59 = vmul.f32 %v3121_v35, %v5358_v53  ;;  %v2639_v30 = vpop.xlane.xlu0 %2638  ;;  %v3123_v45 = vpop.eup %3122 }
 0x7fe   :  { %3124 = vrcp.f32 %v2639_v30  ;;  %v2481_v4 = vpop.xlane.xlu2 %2480  ;;  %v2519_v53 = vmul.f32 %v3123_v45, %v5360_v31 }
 0x7ff   :  { %v2694_v41 = vsub.f32 %v2518_v51, %v2678_v59  ;;  %3126 = vrcp.f32 %v2481_v4 }
 0x800   :  { %v744_v37 = vpop.f32.mrf.mxu3 }
 0x801   :  { %v2710_v47 = vadd.f32 %v2694_v41, %v5749_v42  ;;  %v745_v43 = vadd.f32 %v5432_v34, %v744_v37 }
 0x803   :  { %v2726_v54 = vmul.f32 0.5, %v2710_v47  ;;  %771 = vst [vmem:[%s5611_s6 + $0x48] sm:$0xff] %v745_v43 }
 0x804   :  { %v3125_v62 = vpop.eup %3124 }
 0x805   :  { %2742 = vst [vmem:[%s5613_s8 + $0x30] sm:$0xff] %v2726_v54  ;;  %v2679_v10 = vmul.f32 %v3125_v62, %v5368_v6  ;;  %v2641_v29 = vpop.xlane.xlu1 %2640  ;;  %v3127_v56 = vpop.eup %3126 }
 0x806   :  { %3128 = vrcp.f32 %v2641_v29  ;;  %v2483_v24 = vpop.xlane.xlu0 %2482  ;;  %v2520_v31 = vmul.f32 %v3127_v56, %v5370_v33  ;;  %v5754_v29 = vld [vmem:[#allocation14_spill] sm:$0xff] }
 0x807   :  { %v2695_v3 = vsub.f32 %v2519_v53, %v2679_v10  ;;  %3130 = vrcp.f32 %v2483_v24 }
 0x808   :  { %v747_v48 = vpop.f32.mrf.mxu3 }
 0x809   :  { %v2711_v25 = vadd.f32 %v2695_v3, %v5750_v28  ;;  %v748_v50 = vadd.f32 %v5432_v34, %v747_v48 }
 0x80b   :  { %v2727_v18 = vmul.f32 0.5, %v2711_v25  ;;  %772 = vst [vmem:[%s5611_s6 + $0x50] sm:$0xff] %v748_v50  ;;  %v5755_v50 = vld [vmem:[#allocation10_spill] sm:$0xff] }
 0x80c   :  { %v3129_v26 = vpop.eup %3128 }
 0x80d   :  { %2743 = vst [vmem:[%s5613_s8 + $0x38] sm:$0xff] %v2727_v18  ;;  %v2680_v6 = vmul.f32 %v3129_v26, %v5379_v16  ;;  %v2643_v52 = vpop.xlane.xlu2 %2642  ;;  %v3131_v5 = vpop.eup %3130 }
 0x80e   :  { %3132 = vrcp.f32 %v2643_v52  ;;  %v2485_v14 = vpop.xlane.xlu1 %2484  ;;  %v2521_v57 = vmul.f32 %v3131_v5, %v5381_v27 }
 0x80f   :  { %v2696_v38 = vsub.f32 %v2520_v31, %v2680_v6  ;;  %3134 = vrcp.f32 %v2485_v14 }
 0x810   :  { %v749_v0 = vpop.f32.mrf.mxu3 }
 0x811   :  { %v2712_v44 = vadd.f32 %v2696_v38, %v5751_v49  ;;  %v750_v39 = vadd.f32 %v5432_v34, %v749_v0  ;;  %v5757_v0 = vld [vmem:[#allocation6_spill] sm:$0xff] }
 0x813   :  { %v2728_v33 = vmul.f32 0.5, %v2712_v44  ;;  %773 = vst [vmem:[%s5611_s6 + $0x58] sm:$0xff] %v750_v39 }
 0x814   :  { %v3133_v63 = vpop.eup %3132 }
 0x815   :  { %2744 = vst [vmem:[%s5613_s8 + $0x40] sm:$0xff] %v2728_v33  ;;  %v2681_v16 = vmul.f32 %v3133_v63, %v5389_v12  ;;  %v2645_v13 = vpop.xlane.xlu0 %2644  ;;  %v3135_v58 = vpop.eup %3134 }
 0x816   :  { %3136 = vrcp.f32 %v2645_v13  ;;  %v2487_v8 = vpop.xlane.xlu2 %2486  ;;  %v2522_v12 = vmul.f32 %v3135_v58, %v5391_v7  ;;  %v5756_v13 = vld [vmem:[#allocation8_spill] sm:$0xff] }
 0x817   :  { %v2697_v15 = vsub.f32 %v2521_v57, %v2681_v16  ;;  %3138 = vrcp.f32 %v2487_v8 }
 0x818   :  { %v752_v30 = vpop.f32.mrf.mxu3 }
 0x819   :  { %v2713_v32 = vadd.f32 %v2697_v15, %v5752_v17  ;;  %v753_v41 = vadd.f32 %v5432_v34, %v752_v30 }
 0x81b   :  { %v2729_v27 = vmul.f32 0.5, %v2713_v32  ;;  %774 = vst [vmem:[%s5611_s6 + $0x60] sm:$0xff] %v753_v41 }
 0x81c   :  { %v3137_v23 = vpop.eup %3136 }
 0x81d   :  { %2745 = vst [vmem:[%s5613_s8 + $0x48] sm:$0xff] %v2729_v27  ;;  %v2682_v35 = vmul.f32 %v3137_v23, %v5400_v60  ;;  %v2647_v51 = vpop.xlane.xlu1 %2646  ;;  %v3139_v42 = vpop.eup %3138  ;;  %v5758_v27 = vld [vmem:[#allocation11_spill] sm:$0xff] }
 0x81e   :  { %3140 = vrcp.f32 %v2647_v51  ;;  %v2523_v45 = vmul.f32 %v3139_v42, %v5402_v11  ;;  %v2489_v60 = vpop.xlane.xlu0 %2488 }
 0x81f   :  { %v2698_v59 = vsub.f32 %v2522_v12, %v2682_v35  ;;  %3142 = vrcp.f32 %v2489_v60 }
 0x820   :  { %v754_v53 = vpop.f32.mrf.mxu3 }
 0x821   :  { %v2714_v22 = vadd.f32 %v2698_v59, %v5753_v20  ;;  %v755_v10 = vadd.f32 %v5432_v34, %v754_v53 }
 0x823   :  { %v2730_v47 = vmul.f32 0.5, %v2714_v22  ;;  %775 = vst [vmem:[%s5611_s6 + $0x68] sm:$0xff] %v755_v10 }
 0x824   :  { %v3141_v4 = vpop.eup %3140 }
 0x825   :  { %2746 = vst [vmem:[%s5613_s8 + $0x50] sm:$0xff] %v2730_v47  ;;  %v2683_v7 = vmul.f32 %v3141_v4, %v5408_v36  ;;  %v2491_v54 = vpop.xlane.xlu2 %2490  ;;  %v3143_v25 = vpop.eup %3142 }
 0x826   :  { %v2524_v18 = vmul.f32 %v3143_v25, %v5410_v40 }
 0x827   :  { %v2699_v62 = vsub.f32 %v2523_v45, %v2683_v7 }
 0x828   :  { %v757_v43 = vpop.f32.mrf.mxu3 }
 0x829   :  { %v2715_v3 = vadd.f32 %v2699_v62, %v5754_v29  ;;  %v758_v28 = vadd.f32 %v5432_v34, %v757_v43 }
 0x82b   :  { %v2731_v37 = vmul.f32 0.5, %v2715_v3  ;;  %776 = vst [vmem:[%s5611_s6 + $0x70] sm:$0xff] %v758_v28 }
 0x82d   :  { %2747 = vst [vmem:[%s5613_s8 + $0x58] sm:$0xff] %v2731_v37  ;;  %v2649_v11 = vpop.xlane.xlu2 %2648  ;;  %v2493_v36 = vpop.xlane.xlu0 %2492 }
 0x82e   :  { %3144 = vrcp.f32 %v2649_v11 }
 0x82f   :  { %3146 = vrcp.f32 %v2493_v36 }
 0x830   :  { %3148 = vrcp.f32 %v2491_v54  ;;  %v759_v6 = vpop.f32.mrf.mxu3 }
 0x831   :  { %v760_v38 = vadd.f32 %v5432_v34, %v759_v6 }
 0x833   :  { %777 = vst [vmem:[%s5611_s6 + $0x78] sm:$0xff] %v760_v38 }
 0x834   :  { %v3145_v24 = vpop.eup %3144 }
 0x835   :  { %v2653_v56 = vpop.xlane.xlu1 %2652  ;;  %v2684_v26 = vmul.f32 %v3145_v24, %v5421_v19  ;;  %v3147_v48 = vpop.eup %3146 }
 0x836   :  { %v2651_v31 = vpop.xlane.xlu0 %2650  ;;  %3150 = vrcp.f32 %v2653_v56  ;;  %v3149_v44 = vpop.eup %3148  ;;  %v2526_v19 = vmul.f32 %v3147_v48, %v5423_v46 }
 0x837   :  { %3152 = vrcp.f32 %v2651_v31  ;;  %v2700_v52 = vsub.f32 %v2524_v18, %v2684_v26  ;;  %v2525_v63 = vmul.f32 %v3149_v44, %v5416_v61 }
 0x838   :  { %3154 = vrcp.f32 %v5427_v1 }
 0x839   :  { %v2716_v49 = vadd.f32 %v2700_v52, %v5755_v50 }
 0x83b   :  { %v2732_v5 = vmul.f32 0.5, %v2716_v49 }
 0x83c   :  { %v3151_v14 = vpop.eup %3150 }
 0x83d   :  { %v3153_v40 = vpop.eup %3152  ;;  %v2686_v33 = vmul.f32 %v3151_v14, %v5434_v55  ;;  %2748 = vst [vmem:[%s5613_s8 + $0x60] sm:$0xff] %v2732_v5 }
 0x83e   :  { %v2685_v34 = vmul.f32 %v3153_v40, %v5437_v2  ;;  %v3155_v46 = vpop.eup %3154 }
 0x83f   :  { %v2702_v57 = vsub.f32 %v2526_v19, %v2686_v33  ;;  %v2527_v2 = vmul.f32 %v3155_v46, %v5279_v9 }
 0x840   :  { %v2701_v16 = vsub.f32 %v2525_v63, %v2685_v34 }
 0x841   :  { %v2718_v15 = vadd.f32 %v2702_v57, %v5756_v13 }
 0x842   :  { %v2717_v39 = vadd.f32 %v2701_v16, %v5757_v0 }
 0x843   :  { %v2734_v17 = vmul.f32 0.5, %v2718_v15 }
 0x844   :  { %v2733_v32 = vmul.f32 0.5, %v2717_v39 }
 0x845   :  { %2750 = vst [vmem:[%s5613_s8 + $0x70] sm:$0xff] %v2734_v17 }
 0x846   :  { %2749 = vst [vmem:[%s5613_s8 + $0x68] sm:$0xff] %v2733_v32  ;;  %v2655_v61 = vpop.xlane.xlu2 %2654 }
 0x847   :  { %3156 = vrcp.f32 %v2655_v61 }
 0x84d   :  { %v3157_v55 = vpop.eup %3156 }
 0x84e   :  { %v2687_v8 = vmul.f32 %v3157_v55, %v5453_v21 }
 0x850   :  { %v2703_v58 = vsub.f32 %v2527_v2, %v2687_v8 }
 0x852   :  { %v2719_v23 = vadd.f32 %v2703_v58, %v5758_v27 }
 0x854   :  { %v2735_v1 = vmul.f32 0.5, %v2719_v23 }
 0x856   :  { %2751 = vst [vmem:[%s5613_s8 + $0x78] sm:$0xff] %v2735_v1 }
 0x857   :  { %2764 = vsyncpa [#allocation4], 1 }

</bundles_post_ra>
